<compile_context>
chip_gen: v5e
topology: v5e:2x2
jax: 0.10.0
libtpu: 0.0.40
codegen_flags: <defaults>
</compile_context>

<pallas_src>
import functools

import jax
import jax.numpy as jnp
from jax.experimental import pallas as pl
from jax.experimental.pallas import tpu as pltpu

HIDDEN = 128          # hidden_size
NUM_FEATURE = 2       # len(['generation', 'consumption'])
NUM_LAYERS = 2
FC_DIM = 64
OUT_DIM = 2


def _permute_gate_cols(w):
    """Reorder PyTorch gate columns [i, f, g, o] -> [i, f, o, g] along the last axis."""
    H = HIDDEN
    return jnp.concatenate([w[..., :2 * H], w[..., 3 * H:], w[..., 2 * H:3 * H]], axis=-1)


def _lstm_kernel(x_ref,        # (T*BP, F) f32, time-major rows, batch padded to BP
                 wih0_ref,     # (F, 4H)  bf16, gate cols [i,f,o,g]
                 whh0_ref,     # (H, 4H)  bf16
                 b0_ref,       # (1, 4H)  f32  (bias_ih0 + bias_hh0, permuted)
                 w1_ref,       # (2H, 4H) bf16, stacked [wih1T; whh1T], permuted
                 b1_ref,       # (1, 4H)  f32  (bias_ih1 + bias_hh1, permuted)
                 wfc_ref,      # (H, 64)  bf16
                 bfc_ref,      # (1, 64)  f32
                 wfc1_ref,     # (64, 2)  bf16
                 bfc1_ref,     # (1, 2)   f32
                 out_ref,      # (B, 2)   f32
                 *, seq_len):
    T = seq_len
    H = HIDDEN
    TB, _ = x_ref.shape
    BP = TB // T                  # padded batch (multiple of 8)
    B = out_ref.shape[0]          # real batch

    # ---- Hoisted layer-0 input projection: one matmul for all timesteps. ----
    # (T*BP, F) @ (F, 4H) + bias, done once, off the recurrent critical path.
    xg0 = (jnp.dot(x_ref[...].astype(jnp.bfloat16), wih0_ref[...],
                   preferred_element_type=jnp.float32)
           + b0_ref[...])                                   # (T*BP, 4H) f32

    whh0 = whh0_ref[...]
    w1 = w1_ref[...]
    b1 = b1_ref[...]

    def gates_to_state(gates, c):
        # Gate column order is [i | f | o | g]: one wide sigmoid + one tanh.
        sig = jax.nn.sigmoid(gates[:, :3 * H])
        g = jnp.tanh(gates[:, 3 * H:])
        i = sig[:, 0 * H:1 * H]
        f = sig[:, 1 * H:2 * H]
        o = sig[:, 2 * H:3 * H]
        c_new = f * c + i * g
        h_new = o * jnp.tanh(c_new)
        return h_new, c_new

    h0 = jnp.zeros((BP, H), jnp.float32)
    c0 = jnp.zeros((BP, H), jnp.float32)
    h1 = jnp.zeros((BP, H), jnp.float32)
    c1 = jnp.zeros((BP, H), jnp.float32)

    # Static Python unroll over time (T is small & static): the LLO scheduler sees all
    # iterations, and every slice below is static and 8-row aligned (BP % 8 == 0).
    for t in range(T):
        # Layer 0: only the recurrent matmul is on the per-step path now.
        g0 = xg0[t * BP:(t + 1) * BP, :] + jnp.dot(
            h0.astype(jnp.bfloat16), whh0, preferred_element_type=jnp.float32)
        h0, c0 = gates_to_state(g0, c0)

        # Layer 1: single fused K=2H matmul over concat([new h0, previous h1]).
        cat = jnp.concatenate([h0, h1], axis=-1).astype(jnp.bfloat16)   # (BP, 2H)
        g1 = jnp.dot(cat, w1, preferred_element_type=jnp.float32) + b1
        h1, c1 = gates_to_state(g1, c1)

    # Head: relu(fc(h_n[1])) -> fc1, computed on the padded batch, stored for real rows.
    hidden = jnp.maximum(
        jnp.dot(h1.astype(jnp.bfloat16), wfc_ref[...],
                preferred_element_type=jnp.float32) + bfc_ref[...], 0.0)
    result = (jnp.dot(hidden.astype(jnp.bfloat16), wfc1_ref[...],
                      preferred_element_type=jnp.float32) + bfc1_ref[...])
    out_ref[...] = result[:B, :]


def init_params(key):
    """PyTorch-style init (U(-1/sqrt(fan), 1/sqrt(fan))) + kernel-side weight packing."""
    H, F = HIDDEN, NUM_FEATURE
    ks = list(jax.random.split(key, 12))
    k_lstm = 1.0 / jnp.sqrt(H)

    def u(k, shape, bound):
        return jax.random.uniform(k, shape, jnp.float32, -bound, bound)

    # layer 0
    w_ih0 = u(ks[0], (4 * H, F), k_lstm)
    w_hh0 = u(ks[1], (4 * H, H), k_lstm)
    b_ih0 = u(ks[2], (4 * H,), k_lstm)
    b_hh0 = u(ks[3], (4 * H,), k_lstm)
    # layer 1
    w_ih1 = u(ks[4], (4 * H, H), k_lstm)
    w_hh1 = u(ks[5], (4 * H, H), k_lstm)
    b_ih1 = u(ks[6], (4 * H,), k_lstm)
    b_hh1 = u(ks[7], (4 * H,), k_lstm)
    # fc: Linear(128, 64), fc1: Linear(64, 2)
    k_fc = 1.0 / jnp.sqrt(H)
    w_fc = u(ks[8], (FC_DIM, H), k_fc)
    b_fc = u(ks[9], (FC_DIM,), k_fc)
    k_fc1 = 1.0 / jnp.sqrt(FC_DIM)
    w_fc1 = u(ks[10], (OUT_DIM, FC_DIM), k_fc1)
    b_fc1 = u(ks[11], (OUT_DIM,), k_fc1)

    # Reference-layout params (f32, transposed to (in, out), PyTorch gate order).
    ref = dict(
        wih0T=w_ih0.T,                       # (F, 4H)
        whh0T=w_hh0.T,                       # (H, 4H)
        b0=(b_ih0 + b_hh0).reshape(1, 4 * H),
        wih1T=w_ih1.T,                       # (H, 4H)
        whh1T=w_hh1.T,                       # (H, 4H)
        b1=(b_ih1 + b_hh1).reshape(1, 4 * H),
        wfcT=w_fc.T,                         # (H, 64)
        bfc=b_fc.reshape(1, FC_DIM),
        wfc1T=w_fc1.T,                       # (64, 2)
        bfc1=b_fc1.reshape(1, OUT_DIM),
    )

    # Kernel packing: gate-column permutation [i,f,g,o]->[i,f,o,g], layer-1 weight
    # stacking along K (done once, here), bf16 matmul weights, f32 biases.
    perm = _permute_gate_cols
    kernel = dict(
        wih0=perm(ref['wih0T']).astype(jnp.bfloat16),                          # (F, 4H)
        whh0=perm(ref['whh0T']).astype(jnp.bfloat16),                          # (H, 4H)
        b0=perm(ref['b0']),                                                    # (1, 4H)
        w1=perm(jnp.concatenate([ref['wih1T'], ref['whh1T']], axis=0)
                ).astype(jnp.bfloat16),                                        # (2H, 4H)
        b1=perm(ref['b1']),                                                    # (1, 4H)
        wfc=ref['wfcT'].astype(jnp.bfloat16),                                  # (H, 64)
        bfc=ref['bfc'],                                                        # (1, 64)
        wfc1=ref['wfc1T'].astype(jnp.bfloat16),                                # (64, 2)
        bfc1=ref['bfc1'],                                                      # (1, 2)
    )
    return dict(ref=ref, kernel=kernel)


@jax.jit
def lstm_forward(x, kparams):
    """x: (batch, seq, num_feature) float32 -> (batch, 2) float32."""
    B, T, F = x.shape
    BP = ((B + 7) // 8) * 8   # pad batch to a full sublane tile

    x_tm = jnp.transpose(x, (1, 0, 2)).astype(jnp.float32)       # (T, B, F)
    if BP != B:
        x_tm = jnp.pad(x_tm, ((0, 0), (0, BP - B), (0, 0)))
    x2d = x_tm.reshape(T * BP, F)                                 # time-major rows

    ins = (x2d,
           kparams['wih0'], kparams['whh0'], kparams['b0'],
           kparams['w1'], kparams['b1'],
           kparams['wfc'], kparams['bfc'],
           kparams['wfc1'], kparams['bfc1'])

    in_specs = [pl.BlockSpec(memory_space=pltpu.MemorySpace.VMEM) for _ in ins]
    out_spec = pl.BlockSpec(memory_space=pltpu.MemorySpace.VMEM)

    return pl.pallas_call(
        functools.partial(_lstm_kernel, seq_len=T),
        out_shape=jax.ShapeDtypeStruct((B, OUT_DIM), jnp.float32),
        in_specs=in_specs,
        out_specs=out_spec,
    )(*ins)


def _reference_forward(x, ref):
    """Pure-JAX f32 reference with the original (unpermuted, unfused) semantics."""
    B, T, F = x.shape
    H = HIDDEN
    h0 = c0 = h1 = c1 = jnp.zeros((B, H), jnp.float32)

    def cell(x_t, h, c, wih, whh, b):
        g = x_t @ wih + h @ whh + b
        i = jax.nn.sigmoid(g[:, :H]); f = jax.nn.sigmoid(g[:, H:2 * H])
        gg = jnp.tanh(g[:, 2 * H:3 * H]); o = jax.nn.sigmoid(g[:, 3 * H:])
        c = f * c + i * gg
        return o * jnp.tanh(c), c

    for t in range(T):
        x_t = x[:, t, :]
        h0, c0 = cell(x_t, h0, c0, ref['wih0T'], ref['whh0T'], ref['b0'])
        h1, c1 = cell(h0, h1, c1, ref['wih1T'], ref['whh1T'], ref['b1'])
    hid = jnp.maximum(h1 @ ref['wfcT'] + ref['bfc'], 0.0)
    return hid @ ref['wfc1T'] + ref['bfc1']


if __name__ == "__main__":
    key = jax.random.PRNGKey(0)
    k_param, k_x = jax.random.split(key)

    batch, seq = 2, 8
    params = init_params(k_param)
    x = jax.random.normal(k_x, (batch, seq, NUM_FEATURE), dtype=jnp.float32)

    out = jax.block_until_ready(lstm_forward(x, params['kernel']))
    ref = _reference_forward(x, params['ref'])

    assert out.shape == (batch, OUT_DIM)
    # bf16 matmuls (f32 accumulation) vs. pure-f32 reference: loosened tolerance.
    assert jnp.allclose(out, ref, atol=3e-2, rtol=3e-2), (out, ref)

    print("KERNEL_OK")
</pallas_src>

<mosaic_0001>
module attributes {stable_mosaic.version = 11 : i64} {
  func.func @_lstm_kernel(%arg0: memref<64x2xf32, #tpu.memory_space<vmem>>, %arg1: memref<2x512xbf16, #tpu.memory_space<vmem>>, %arg2: memref<128x512xbf16, #tpu.memory_space<vmem>>, %arg3: memref<1x512xf32, #tpu.memory_space<vmem>>, %arg4: memref<256x512xbf16, #tpu.memory_space<vmem>>, %arg5: memref<1x512xf32, #tpu.memory_space<vmem>>, %arg6: memref<128x64xbf16, #tpu.memory_space<vmem>>, %arg7: memref<1x64xf32, #tpu.memory_space<vmem>>, %arg8: memref<64x2xbf16, #tpu.memory_space<vmem>>, %arg9: memref<1x2xf32, #tpu.memory_space<vmem>>, %arg10: memref<2x2xf32, #tpu.memory_space<vmem>>) attributes {dimension_semantics = [], scalar_prefetch = 0 : i64, scratch_operands = 0 : i64, tpu.core_type = #tpu.core_type<tc>} {
    %c0 = arith.constant 0 : index
    %c0_0 = arith.constant 0 : index
    %0 = vector.load %arg0[%c0, %c0_0] : memref<64x2xf32, #tpu.memory_space<vmem>>, vector<64x2xf32>
    %1 = arith.truncf %0 : vector<64x2xf32> to vector<64x2xbf16>
    %c0_1 = arith.constant 0 : index
    %c0_2 = arith.constant 0 : index
    %2 = vector.load %arg1[%c0_1, %c0_2] : memref<2x512xbf16, #tpu.memory_space<vmem>>, vector<2x512xbf16>
    %cst = arith.constant dense<0.000000e+00> : vector<64x512xf32>
    %3 = tpu.matmul %1, %2, %cst {dimension_numbers = #tpu.dot_dimension_numbers<[1], [0], [0], [1], [0, 0, 1, 1], [], []>} : vector<64x2xbf16>, vector<2x512xbf16>, vector<64x512xf32> -> vector<64x512xf32>
    %c0_3 = arith.constant 0 : index
    %c0_4 = arith.constant 0 : index
    %4 = vector.load %arg3[%c0_3, %c0_4] : memref<1x512xf32, #tpu.memory_space<vmem>>, vector<1x512xf32>
    %5 = vector.broadcast %4 : vector<1x512xf32> to vector<64x512xf32>
    %6 = arith.addf %3, %5 : vector<64x512xf32>
    %c0_5 = arith.constant 0 : index
    %c0_6 = arith.constant 0 : index
    %7 = vector.load %arg2[%c0_5, %c0_6] : memref<128x512xbf16, #tpu.memory_space<vmem>>, vector<128x512xbf16>
    %c0_7 = arith.constant 0 : index
    %c0_8 = arith.constant 0 : index
    %8 = vector.load %arg4[%c0_7, %c0_8] : memref<256x512xbf16, #tpu.memory_space<vmem>>, vector<256x512xbf16>
    %c0_9 = arith.constant 0 : index
    %c0_10 = arith.constant 0 : index
    %9 = vector.load %arg5[%c0_9, %c0_10] : memref<1x512xf32, #tpu.memory_space<vmem>>, vector<1x512xf32>
    %cst_11 = arith.constant 0.000000e+00 : f32
    %10 = vector.broadcast %cst_11 : f32 to vector<8x128xf32>
    %cst_12 = arith.constant 0.000000e+00 : f32
    %11 = vector.broadcast %cst_12 : f32 to vector<8x128xf32>
    %cst_13 = arith.constant 0.000000e+00 : f32
    %12 = vector.broadcast %cst_13 : f32 to vector<8x128xf32>
    %cst_14 = arith.constant 0.000000e+00 : f32
    %13 = vector.broadcast %cst_14 : f32 to vector<8x128xf32>
    %14 = vector.extract_strided_slice %6 {offsets = [0, 0], sizes = [8, 512], strides = [1, 1]} : vector<64x512xf32> to vector<8x512xf32>
    %15 = arith.truncf %10 : vector<8x128xf32> to vector<8x128xbf16>
    %cst_15 = arith.constant dense<0.000000e+00> : vector<8x512xf32>
    %16 = tpu.matmul %15, %7, %cst_15 {dimension_numbers = #tpu.dot_dimension_numbers<[1], [0], [0], [1], [0, 0, 1, 1], [], []>} : vector<8x128xbf16>, vector<128x512xbf16>, vector<8x512xf32> -> vector<8x512xf32>
    %17 = arith.addf %14, %16 : vector<8x512xf32>
    %18 = vector.extract_strided_slice %17 {offsets = [0, 0], sizes = [8, 384], strides = [1, 1]} : vector<8x512xf32> to vector<8x384xf32>
    %19 = arith.negf %18 : vector<8x384xf32>
    %20 = math.exp %19 : vector<8x384xf32>
    %cst_16 = arith.constant 1.000000e+00 : f32
    %21 = vector.broadcast %cst_16 : f32 to vector<8x384xf32>
    %22 = arith.addf %21, %20 : vector<8x384xf32>
    %23 = arith.divf %21, %22 : vector<8x384xf32>
    %24 = vector.extract_strided_slice %17 {offsets = [0, 384], sizes = [8, 128], strides = [1, 1]} : vector<8x512xf32> to vector<8x128xf32>
    %25 = math.tanh %24 : vector<8x128xf32>
    %26 = vector.extract_strided_slice %23 {offsets = [0, 0], sizes = [8, 128], strides = [1, 1]} : vector<8x384xf32> to vector<8x128xf32>
    %27 = vector.extract_strided_slice %23 {offsets = [0, 128], sizes = [8, 128], strides = [1, 1]} : vector<8x384xf32> to vector<8x128xf32>
    %28 = vector.extract_strided_slice %23 {offsets = [0, 256], sizes = [8, 128], strides = [1, 1]} : vector<8x384xf32> to vector<8x128xf32>
    %29 = arith.mulf %27, %11 : vector<8x128xf32>
    %30 = arith.mulf %26, %25 : vector<8x128xf32>
    %31 = arith.addf %29, %30 : vector<8x128xf32>
    %32 = math.tanh %31 : vector<8x128xf32>
    %33 = arith.mulf %28, %32 : vector<8x128xf32>
    %34 = tpu.concatenate %33, %12 in 1 : vector<8x128xf32>, vector<8x128xf32> -> vector<8x256xf32>
    %35 = arith.truncf %34 : vector<8x256xf32> to vector<8x256xbf16>
    %cst_17 = arith.constant dense<0.000000e+00> : vector<8x512xf32>
    %36 = tpu.matmul %35, %8, %cst_17 {dimension_numbers = #tpu.dot_dimension_numbers<[1], [0], [0], [1], [0, 0, 1, 1], [], []>} : vector<8x256xbf16>, vector<256x512xbf16>, vector<8x512xf32> -> vector<8x512xf32>
    %37 = vector.broadcast %9 : vector<1x512xf32> to vector<8x512xf32>
    %38 = arith.addf %36, %37 : vector<8x512xf32>
    %39 = vector.extract_strided_slice %38 {offsets = [0, 0], sizes = [8, 384], strides = [1, 1]} : vector<8x512xf32> to vector<8x384xf32>
    %40 = arith.negf %39 : vector<8x384xf32>
    %41 = math.exp %40 : vector<8x384xf32>
    %cst_18 = arith.constant 1.000000e+00 : f32
    %42 = vector.broadcast %cst_18 : f32 to vector<8x384xf32>
    %43 = arith.addf %42, %41 : vector<8x384xf32>
    %44 = arith.divf %42, %43 : vector<8x384xf32>
    %45 = vector.extract_strided_slice %38 {offsets = [0, 384], sizes = [8, 128], strides = [1, 1]} : vector<8x512xf32> to vector<8x128xf32>
    %46 = math.tanh %45 : vector<8x128xf32>
    %47 = vector.extract_strided_slice %44 {offsets = [0, 0], sizes = [8, 128], strides = [1, 1]} : vector<8x384xf32> to vector<8x128xf32>
    %48 = vector.extract_strided_slice %44 {offsets = [0, 128], sizes = [8, 128], strides = [1, 1]} : vector<8x384xf32> to vector<8x128xf32>
    %49 = vector.extract_strided_slice %44 {offsets = [0, 256], sizes = [8, 128], strides = [1, 1]} : vector<8x384xf32> to vector<8x128xf32>
    %50 = arith.mulf %48, %13 : vector<8x128xf32>
    %51 = arith.mulf %47, %46 : vector<8x128xf32>
    %52 = arith.addf %50, %51 : vector<8x128xf32>
    %53 = math.tanh %52 : vector<8x128xf32>
    %54 = arith.mulf %49, %53 : vector<8x128xf32>
    %55 = vector.extract_strided_slice %6 {offsets = [8, 0], sizes = [8, 512], strides = [1, 1]} : vector<64x512xf32> to vector<8x512xf32>
    %56 = arith.truncf %33 : vector<8x128xf32> to vector<8x128xbf16>
    %cst_19 = arith.constant dense<0.000000e+00> : vector<8x512xf32>
    %57 = tpu.matmul %56, %7, %cst_19 {dimension_numbers = #tpu.dot_dimension_numbers<[1], [0], [0], [1], [0, 0, 1, 1], [], []>} : vector<8x128xbf16>, vector<128x512xbf16>, vector<8x512xf32> -> vector<8x512xf32>
    %58 = arith.addf %55, %57 : vector<8x512xf32>
    %59 = vector.extract_strided_slice %58 {offsets = [0, 0], sizes = [8, 384], strides = [1, 1]} : vector<8x512xf32> to vector<8x384xf32>
    %60 = arith.negf %59 : vector<8x384xf32>
    %61 = math.exp %60 : vector<8x384xf32>
    %cst_20 = arith.constant 1.000000e+00 : f32
    %62 = vector.broadcast %cst_20 : f32 to vector<8x384xf32>
    %63 = arith.addf %62, %61 : vector<8x384xf32>
    %64 = arith.divf %62, %63 : vector<8x384xf32>
    %65 = vector.extract_strided_slice %58 {offsets = [0, 384], sizes = [8, 128], strides = [1, 1]} : vector<8x512xf32> to vector<8x128xf32>
    %66 = math.tanh %65 : vector<8x128xf32>
    %67 = vector.extract_strided_slice %64 {offsets = [0, 0], sizes = [8, 128], strides = [1, 1]} : vector<8x384xf32> to vector<8x128xf32>
    %68 = vector.extract_strided_slice %64 {offsets = [0, 128], sizes = [8, 128], strides = [1, 1]} : vector<8x384xf32> to vector<8x128xf32>
    %69 = vector.extract_strided_slice %64 {offsets = [0, 256], sizes = [8, 128], strides = [1, 1]} : vector<8x384xf32> to vector<8x128xf32>
    %70 = arith.mulf %68, %31 : vector<8x128xf32>
    %71 = arith.mulf %67, %66 : vector<8x128xf32>
    %72 = arith.addf %70, %71 : vector<8x128xf32>
    %73 = math.tanh %72 : vector<8x128xf32>
    %74 = arith.mulf %69, %73 : vector<8x128xf32>
    %75 = tpu.concatenate %74, %54 in 1 : vector<8x128xf32>, vector<8x128xf32> -> vector<8x256xf32>
    %76 = arith.truncf %75 : vector<8x256xf32> to vector<8x256xbf16>
    %cst_21 = arith.constant dense<0.000000e+00> : vector<8x512xf32>
    %77 = tpu.matmul %76, %8, %cst_21 {dimension_numbers = #tpu.dot_dimension_numbers<[1], [0], [0], [1], [0, 0, 1, 1], [], []>} : vector<8x256xbf16>, vector<256x512xbf16>, vector<8x512xf32> -> vector<8x512xf32>
    %78 = vector.broadcast %9 : vector<1x512xf32> to vector<8x512xf32>
    %79 = arith.addf %77, %78 : vector<8x512xf32>
    %80 = vector.extract_strided_slice %79 {offsets = [0, 0], sizes = [8, 384], strides = [1, 1]} : vector<8x512xf32> to vector<8x384xf32>
    %81 = arith.negf %80 : vector<8x384xf32>
    %82 = math.exp %81 : vector<8x384xf32>
    %cst_22 = arith.constant 1.000000e+00 : f32
    %83 = vector.broadcast %cst_22 : f32 to vector<8x384xf32>
    %84 = arith.addf %83, %82 : vector<8x384xf32>
    %85 = arith.divf %83, %84 : vector<8x384xf32>
    %86 = vector.extract_strided_slice %79 {offsets = [0, 384], sizes = [8, 128], strides = [1, 1]} : vector<8x512xf32> to vector<8x128xf32>
    %87 = math.tanh %86 : vector<8x128xf32>
    %88 = vector.extract_strided_slice %85 {offsets = [0, 0], sizes = [8, 128], strides = [1, 1]} : vector<8x384xf32> to vector<8x128xf32>
    %89 = vector.extract_strided_slice %85 {offsets = [0, 128], sizes = [8, 128], strides = [1, 1]} : vector<8x384xf32> to vector<8x128xf32>
    %90 = vector.extract_strided_slice %85 {offsets = [0, 256], sizes = [8, 128], strides = [1, 1]} : vector<8x384xf32> to vector<8x128xf32>
    %91 = arith.mulf %89, %52 : vector<8x128xf32>
    %92 = arith.mulf %88, %87 : vector<8x128xf32>
    %93 = arith.addf %91, %92 : vector<8x128xf32>
    %94 = math.tanh %93 : vector<8x128xf32>
    %95 = arith.mulf %90, %94 : vector<8x128xf32>
    %96 = vector.extract_strided_slice %6 {offsets = [16, 0], sizes = [8, 512], strides = [1, 1]} : vector<64x512xf32> to vector<8x512xf32>
    %97 = arith.truncf %74 : vector<8x128xf32> to vector<8x128xbf16>
    %cst_23 = arith.constant dense<0.000000e+00> : vector<8x512xf32>
    %98 = tpu.matmul %97, %7, %cst_23 {dimension_numbers = #tpu.dot_dimension_numbers<[1], [0], [0], [1], [0, 0, 1, 1], [], []>} : vector<8x128xbf16>, vector<128x512xbf16>, vector<8x512xf32> -> vector<8x512xf32>
    %99 = arith.addf %96, %98 : vector<8x512xf32>
    %100 = vector.extract_strided_slice %99 {offsets = [0, 0], sizes = [8, 384], strides = [1, 1]} : vector<8x512xf32> to vector<8x384xf32>
    %101 = arith.negf %100 : vector<8x384xf32>
    %102 = math.exp %101 : vector<8x384xf32>
    %cst_24 = arith.constant 1.000000e+00 : f32
    %103 = vector.broadcast %cst_24 : f32 to vector<8x384xf32>
    %104 = arith.addf %103, %102 : vector<8x384xf32>
    %105 = arith.divf %103, %104 : vector<8x384xf32>
    %106 = vector.extract_strided_slice %99 {offsets = [0, 384], sizes = [8, 128], strides = [1, 1]} : vector<8x512xf32> to vector<8x128xf32>
    %107 = math.tanh %106 : vector<8x128xf32>
    %108 = vector.extract_strided_slice %105 {offsets = [0, 0], sizes = [8, 128], strides = [1, 1]} : vector<8x384xf32> to vector<8x128xf32>
    %109 = vector.extract_strided_slice %105 {offsets = [0, 128], sizes = [8, 128], strides = [1, 1]} : vector<8x384xf32> to vector<8x128xf32>
    %110 = vector.extract_strided_slice %105 {offsets = [0, 256], sizes = [8, 128], strides = [1, 1]} : vector<8x384xf32> to vector<8x128xf32>
    %111 = arith.mulf %109, %72 : vector<8x128xf32>
    %112 = arith.mulf %108, %107 : vector<8x128xf32>
    %113 = arith.addf %111, %112 : vector<8x128xf32>
    %114 = math.tanh %113 : vector<8x128xf32>
    %115 = arith.mulf %110, %114 : vector<8x128xf32>
    %116 = tpu.concatenate %115, %95 in 1 : vector<8x128xf32>, vector<8x128xf32> -> vector<8x256xf32>
    %117 = arith.truncf %116 : vector<8x256xf32> to vector<8x256xbf16>
    %cst_25 = arith.constant dense<0.000000e+00> : vector<8x512xf32>
    %118 = tpu.matmul %117, %8, %cst_25 {dimension_numbers = #tpu.dot_dimension_numbers<[1], [0], [0], [1], [0, 0, 1, 1], [], []>} : vector<8x256xbf16>, vector<256x512xbf16>, vector<8x512xf32> -> vector<8x512xf32>
    %119 = vector.broadcast %9 : vector<1x512xf32> to vector<8x512xf32>
    %120 = arith.addf %118, %119 : vector<8x512xf32>
    %121 = vector.extract_strided_slice %120 {offsets = [0, 0], sizes = [8, 384], strides = [1, 1]} : vector<8x512xf32> to vector<8x384xf32>
    %122 = arith.negf %121 : vector<8x384xf32>
    %123 = math.exp %122 : vector<8x384xf32>
    %cst_26 = arith.constant 1.000000e+00 : f32
    %124 = vector.broadcast %cst_26 : f32 to vector<8x384xf32>
    %125 = arith.addf %124, %123 : vector<8x384xf32>
    %126 = arith.divf %124, %125 : vector<8x384xf32>
    %127 = vector.extract_strided_slice %120 {offsets = [0, 384], sizes = [8, 128], strides = [1, 1]} : vector<8x512xf32> to vector<8x128xf32>
    %128 = math.tanh %127 : vector<8x128xf32>
    %129 = vector.extract_strided_slice %126 {offsets = [0, 0], sizes = [8, 128], strides = [1, 1]} : vector<8x384xf32> to vector<8x128xf32>
    %130 = vector.extract_strided_slice %126 {offsets = [0, 128], sizes = [8, 128], strides = [1, 1]} : vector<8x384xf32> to vector<8x128xf32>
    %131 = vector.extract_strided_slice %126 {offsets = [0, 256], sizes = [8, 128], strides = [1, 1]} : vector<8x384xf32> to vector<8x128xf32>
    %132 = arith.mulf %130, %93 : vector<8x128xf32>
    %133 = arith.mulf %129, %128 : vector<8x128xf32>
    %134 = arith.addf %132, %133 : vector<8x128xf32>
    %135 = math.tanh %134 : vector<8x128xf32>
    %136 = arith.mulf %131, %135 : vector<8x128xf32>
    %137 = vector.extract_strided_slice %6 {offsets = [24, 0], sizes = [8, 512], strides = [1, 1]} : vector<64x512xf32> to vector<8x512xf32>
    %138 = arith.truncf %115 : vector<8x128xf32> to vector<8x128xbf16>
    %cst_27 = arith.constant dense<0.000000e+00> : vector<8x512xf32>
    %139 = tpu.matmul %138, %7, %cst_27 {dimension_numbers = #tpu.dot_dimension_numbers<[1], [0], [0], [1], [0, 0, 1, 1], [], []>} : vector<8x128xbf16>, vector<128x512xbf16>, vector<8x512xf32> -> vector<8x512xf32>
    %140 = arith.addf %137, %139 : vector<8x512xf32>
    %141 = vector.extract_strided_slice %140 {offsets = [0, 0], sizes = [8, 384], strides = [1, 1]} : vector<8x512xf32> to vector<8x384xf32>
    %142 = arith.negf %141 : vector<8x384xf32>
    %143 = math.exp %142 : vector<8x384xf32>
    %cst_28 = arith.constant 1.000000e+00 : f32
    %144 = vector.broadcast %cst_28 : f32 to vector<8x384xf32>
    %145 = arith.addf %144, %143 : vector<8x384xf32>
    %146 = arith.divf %144, %145 : vector<8x384xf32>
    %147 = vector.extract_strided_slice %140 {offsets = [0, 384], sizes = [8, 128], strides = [1, 1]} : vector<8x512xf32> to vector<8x128xf32>
    %148 = math.tanh %147 : vector<8x128xf32>
    %149 = vector.extract_strided_slice %146 {offsets = [0, 0], sizes = [8, 128], strides = [1, 1]} : vector<8x384xf32> to vector<8x128xf32>
    %150 = vector.extract_strided_slice %146 {offsets = [0, 128], sizes = [8, 128], strides = [1, 1]} : vector<8x384xf32> to vector<8x128xf32>
    %151 = vector.extract_strided_slice %146 {offsets = [0, 256], sizes = [8, 128], strides = [1, 1]} : vector<8x384xf32> to vector<8x128xf32>
    %152 = arith.mulf %150, %113 : vector<8x128xf32>
    %153 = arith.mulf %149, %148 : vector<8x128xf32>
    %154 = arith.addf %152, %153 : vector<8x128xf32>
    %155 = math.tanh %154 : vector<8x128xf32>
    %156 = arith.mulf %151, %155 : vector<8x128xf32>
    %157 = tpu.concatenate %156, %136 in 1 : vector<8x128xf32>, vector<8x128xf32> -> vector<8x256xf32>
    %158 = arith.truncf %157 : vector<8x256xf32> to vector<8x256xbf16>
    %cst_29 = arith.constant dense<0.000000e+00> : vector<8x512xf32>
    %159 = tpu.matmul %158, %8, %cst_29 {dimension_numbers = #tpu.dot_dimension_numbers<[1], [0], [0], [1], [0, 0, 1, 1], [], []>} : vector<8x256xbf16>, vector<256x512xbf16>, vector<8x512xf32> -> vector<8x512xf32>
    %160 = vector.broadcast %9 : vector<1x512xf32> to vector<8x512xf32>
    %161 = arith.addf %159, %160 : vector<8x512xf32>
    %162 = vector.extract_strided_slice %161 {offsets = [0, 0], sizes = [8, 384], strides = [1, 1]} : vector<8x512xf32> to vector<8x384xf32>
    %163 = arith.negf %162 : vector<8x384xf32>
    %164 = math.exp %163 : vector<8x384xf32>
    %cst_30 = arith.constant 1.000000e+00 : f32
    %165 = vector.broadcast %cst_30 : f32 to vector<8x384xf32>
    %166 = arith.addf %165, %164 : vector<8x384xf32>
    %167 = arith.divf %165, %166 : vector<8x384xf32>
    %168 = vector.extract_strided_slice %161 {offsets = [0, 384], sizes = [8, 128], strides = [1, 1]} : vector<8x512xf32> to vector<8x128xf32>
    %169 = math.tanh %168 : vector<8x128xf32>
    %170 = vector.extract_strided_slice %167 {offsets = [0, 0], sizes = [8, 128], strides = [1, 1]} : vector<8x384xf32> to vector<8x128xf32>
    %171 = vector.extract_strided_slice %167 {offsets = [0, 128], sizes = [8, 128], strides = [1, 1]} : vector<8x384xf32> to vector<8x128xf32>
    %172 = vector.extract_strided_slice %167 {offsets = [0, 256], sizes = [8, 128], strides = [1, 1]} : vector<8x384xf32> to vector<8x128xf32>
    %173 = arith.mulf %171, %134 : vector<8x128xf32>
    %174 = arith.mulf %170, %169 : vector<8x128xf32>
    %175 = arith.addf %173, %174 : vector<8x128xf32>
    %176 = math.tanh %175 : vector<8x128xf32>
    %177 = arith.mulf %172, %176 : vector<8x128xf32>
    %178 = vector.extract_strided_slice %6 {offsets = [32, 0], sizes = [8, 512], strides = [1, 1]} : vector<64x512xf32> to vector<8x512xf32>
    %179 = arith.truncf %156 : vector<8x128xf32> to vector<8x128xbf16>
    %cst_31 = arith.constant dense<0.000000e+00> : vector<8x512xf32>
    %180 = tpu.matmul %179, %7, %cst_31 {dimension_numbers = #tpu.dot_dimension_numbers<[1], [0], [0], [1], [0, 0, 1, 1], [], []>} : vector<8x128xbf16>, vector<128x512xbf16>, vector<8x512xf32> -> vector<8x512xf32>
    %181 = arith.addf %178, %180 : vector<8x512xf32>
    %182 = vector.extract_strided_slice %181 {offsets = [0, 0], sizes = [8, 384], strides = [1, 1]} : vector<8x512xf32> to vector<8x384xf32>
    %183 = arith.negf %182 : vector<8x384xf32>
    %184 = math.exp %183 : vector<8x384xf32>
    %cst_32 = arith.constant 1.000000e+00 : f32
    %185 = vector.broadcast %cst_32 : f32 to vector<8x384xf32>
    %186 = arith.addf %185, %184 : vector<8x384xf32>
    %187 = arith.divf %185, %186 : vector<8x384xf32>
    %188 = vector.extract_strided_slice %181 {offsets = [0, 384], sizes = [8, 128], strides = [1, 1]} : vector<8x512xf32> to vector<8x128xf32>
    %189 = math.tanh %188 : vector<8x128xf32>
    %190 = vector.extract_strided_slice %187 {offsets = [0, 0], sizes = [8, 128], strides = [1, 1]} : vector<8x384xf32> to vector<8x128xf32>
    %191 = vector.extract_strided_slice %187 {offsets = [0, 128], sizes = [8, 128], strides = [1, 1]} : vector<8x384xf32> to vector<8x128xf32>
    %192 = vector.extract_strided_slice %187 {offsets = [0, 256], sizes = [8, 128], strides = [1, 1]} : vector<8x384xf32> to vector<8x128xf32>
    %193 = arith.mulf %191, %154 : vector<8x128xf32>
    %194 = arith.mulf %190, %189 : vector<8x128xf32>
    %195 = arith.addf %193, %194 : vector<8x128xf32>
    %196 = math.tanh %195 : vector<8x128xf32>
    %197 = arith.mulf %192, %196 : vector<8x128xf32>
    %198 = tpu.concatenate %197, %177 in 1 : vector<8x128xf32>, vector<8x128xf32> -> vector<8x256xf32>
    %199 = arith.truncf %198 : vector<8x256xf32> to vector<8x256xbf16>
    %cst_33 = arith.constant dense<0.000000e+00> : vector<8x512xf32>
    %200 = tpu.matmul %199, %8, %cst_33 {dimension_numbers = #tpu.dot_dimension_numbers<[1], [0], [0], [1], [0, 0, 1, 1], [], []>} : vector<8x256xbf16>, vector<256x512xbf16>, vector<8x512xf32> -> vector<8x512xf32>
    %201 = vector.broadcast %9 : vector<1x512xf32> to vector<8x512xf32>
    %202 = arith.addf %200, %201 : vector<8x512xf32>
    %203 = vector.extract_strided_slice %202 {offsets = [0, 0], sizes = [8, 384], strides = [1, 1]} : vector<8x512xf32> to vector<8x384xf32>
    %204 = arith.negf %203 : vector<8x384xf32>
    %205 = math.exp %204 : vector<8x384xf32>
    %cst_34 = arith.constant 1.000000e+00 : f32
    %206 = vector.broadcast %cst_34 : f32 to vector<8x384xf32>
    %207 = arith.addf %206, %205 : vector<8x384xf32>
    %208 = arith.divf %206, %207 : vector<8x384xf32>
    %209 = vector.extract_strided_slice %202 {offsets = [0, 384], sizes = [8, 128], strides = [1, 1]} : vector<8x512xf32> to vector<8x128xf32>
    %210 = math.tanh %209 : vector<8x128xf32>
    %211 = vector.extract_strided_slice %208 {offsets = [0, 0], sizes = [8, 128], strides = [1, 1]} : vector<8x384xf32> to vector<8x128xf32>
    %212 = vector.extract_strided_slice %208 {offsets = [0, 128], sizes = [8, 128], strides = [1, 1]} : vector<8x384xf32> to vector<8x128xf32>
    %213 = vector.extract_strided_slice %208 {offsets = [0, 256], sizes = [8, 128], strides = [1, 1]} : vector<8x384xf32> to vector<8x128xf32>
    %214 = arith.mulf %212, %175 : vector<8x128xf32>
    %215 = arith.mulf %211, %210 : vector<8x128xf32>
    %216 = arith.addf %214, %215 : vector<8x128xf32>
    %217 = math.tanh %216 : vector<8x128xf32>
    %218 = arith.mulf %213, %217 : vector<8x128xf32>
    %219 = vector.extract_strided_slice %6 {offsets = [40, 0], sizes = [8, 512], strides = [1, 1]} : vector<64x512xf32> to vector<8x512xf32>
    %220 = arith.truncf %197 : vector<8x128xf32> to vector<8x128xbf16>
    %cst_35 = arith.constant dense<0.000000e+00> : vector<8x512xf32>
    %221 = tpu.matmul %220, %7, %cst_35 {dimension_numbers = #tpu.dot_dimension_numbers<[1], [0], [0], [1], [0, 0, 1, 1], [], []>} : vector<8x128xbf16>, vector<128x512xbf16>, vector<8x512xf32> -> vector<8x512xf32>
    %222 = arith.addf %219, %221 : vector<8x512xf32>
    %223 = vector.extract_strided_slice %222 {offsets = [0, 0], sizes = [8, 384], strides = [1, 1]} : vector<8x512xf32> to vector<8x384xf32>
    %224 = arith.negf %223 : vector<8x384xf32>
    %225 = math.exp %224 : vector<8x384xf32>
    %cst_36 = arith.constant 1.000000e+00 : f32
    %226 = vector.broadcast %cst_36 : f32 to vector<8x384xf32>
    %227 = arith.addf %226, %225 : vector<8x384xf32>
    %228 = arith.divf %226, %227 : vector<8x384xf32>
    %229 = vector.extract_strided_slice %222 {offsets = [0, 384], sizes = [8, 128], strides = [1, 1]} : vector<8x512xf32> to vector<8x128xf32>
    %230 = math.tanh %229 : vector<8x128xf32>
    %231 = vector.extract_strided_slice %228 {offsets = [0, 0], sizes = [8, 128], strides = [1, 1]} : vector<8x384xf32> to vector<8x128xf32>
    %232 = vector.extract_strided_slice %228 {offsets = [0, 128], sizes = [8, 128], strides = [1, 1]} : vector<8x384xf32> to vector<8x128xf32>
    %233 = vector.extract_strided_slice %228 {offsets = [0, 256], sizes = [8, 128], strides = [1, 1]} : vector<8x384xf32> to vector<8x128xf32>
    %234 = arith.mulf %232, %195 : vector<8x128xf32>
    %235 = arith.mulf %231, %230 : vector<8x128xf32>
    %236 = arith.addf %234, %235 : vector<8x128xf32>
    %237 = math.tanh %236 : vector<8x128xf32>
    %238 = arith.mulf %233, %237 : vector<8x128xf32>
    %239 = tpu.concatenate %238, %218 in 1 : vector<8x128xf32>, vector<8x128xf32> -> vector<8x256xf32>
    %240 = arith.truncf %239 : vector<8x256xf32> to vector<8x256xbf16>
    %cst_37 = arith.constant dense<0.000000e+00> : vector<8x512xf32>
    %241 = tpu.matmul %240, %8, %cst_37 {dimension_numbers = #tpu.dot_dimension_numbers<[1], [0], [0], [1], [0, 0, 1, 1], [], []>} : vector<8x256xbf16>, vector<256x512xbf16>, vector<8x512xf32> -> vector<8x512xf32>
    %242 = vector.broadcast %9 : vector<1x512xf32> to vector<8x512xf32>
    %243 = arith.addf %241, %242 : vector<8x512xf32>
    %244 = vector.extract_strided_slice %243 {offsets = [0, 0], sizes = [8, 384], strides = [1, 1]} : vector<8x512xf32> to vector<8x384xf32>
    %245 = arith.negf %244 : vector<8x384xf32>
    %246 = math.exp %245 : vector<8x384xf32>
    %cst_38 = arith.constant 1.000000e+00 : f32
    %247 = vector.broadcast %cst_38 : f32 to vector<8x384xf32>
    %248 = arith.addf %247, %246 : vector<8x384xf32>
    %249 = arith.divf %247, %248 : vector<8x384xf32>
    %250 = vector.extract_strided_slice %243 {offsets = [0, 384], sizes = [8, 128], strides = [1, 1]} : vector<8x512xf32> to vector<8x128xf32>
    %251 = math.tanh %250 : vector<8x128xf32>
    %252 = vector.extract_strided_slice %249 {offsets = [0, 0], sizes = [8, 128], strides = [1, 1]} : vector<8x384xf32> to vector<8x128xf32>
    %253 = vector.extract_strided_slice %249 {offsets = [0, 128], sizes = [8, 128], strides = [1, 1]} : vector<8x384xf32> to vector<8x128xf32>
    %254 = vector.extract_strided_slice %249 {offsets = [0, 256], sizes = [8, 128], strides = [1, 1]} : vector<8x384xf32> to vector<8x128xf32>
    %255 = arith.mulf %253, %216 : vector<8x128xf32>
    %256 = arith.mulf %252, %251 : vector<8x128xf32>
    %257 = arith.addf %255, %256 : vector<8x128xf32>
    %258 = math.tanh %257 : vector<8x128xf32>
    %259 = arith.mulf %254, %258 : vector<8x128xf32>
    %260 = vector.extract_strided_slice %6 {offsets = [48, 0], sizes = [8, 512], strides = [1, 1]} : vector<64x512xf32> to vector<8x512xf32>
    %261 = arith.truncf %238 : vector<8x128xf32> to vector<8x128xbf16>
    %cst_39 = arith.constant dense<0.000000e+00> : vector<8x512xf32>
    %262 = tpu.matmul %261, %7, %cst_39 {dimension_numbers = #tpu.dot_dimension_numbers<[1], [0], [0], [1], [0, 0, 1, 1], [], []>} : vector<8x128xbf16>, vector<128x512xbf16>, vector<8x512xf32> -> vector<8x512xf32>
    %263 = arith.addf %260, %262 : vector<8x512xf32>
    %264 = vector.extract_strided_slice %263 {offsets = [0, 0], sizes = [8, 384], strides = [1, 1]} : vector<8x512xf32> to vector<8x384xf32>
    %265 = arith.negf %264 : vector<8x384xf32>
    %266 = math.exp %265 : vector<8x384xf32>
    %cst_40 = arith.constant 1.000000e+00 : f32
    %267 = vector.broadcast %cst_40 : f32 to vector<8x384xf32>
    %268 = arith.addf %267, %266 : vector<8x384xf32>
    %269 = arith.divf %267, %268 : vector<8x384xf32>
    %270 = vector.extract_strided_slice %263 {offsets = [0, 384], sizes = [8, 128], strides = [1, 1]} : vector<8x512xf32> to vector<8x128xf32>
    %271 = math.tanh %270 : vector<8x128xf32>
    %272 = vector.extract_strided_slice %269 {offsets = [0, 0], sizes = [8, 128], strides = [1, 1]} : vector<8x384xf32> to vector<8x128xf32>
    %273 = vector.extract_strided_slice %269 {offsets = [0, 128], sizes = [8, 128], strides = [1, 1]} : vector<8x384xf32> to vector<8x128xf32>
    %274 = vector.extract_strided_slice %269 {offsets = [0, 256], sizes = [8, 128], strides = [1, 1]} : vector<8x384xf32> to vector<8x128xf32>
    %275 = arith.mulf %273, %236 : vector<8x128xf32>
    %276 = arith.mulf %272, %271 : vector<8x128xf32>
    %277 = arith.addf %275, %276 : vector<8x128xf32>
    %278 = math.tanh %277 : vector<8x128xf32>
    %279 = arith.mulf %274, %278 : vector<8x128xf32>
    %280 = tpu.concatenate %279, %259 in 1 : vector<8x128xf32>, vector<8x128xf32> -> vector<8x256xf32>
    %281 = arith.truncf %280 : vector<8x256xf32> to vector<8x256xbf16>
    %cst_41 = arith.constant dense<0.000000e+00> : vector<8x512xf32>
    %282 = tpu.matmul %281, %8, %cst_41 {dimension_numbers = #tpu.dot_dimension_numbers<[1], [0], [0], [1], [0, 0, 1, 1], [], []>} : vector<8x256xbf16>, vector<256x512xbf16>, vector<8x512xf32> -> vector<8x512xf32>
    %283 = vector.broadcast %9 : vector<1x512xf32> to vector<8x512xf32>
    %284 = arith.addf %282, %283 : vector<8x512xf32>
    %285 = vector.extract_strided_slice %284 {offsets = [0, 0], sizes = [8, 384], strides = [1, 1]} : vector<8x512xf32> to vector<8x384xf32>
    %286 = arith.negf %285 : vector<8x384xf32>
    %287 = math.exp %286 : vector<8x384xf32>
    %cst_42 = arith.constant 1.000000e+00 : f32
    %288 = vector.broadcast %cst_42 : f32 to vector<8x384xf32>
    %289 = arith.addf %288, %287 : vector<8x384xf32>
    %290 = arith.divf %288, %289 : vector<8x384xf32>
    %291 = vector.extract_strided_slice %284 {offsets = [0, 384], sizes = [8, 128], strides = [1, 1]} : vector<8x512xf32> to vector<8x128xf32>
    %292 = math.tanh %291 : vector<8x128xf32>
    %293 = vector.extract_strided_slice %290 {offsets = [0, 0], sizes = [8, 128], strides = [1, 1]} : vector<8x384xf32> to vector<8x128xf32>
    %294 = vector.extract_strided_slice %290 {offsets = [0, 128], sizes = [8, 128], strides = [1, 1]} : vector<8x384xf32> to vector<8x128xf32>
    %295 = vector.extract_strided_slice %290 {offsets = [0, 256], sizes = [8, 128], strides = [1, 1]} : vector<8x384xf32> to vector<8x128xf32>
    %296 = arith.mulf %294, %257 : vector<8x128xf32>
    %297 = arith.mulf %293, %292 : vector<8x128xf32>
    %298 = arith.addf %296, %297 : vector<8x128xf32>
    %299 = math.tanh %298 : vector<8x128xf32>
    %300 = arith.mulf %295, %299 : vector<8x128xf32>
    %301 = vector.extract_strided_slice %6 {offsets = [56, 0], sizes = [8, 512], strides = [1, 1]} : vector<64x512xf32> to vector<8x512xf32>
    %302 = arith.truncf %279 : vector<8x128xf32> to vector<8x128xbf16>
    %cst_43 = arith.constant dense<0.000000e+00> : vector<8x512xf32>
    %303 = tpu.matmul %302, %7, %cst_43 {dimension_numbers = #tpu.dot_dimension_numbers<[1], [0], [0], [1], [0, 0, 1, 1], [], []>} : vector<8x128xbf16>, vector<128x512xbf16>, vector<8x512xf32> -> vector<8x512xf32>
    %304 = arith.addf %301, %303 : vector<8x512xf32>
    %305 = vector.extract_strided_slice %304 {offsets = [0, 0], sizes = [8, 384], strides = [1, 1]} : vector<8x512xf32> to vector<8x384xf32>
    %306 = arith.negf %305 : vector<8x384xf32>
    %307 = math.exp %306 : vector<8x384xf32>
    %cst_44 = arith.constant 1.000000e+00 : f32
    %308 = vector.broadcast %cst_44 : f32 to vector<8x384xf32>
    %309 = arith.addf %308, %307 : vector<8x384xf32>
    %310 = arith.divf %308, %309 : vector<8x384xf32>
    %311 = vector.extract_strided_slice %304 {offsets = [0, 384], sizes = [8, 128], strides = [1, 1]} : vector<8x512xf32> to vector<8x128xf32>
    %312 = math.tanh %311 : vector<8x128xf32>
    %313 = vector.extract_strided_slice %310 {offsets = [0, 0], sizes = [8, 128], strides = [1, 1]} : vector<8x384xf32> to vector<8x128xf32>
    %314 = vector.extract_strided_slice %310 {offsets = [0, 128], sizes = [8, 128], strides = [1, 1]} : vector<8x384xf32> to vector<8x128xf32>
    %315 = vector.extract_strided_slice %310 {offsets = [0, 256], sizes = [8, 128], strides = [1, 1]} : vector<8x384xf32> to vector<8x128xf32>
    %316 = arith.mulf %314, %277 : vector<8x128xf32>
    %317 = arith.mulf %313, %312 : vector<8x128xf32>
    %318 = arith.addf %316, %317 : vector<8x128xf32>
    %319 = math.tanh %318 : vector<8x128xf32>
    %320 = arith.mulf %315, %319 : vector<8x128xf32>
    %321 = tpu.concatenate %320, %300 in 1 : vector<8x128xf32>, vector<8x128xf32> -> vector<8x256xf32>
    %322 = arith.truncf %321 : vector<8x256xf32> to vector<8x256xbf16>
    %cst_45 = arith.constant dense<0.000000e+00> : vector<8x512xf32>
    %323 = tpu.matmul %322, %8, %cst_45 {dimension_numbers = #tpu.dot_dimension_numbers<[1], [0], [0], [1], [0, 0, 1, 1], [], []>} : vector<8x256xbf16>, vector<256x512xbf16>, vector<8x512xf32> -> vector<8x512xf32>
    %324 = vector.broadcast %9 : vector<1x512xf32> to vector<8x512xf32>
    %325 = arith.addf %323, %324 : vector<8x512xf32>
    %326 = vector.extract_strided_slice %325 {offsets = [0, 0], sizes = [8, 384], strides = [1, 1]} : vector<8x512xf32> to vector<8x384xf32>
    %327 = arith.negf %326 : vector<8x384xf32>
    %328 = math.exp %327 : vector<8x384xf32>
    %cst_46 = arith.constant 1.000000e+00 : f32
    %329 = vector.broadcast %cst_46 : f32 to vector<8x384xf32>
    %330 = arith.addf %329, %328 : vector<8x384xf32>
    %331 = arith.divf %329, %330 : vector<8x384xf32>
    %332 = vector.extract_strided_slice %325 {offsets = [0, 384], sizes = [8, 128], strides = [1, 1]} : vector<8x512xf32> to vector<8x128xf32>
    %333 = math.tanh %332 : vector<8x128xf32>
    %334 = vector.extract_strided_slice %331 {offsets = [0, 0], sizes = [8, 128], strides = [1, 1]} : vector<8x384xf32> to vector<8x128xf32>
    %335 = vector.extract_strided_slice %331 {offsets = [0, 128], sizes = [8, 128], strides = [1, 1]} : vector<8x384xf32> to vector<8x128xf32>
    %336 = vector.extract_strided_slice %331 {offsets = [0, 256], sizes = [8, 128], strides = [1, 1]} : vector<8x384xf32> to vector<8x128xf32>
    %337 = arith.mulf %335, %298 : vector<8x128xf32>
    %338 = arith.mulf %334, %333 : vector<8x128xf32>
    %339 = arith.addf %337, %338 : vector<8x128xf32>
    %340 = math.tanh %339 : vector<8x128xf32>
    %341 = arith.mulf %336, %340 : vector<8x128xf32>
    %342 = arith.truncf %341 : vector<8x128xf32> to vector<8x128xbf16>
    %c0_47 = arith.constant 0 : index
    %c0_48 = arith.constant 0 : index
    %343 = vector.load %arg6[%c0_47, %c0_48] : memref<128x64xbf16, #tpu.memory_space<vmem>>, vector<128x64xbf16>
    %cst_49 = arith.constant dense<0.000000e+00> : vector<8x64xf32>
    %344 = tpu.matmul %342, %343, %cst_49 {dimension_numbers = #tpu.dot_dimension_numbers<[1], [0], [0], [1], [0, 0, 1, 1], [], []>} : vector<8x128xbf16>, vector<128x64xbf16>, vector<8x64xf32> -> vector<8x64xf32>
    %c0_50 = arith.constant 0 : index
    %c0_51 = arith.constant 0 : index
    %345 = vector.load %arg7[%c0_50, %c0_51] : memref<1x64xf32, #tpu.memory_space<vmem>>, vector<1x64xf32>
    %346 = vector.broadcast %345 : vector<1x64xf32> to vector<8x64xf32>
    %347 = arith.addf %344, %346 : vector<8x64xf32>
    %cst_52 = arith.constant 0.000000e+00 : f32
    %348 = vector.broadcast %cst_52 : f32 to vector<8x64xf32>
    %349 = arith.maximumf %347, %348 : vector<8x64xf32>
    %350 = arith.truncf %349 : vector<8x64xf32> to vector<8x64xbf16>
    %c0_53 = arith.constant 0 : index
    %c0_54 = arith.constant 0 : index
    %351 = vector.load %arg8[%c0_53, %c0_54] : memref<64x2xbf16, #tpu.memory_space<vmem>>, vector<64x2xbf16>
    %cst_55 = arith.constant dense<0.000000e+00> : vector<8x2xf32>
    %352 = tpu.matmul %350, %351, %cst_55 {dimension_numbers = #tpu.dot_dimension_numbers<[1], [0], [0], [1], [0, 0, 1, 1], [], []>} : vector<8x64xbf16>, vector<64x2xbf16>, vector<8x2xf32> -> vector<8x2xf32>
    %c0_56 = arith.constant 0 : index
    %c0_57 = arith.constant 0 : index
    %353 = vector.load %arg9[%c0_56, %c0_57] : memref<1x2xf32, #tpu.memory_space<vmem>>, vector<1x2xf32>
    %354 = vector.broadcast %353 : vector<1x2xf32> to vector<8x2xf32>
    %355 = arith.addf %352, %354 : vector<8x2xf32>
    %356 = vector.extract_strided_slice %355 {offsets = [0, 0], sizes = [2, 2], strides = [1, 1]} : vector<8x2xf32> to vector<2x2xf32>
    %c0_58 = arith.constant 0 : index
    %c0_59 = arith.constant 0 : index
    %357 = vector.load %arg10[%c0_58, %c0_59] : memref<2x2xf32, #tpu.memory_space<vmem>>, vector<2x2xf32>
    tpu.vector_store %arg10[%c0_58, %c0_59], %356 {strides = array<i32>} : memref<2x2xf32, #tpu.memory_space<vmem>>, vector<2x2xf32>,
    return
  }
}

</mosaic_0001>

<bundles_post_ra>
// kernel: lstm_forward.1
= control target key start
LH: loop header
LB: loop body
LE: loop exit
PB: predicated region body
PF: predicated region fallthrough
CT: control target
= control target key end

     0   :  { %15 = vsyncpa [#allocation3], 0  ;;  %s5819_s0 = inlined_call_operand.vmem [shape: f32[64,2], index: 0, kind: input, shape index: {}]   ;;  %s5820_s1 = inlined_call_operand.vmem [shape: bf16[2,512], index: 1, kind: input, shape index: {}]   ;;  %s5821_s2 = inlined_call_operand.hbm [shape: bf16[128,512], index: 2, kind: input, shape index: {}]   ;;  %s5822_s3 = inlined_call_operand.vmem [shape: f32[1,512], index: 3, kind: input, shape index: {}]   ;;  %s5823_s4 = inlined_call_operand.hbm [shape: bf16[256,512], index: 4, kind: input, shape index: {}]   ;;  %s5824_s5 = inlined_call_operand.vmem [shape: f32[1,512], index: 5, kind: input, shape index: {}]   ;;  %s5825_s6 = inlined_call_operand.vmem [shape: bf16[128,64], index: 6, kind: input, shape index: {}]   ;;  %s5826_s7 = inlined_call_operand.vmem [shape: f32[1,64], index: 7, kind: input, shape index: {}]   ;;  %s5827_s8 = inlined_call_operand.vmem [shape: bf16[64,2], index: 8, kind: input, shape index: {}]   ;;  %s5828_s9 = inlined_call_operand.vmem [shape: f32[1,2], index: 9, kind: input, shape index: {}]   ;;  %s5829_s10 = inlined_call_operand.hbm [shape: f32[2,2], index: 10, kind: output, shape index: {}]  }
   0x1   :  { %16 = vsyncpa [#allocation6], 0 }
   0x2   :  { %17 = vsyncpa [#allocation4], 0  ;;  %s26_s15 = sshll.u32 %s5821_s2, 4  ;;  %s4232_s16 = smov [#allocation2]   ;;  %s27_s15 = int_to_ptr.hbm [resolvable:$true] %s26_s15 }
   0x3   :  { %s28_s17 = sshll.u32 %s4232_s16, 4  ;;  %s41_s20 = sshll.u32 %s5823_s4, 4  ;;  %s29_s17 = int_to_ptr.vmem [resolvable:$true] %s28_s17  ;;  %s42_s20 = int_to_ptr.hbm [resolvable:$true] %s41_s20 }
   0x4   :  { %s4233_s21 = smov 256   ;;  %s4234_s22 = smov 16  }
   0x5   :  { %34 = dma.hbm_to_vmem [thread:$0]  %s27_s15, 4096, %s29_s17, [#allocation3], %s4233_s21, %s4233_s21, %s4234_s22  }
   0x6   :  { %s4235_s23 = smov [#allocation5]  }
   0x7   :  { %s43_s24 = sshll.u32 %s4235_s23, 4  ;;  %s44_s24 = int_to_ptr.vmem [resolvable:$true] %s43_s24 }
   0x8   :  { %49 = dma.hbm_to_vmem [thread:$0]  %s42_s20, 8192, %s44_s24, [#allocation6], %s4233_s21, %s4233_s21, %s4234_s22  }
   0x9   :  { %4226 = dma.done.wait [#allocation3], 4096  }
   0xa   :  { %4227 = vsyncadd [#allocation3], 4294963200 }
   0xb   :  { %4228 = dma.done.wait [#allocation6], 8192  }
   0xc   :  { %4229 = vsyncadd [#allocation6], 4294959104  ;;  %v81_v0 = vld [vmem:[%s5820_s1] sm:$0xf]  ;;  %v70_v2 = vld [vmem:[%s5819_s0 + $0x8] sm:$0xff]  ;;  %vm111_vm0 = vcmask 1040384  }
   0xd   :  { %93 = vst [vmem:[#allocation1] ss:$9 sm:$0xff] %v81_v0  ;;  %v69_v1 = vld [vmem:[%s5819_s0] sm:$0xff]  ;;  %v75_v3 = vld [vmem:[%s5819_s0 + $0x30] sm:$0xff]  ;;  %v76_v4 = vld [vmem:[%s5819_s0 + $0x38] sm:$0xff]  ;;  %vm98_vm1 = vcmask 15360  }
   0xe   :  { %v3808_v5 = vld [vmem:[#allocation2 + $0xe4] sm:$0xf]  ;;  %v3415_v6 = vld [vmem:[#allocation2 + $0xf0] sm:$0xf0]  ;;  %v3421_v7 = vld [vmem:[#allocation2 + $0xe8] sm:$0xf]  ;;  %v4315_v17 = vpack.c.bf16 %v70_v2, %v69_v1  ;;  %v4322_v22 = vpack.c.bf16 %v76_v4, %v75_v3 }
   0xf   :  { %v3811_v8 = vld [vmem:[#allocation2 + $0xf4] sm:$0xf0]  ;;  %v3413_v9 = vld [vmem:[#allocation2 + $0xe0] sm:$0xf]  ;;  %v3810_v10 = vld [vmem:[#allocation2 + $0xec] sm:$0xf0]  ;;  %v4317_v18 = vor.u32 %v3808_v5, %v3415_v6 }
  0x10   :  { %v3804_v11 = vld [vmem:[#allocation2 + $0xc4] sm:$0xf]  ;;  %v3399_v12 = vld [vmem:[#allocation2 + $0xd0] sm:$0xf0]  ;;  %v3809_v13 = vld [vmem:[#allocation2 + $0xec] sm:$0xf]  ;;  %v4325_v26 = vor.u32 %v3811_v8, %v3421_v7  ;;  %v4327_v27 = vor.u32 %v3810_v10, %v3413_v9 }
  0x11   :  { %6022 = vst [vmem:[#allocation11_spill] sm:$0xff] %v4317_v18  ;;  %v3423_v24 = vld [vmem:[#allocation2 + $0xf8] sm:$0xf0]  ;;  %v3397_v28 = vld [vmem:[#allocation2 + $0xc0] sm:$0xf]  ;;  %v4330_v29 = vor.u32 %v3804_v11, %v3399_v12  ;;  %v71_v62 = vld [vmem:[%s5819_s0 + $0x10] sm:$0xff] }
  0x12   :  { %v3806_v30 = vld [vmem:[#allocation2 + $0xcc] sm:$0xf0]  ;;  %v3405_v31 = vld [vmem:[#allocation2 + $0xc8] sm:$0xf]  ;;  %v3807_v32 = vld [vmem:[#allocation2 + $0xd4] sm:$0xf0]  ;;  %v4332_v33 = vor.u32 %v3809_v13, %v3423_v24 }
  0x13   :  { %6023 = vst [vmem:[#allocation12_spill] sm:$0xff] %v4330_v29  ;;  %v3800_v34 = vld [vmem:[#allocation2 + $0xa4] sm:$0xf]  ;;  %v3383_v35 = vld [vmem:[#allocation2 + $0xb0] sm:$0xf0]  ;;  %v4344_v37 = vor.u32 %v3806_v30, %v3397_v28  ;;  %v4346_v38 = vor.u32 %v3807_v32, %v3405_v31  ;;  %s4238_s22 = smov [#allocation7]  }
  0x14   :  { %v94_v14 = vld [vmem:[#allocation1] sm:$0xff]  ;;  %v95_v15 = vld [vmem:[#allocation1 + $0x9] sm:$0xff]  ;;  %v96_v23 = vld [vmem:[#allocation1 + $0x12] sm:$0xff]  ;;  %6024 = vst [vmem:[#allocation13_spill] sm:$0xff] %v4332_v33  ;;  %v4350_v42 = vor.u32 %v3800_v34, %v3383_v35  ;;  %s3270_s23 = sshll.u32 %s4238_s22, 4  ;;  %s3272_s2 = sshll.u32 %s5829_s10, 4  ;;  %s3271_s23 = int_to_ptr.vmem [resolvable:$true] %s3270_s23  ;;  %s3273_s2 = int_to_ptr.hbm [resolvable:$true] %s3272_s2 }
  0x15   :  { %v97_v16 = vld [vmem:[#allocation1 + $0x1b] sm:$0xff]  ;;  %v112_v19 = vsel %vm111_vm0, %v94_v14, 0  ;;  %v114_v20 = vsel %vm111_vm0, %v95_v15, 0  ;;  %v116_v25 = vsel %vm111_vm0, %v96_v23, 0  ;;  %v3805_v36 = vld [vmem:[#allocation2 + $0xcc] sm:$0xf] }
  0x16   :  { %v118_v21 = vsel %vm111_vm0, %v97_v16, 0  ;;  %127 = vmatpush.bf16.msra.mxu0 %v112_v19  ;;  %3888 = vmatpush.bf16.msra.mxu2 %v112_v19  ;;  %v3381_v39 = vld [vmem:[#allocation2 + $0xa0] sm:$0xf]  ;;  %v3407_v40 = vld [vmem:[#allocation2 + $0xd8] sm:$0xf0]  ;;  %6025 = vst [vmem:[#allocation14_spill] sm:$0xff] %v4350_v42 }
  0x17   :  { %156 = vmatpush.bf16.msra.mxu1 %v114_v20  ;;  %214 = vmatpush.bf16.msra.mxu3 %v118_v21  ;;  %v3802_v41 = vld [vmem:[#allocation2 + $0xac] sm:$0xf0]  ;;  %v3389_v43 = vld [vmem:[#allocation2 + $0xa8] sm:$0xf]  ;;  %v3803_v44 = vld [vmem:[#allocation2 + $0xb4] sm:$0xf0]  ;;  %v4352_v45 = vor.u32 %v3805_v36, %v3407_v40 }
  0x18   :  { %v3796_v46 = vld [vmem:[#allocation2 + $0x84] sm:$0xf]  ;;  %v3367_v47 = vld [vmem:[#allocation2 + $0x90] sm:$0xf0]  ;;  %v3801_v48 = vld [vmem:[#allocation2 + $0xac] sm:$0xf]  ;;  %v4356_v50 = vor.u32 %v3802_v41, %v3381_v39  ;;  %v4358_v53 = vor.u32 %v3803_v44, %v3389_v43 }
  0x19   :  { %3283 = vmatmul.msk.bf16.vlgmr.msra.gmra.mxu0 %vm98_vm1, %v4315_v17  ;;  %3286 = vmatmul.msk.bf16.vlgmr.msra.gmra.mxu2 %vm98_vm1, %v4322_v22  ;;  %6026 = vst [vmem:[#allocation15_spill] sm:$0xff] %v4352_v45  ;;  %v3391_v49 = vld [vmem:[#allocation2 + $0xb8] sm:$0xf0]  ;;  %v3365_v51 = vld [vmem:[#allocation2 + $0x80] sm:$0xf]  ;;  %v4362_v54 = vor.u32 %v3796_v46, %v3367_v47  ;;  %v72_v63 = vld [vmem:[%s5819_s0 + $0x18] sm:$0xff] }
  0x1a   :  { %185 = vmatpush.bf16.msrb.mxu2 %v116_v25  ;;  %3287 = vmatmul.msk.bf16.vlgmr.msra.gmra.mxu1 %vm98_vm1, %v4315_v17  ;;  %6027 = vst [vmem:[#allocation16_spill] sm:$0xff] %v4356_v50  ;;  %v3798_v52 = vld [vmem:[#allocation2 + $0x8c] sm:$0xf0]  ;;  %v3373_v55 = vld [vmem:[#allocation2 + $0x88] sm:$0xf]  ;;  %v4364_v57 = vor.u32 %v3801_v48, %v3391_v49  ;;  %v4384_v6 = vpack.c.bf16 %v72_v63, %v71_v62 }
  0x1b   :  { %506 = vmatpush.bf16.msrb.mxu1 %v4317_v18  ;;  %3295 = vmatmul.msk.bf16.vlgmr.msra.gmra.mxu3 %vm98_vm1, %v4315_v17  ;;  %6028 = vst [vmem:[#allocation17_spill] sm:$0xff] %v4358_v53  ;;  %v3799_v56 = vld [vmem:[#allocation2 + $0x94] sm:$0xf0]  ;;  %v3792_v58 = vld [vmem:[#allocation2 + $0x64] sm:$0xf]  ;;  %v4373_v0 = vor.u32 %v3798_v52, %v3365_v51 }
  0x1c   :  { %493 = vmatpush.bf16.msrb.mxu0 %v4327_v27  ;;  %532 = vmatpush.bf16.msrb.mxu3 %v4332_v33  ;;  %6029 = vst [vmem:[#allocation18_spill] sm:$0xff] %v4362_v54  ;;  %v3351_v59 = vld [vmem:[#allocation2 + $0x70] sm:$0xf0]  ;;  %v3797_v60 = vld [vmem:[#allocation2 + $0x8c] sm:$0xf]  ;;  %v4376_v1 = vor.u32 %v3799_v56, %v3373_v55  ;;  %v73_v52 = vld [vmem:[%s5819_s0 + $0x20] sm:$0xff] }
  0x1d   :  { %6030 = vst [vmem:[#allocation19_spill] sm:$0xff] %v4364_v57  ;;  %v3375_v61 = vld [vmem:[#allocation2 + $0x98] sm:$0xf0]  ;;  %v3349_v2 = vld [vmem:[#allocation2 + $0x60] sm:$0xf]  ;;  %v4380_v4 = vor.u32 %v3792_v58, %v3351_v59 }
  0x1e   :  { %519 = vmatpush.bf16.msra.mxu2 %v4325_v26  ;;  %6031 = vst [vmem:[#allocation20_spill] sm:$0xff] %v4373_v0  ;;  %v3794_v3 = vld [vmem:[#allocation2 + $0x6c] sm:$0xf0]  ;;  %v4382_v5 = vor.u32 %v3797_v60, %v3375_v61  ;;  %v3333_v8 = vld [vmem:[#allocation2 + $0x40] sm:$0xf] }
  0x1f   :  { %507 = vmatpush.bf16.msrb.mxu1 %v4330_v29  ;;  %6032 = vst [vmem:[#allocation21_spill] sm:$0xff] %v4376_v1  ;;  %v4387_v7 = vor.u32 %v3794_v3, %v3349_v2  ;;  %v3790_v9 = vld [vmem:[#allocation2 + $0x4c] sm:$0xf0]  ;;  %v3793_v10 = vld [vmem:[#allocation2 + $0x6c] sm:$0xf]  ;;  %v74_v55 = vld [vmem:[%s5819_s0 + $0x28] sm:$0xff] }
  0x20   :  { %494 = vmatpush.bf16.msrb.mxu0 %v4344_v37  ;;  %533 = vmatpush.bf16.msrb.mxu3 %v4352_v45  ;;  %6033 = vst [vmem:[#allocation22_spill] sm:$0xff] %v4382_v5  ;;  %v3359_v11 = vld [vmem:[#allocation2 + $0x78] sm:$0xf0]  ;;  %v3317_v13 = vld [vmem:[#allocation2 + $0x20] sm:$0xf]  ;;  %v4403_v20 = vor.u32 %v3790_v9, %v3333_v8  ;;  %v79_v60 = vpack.c.bf16 %v74_v55, %v73_v52  ;;  %v4236_v9 = vmov 0  }
  0x21   :  { %6034 = vst [vmem:[#allocation23_spill] sm:$0xff] %v4387_v7  ;;  %v4396_v12 = vor.u32 %v3793_v10, %v3359_v11  ;;  %v3786_v14 = vld [vmem:[#allocation2 + $0x2c] sm:$0xf0]  ;;  %v3357_v15 = vld [vmem:[#allocation2 + $0x68] sm:$0xf] }
  0x22   :  { %520 = vmatpush.bf16.msra.mxu2 %v4346_v38  ;;  %v3795_v16 = vld [vmem:[#allocation2 + $0x74] sm:$0xf0]  ;;  %v3788_v19 = vld [vmem:[#allocation2 + $0x44] sm:$0xf]  ;;  %6036 = vst [vmem:[#allocation25_spill] sm:$0xff] %v4403_v20  ;;  %v4419_v41 = vor.u32 %v3786_v14, %v3317_v13 }
  0x23   :  { %508 = vmatpush.bf16.msrb.mxu1 %v4350_v42  ;;  %6035 = vst [vmem:[#allocation24_spill] sm:$0xff] %v4396_v12  ;;  %v4405_v21 = vor.u32 %v3795_v16, %v3357_v15  ;;  %v3789_v23 = vld [vmem:[#allocation2 + $0x4c] sm:$0xf]  ;;  %v3343_v24 = vld [vmem:[#allocation2 + $0x58] sm:$0xf0] }
  0x24   :  { %495 = vmatpush.bf16.msrb.mxu0 %v4356_v50  ;;  %534 = vmatpush.bf16.msrb.mxu3 %v4364_v57  ;;  %v4410_v28 = vor.u32 %v3789_v23, %v3343_v24  ;;  %v3341_v30 = vld [vmem:[#allocation2 + $0x48] sm:$0xf]  ;;  %v3791_v31 = vld [vmem:[#allocation2 + $0x54] sm:$0xf0]  ;;  %v3784_v32 = vld [vmem:[#allocation2 + $0x24] sm:$0xf] }
  0x25   :  { %6037 = vst [vmem:[#allocation26_spill] sm:$0xff] %v4405_v21  ;;  %v4413_v34 = vor.u32 %v3791_v31, %v3341_v30  ;;  %v3319_v35 = vld [vmem:[#allocation2 + $0x30] sm:$0xf0]  ;;  %v3785_v36 = vld [vmem:[#allocation2 + $0x2c] sm:$0xf] }
  0x26   :  { %521 = vmatpush.bf16.msra.mxu2 %v4358_v53  ;;  %6039 = vst [vmem:[#allocation28_spill] sm:$0xff] %v4410_v28  ;;  %v3327_v39 = vld [vmem:[#allocation2 + $0x38] sm:$0xf0]  ;;  %v4416_v40 = vor.u32 %v3784_v32, %v3319_v35  ;;  %v3780_v43 = vld [vmem:[#allocation2 + $0x4] sm:$0xf] }
  0x27   :  { %509 = vmatpush.bf16.msrb.mxu1 %v4362_v54  ;;  %6040 = vst [vmem:[#allocation29_spill] sm:$0xff] %v4413_v34  ;;  %v3303_v44 = vld [vmem:[#allocation2 + $0x10] sm:$0xf0]  ;;  %v3301_v46 = vld [vmem:[#allocation2] sm:$0xf]  ;;  %v4422_v48 = vor.u32 %v3785_v36, %v3327_v39 }
  0x28   :  { %496 = vmatpush.bf16.msrb.mxu0 %v4373_v0  ;;  %535 = vmatpush.bf16.msrb.mxu3 %v4382_v5  ;;  %6041 = vst [vmem:[#allocation30_spill] sm:$0xff] %v4416_v40  ;;  %v3782_v47 = vld [vmem:[#allocation2 + $0xc] sm:$0xf0]  ;;  %v3781_v49 = vld [vmem:[#allocation2 + $0xc] sm:$0xf]  ;;  %v4432_v56 = vor.u32 %v3780_v43, %v3303_v44 }
  0x29   :  { %3284 = vmatmul.msk.bf16.gmra.mxu0 %vm98_vm1, %v4384_v6  ;;  %3291 = vmatmul.msk.bf16.vlgmr.msrb.gmra.mxu2 %vm98_vm1, %v4315_v17  ;;  %v3335_v17 = vld [vmem:[#allocation2 + $0x50] sm:$0xf0]  ;;  %6042 = vst [vmem:[#allocation31_spill] sm:$0xff] %v4419_v41  ;;  %v3311_v51 = vld [vmem:[#allocation2 + $0x18] sm:$0xf0]  ;;  %v4435_v58 = vor.u32 %v3782_v47, %v3301_v46 }
  0x2a   :  { %522 = vmatpush.bf16.msra.mxu2 %v4376_v1  ;;  %3288 = vmatmul.msk.bf16.gmra.mxu1 %vm98_vm1, %v4384_v6  ;;  %v4408_v25 = vor.u32 %v3788_v19, %v3335_v17  ;;  %6043 = vst [vmem:[#allocation32_spill] sm:$0xff] %v4422_v48  ;;  %v4438_v59 = vor.u32 %v3781_v49, %v3311_v51  ;;  %v3325_v61 = vld [vmem:[#allocation2 + $0x28] sm:$0xf]  ;;  %v3787_v62 = vld [vmem:[#allocation2 + $0x34] sm:$0xf0] }
  0x2b   :  { %510 = vmatpush.bf16.msrb.mxu1 %v4380_v4  ;;  %3296 = vmatmul.msk.bf16.gmra.mxu3 %vm98_vm1, %v4384_v6  ;;  %6044 = vst [vmem:[#allocation33_spill] sm:$0xff] %v4435_v58  ;;  %v3309_v63 = vld [vmem:[#allocation2 + $0x8] sm:$0xf]  ;;  %v4448_v2 = vor.u32 %v3787_v62, %v3325_v61  ;;  %v3783_v3 = vld [vmem:[#allocation2 + $0x14] sm:$0xf0] }
  0x2c   :  { %497 = vmatpush.bf16.msrb.mxu0 %v4387_v7  ;;  %536 = vmatpush.bf16.msrb.mxu3 %v4396_v12  ;;  %6038 = vst [vmem:[#allocation27_spill] sm:$0xff] %v4408_v25  ;;  %v4451_v8 = vor.u32 %v3783_v3, %v3309_v63  ;;  %v3874_v10 = vld [vmem:[#allocation5 + $0x1ec] sm:$0xf0]  ;;  %v3872_v11 = vld [vmem:[#allocation5 + $0x1e4] sm:$0xf] }
  0x2d   :  { %6045 = vst [vmem:[#allocation34_spill] sm:$0xff] %v4448_v2  ;;  %v3674_v14 = vld [vmem:[#allocation5 + $0x1f0] sm:$0xf0]  ;;  %v4466_v15 = vld [vmem:[%s5822_s3] sm:$0xf] }
  0x2e   :  { %523 = vmatpush.bf16.msra.mxu2 %v4405_v21  ;;  %6046 = vst [vmem:[#allocation35_spill] sm:$0xff] %v4451_v8  ;;  %v4470_v19 = vor.u32 %v3872_v11, %v3674_v14  ;;  %v3870_v23 = vld [vmem:[#allocation5 + $0x1cc] sm:$0xf0]  ;;  %v3868_v24 = vld [vmem:[#allocation5 + $0x1c4] sm:$0xf]  ;;  %v4477_v30 = vperm.slane %v4466_v15, 0 }
  0x2f   :  { %511 = vmatpush.bf16.msrb.mxu1 %v4408_v25  ;;  %v3658_v32 = vld [vmem:[#allocation5 + $0x1d0] sm:$0xf0]  ;;  %v3640_v39 = vld [vmem:[#allocation5 + $0x1a0] sm:$0xf]  ;;  %v3866_v43 = vld [vmem:[#allocation5 + $0x1ac] sm:$0xf0] }
  0x30   :  { %498 = vmatpush.bf16.msrb.mxu0 %v4403_v20  ;;  %537 = vmatpush.bf16.msrb.mxu3 %v4410_v28  ;;  %6047 = vst [vmem:[#allocation36_spill] sm:$0xff] %v4477_v30  ;;  %v4481_v35 = vor.u32 %v3868_v24, %v3658_v32  ;;  %v3864_v44 = vld [vmem:[#allocation5 + $0x1a4] sm:$0xf]  ;;  %v4490_v49 = vor.u32 %v3866_v43, %v3640_v39  ;;  %v3642_v51 = vld [vmem:[#allocation5 + $0x1b0] sm:$0xf0] }
  0x31   :  { %v4494_v55 = vor.u32 %v3864_v44, %v3642_v51  ;;  %v3624_v61 = vld [vmem:[#allocation5 + $0x180] sm:$0xf]  ;;  %v3862_v62 = vld [vmem:[#allocation5 + $0x18c] sm:$0xf0]  ;;  %v3860_v63 = vld [vmem:[#allocation5 + $0x184] sm:$0xf] }
  0x32   :  { %524 = vmatpush.bf16.msra.mxu2 %v4413_v34  ;;  %v4500_v3 = vor.u32 %v3862_v62, %v3624_v61  ;;  %v3608_v11 = vld [vmem:[#allocation5 + $0x160] sm:$0xf]  ;;  %v3858_v14 = vld [vmem:[#allocation5 + $0x16c] sm:$0xf0]  ;;  %v3610_v32 = vld [vmem:[#allocation5 + $0x170] sm:$0xf0] }
  0x33   :  { %512 = vmatpush.bf16.msrb.mxu1 %v4416_v40  ;;  %v4510_v24 = vor.u32 %v3858_v14, %v3608_v11  ;;  %v3592_v62 = vld [vmem:[#allocation5 + $0x140] sm:$0xf]  ;;  %v3594_v14 = vld [vmem:[#allocation5 + $0x150] sm:$0xf0]  ;;  %v3869_v20 = vld [vmem:[#allocation5 + $0x1cc] sm:$0xf] }
  0x34   :  { %499 = vmatpush.bf16.msrb.mxu0 %v4419_v41  ;;  %538 = vmatpush.bf16.msrb.mxu3 %v4422_v48  ;;  %v3840_v41 = vld [vmem:[#allocation5 + $0xe4] sm:$0xf]  ;;  %v3666_v21 = vld [vmem:[#allocation5 + $0x1d8] sm:$0xf0]  ;;  %v3861_v50 = vld [vmem:[#allocation5 + $0x18c] sm:$0xf] }
  0x35   :  { %6054 = vst [vmem:[#allocation43_spill] sm:$0xff] %v4510_v24 }
  0x36   :  { %525 = vmatpush.bf16.msra.mxu2 %v4448_v2  ;;  %v3875_v2 = vld [vmem:[#allocation5 + $0x1f4] sm:$0xf0] }
  0x37   :  { %513 = vmatpush.bf16.msrb.mxu1 %v4432_v56 }
  0x38   :  { %500 = vmatpush.bf16.msrb.mxu0 %v4435_v58  ;;  %539 = vmatpush.bf16.msrb.mxu3 %v4438_v59 }
  0x39   :  { %3285 = vmatmul.msk.bf16.gmra.mxu0 %vm98_vm1, %v79_v60  ;;  %3292 = vmatmul.msk.bf16.gmra.mxu2 %vm98_vm1, %v4384_v6  ;;  %v3672_v6 = vld [vmem:[#allocation5 + $0x1e0] sm:$0xf] }
  0x3a   :  { %3289 = vmatmul.msk.bf16.gmra.mxu1 %vm98_vm1, %v79_v60  ;;  %526 = vmatpush.bf16.msra.mxu2 %v4451_v8  ;;  %v4461_v13 = vor.u32 %v3874_v10, %v3672_v6  ;;  %v3844_v8 = vld [vmem:[#allocation5 + $0x104] sm:$0xf] }
  0x3b   :  { %3297 = vmatmul.msk.bf16.gmra.mxu3 %vm98_vm1, %v79_v60 }
  0x3c   :  { %956 = vmatpush.bf16.msra.mxu1 %v4461_v13  ;;  %982 = vmatpush.bf16.msra.mxu3 %v4470_v19 }
  0x40   :  { %983 = vmatpush.bf16.msra.mxu3 %v4481_v35 }
  0x44   :  { %984 = vmatpush.bf16.msra.mxu3 %v4494_v55 }
  0x49   :  { %3293 = vmatmul.msk.bf16.gmra.mxu2 %vm98_vm1, %v79_v60  ;;  %501 = vmatmul.bf16.vlgmr.msrb.gmra.mxu0 %v4236_v9 }
  0x4a   :  { %3290 = vmatmul.msk.bf16.gmra.mxu1 %vm98_vm1, %v4322_v22 }
  0x4b   :  { %3298 = vmatmul.msk.bf16.gmra.mxu3 %vm98_vm1, %v4322_v22 }
  0x59   :  { %3294 = vmatmul.msk.bf16.gmra.mxu2 %vm98_vm1, %v4322_v22  ;;  %v3656_v22 = vld [vmem:[#allocation5 + $0x1c0] sm:$0xf] }
  0x5a   :  { %514 = vmatmul.bf16.vlgmr.msrb.gmra.mxu1 %v4236_v9  ;;  %v4479_v31 = vor.u32 %v3870_v23, %v3656_v22  ;;  %v3856_v22 = vld [vmem:[#allocation5 + $0x164] sm:$0xf] }
  0x5b   :  { %540 = vmatmul.bf16.vlgmr.msrb.gmra.mxu3 %v4236_v9  ;;  %v4515_v43 = vor.u32 %v3856_v22, %v3610_v32  ;;  %v4530_v22 = vperm.slane %v4466_v15, 3 }
  0x5c   :  { %957 = vmatpush.bf16.msra.mxu1 %v4479_v31 }
  0x5d   :  { %6056 = vst [vmem:[#allocation45_spill] sm:$0xff] %v4515_v43 }
  0x5e   :  { %6061 = vst [vmem:[#allocation50_spill] sm:$0xff] %v4530_v22 }
  0x60   :  { %958 = vmatpush.bf16.msra.mxu1 %v4490_v49 }
  0x64   :  { %959 = vmatpush.bf16.msra.mxu1 %v4500_v3 }
  0x68   :  { %960 = vmatpush.bf16.msra.mxu1 %v4510_v24 }
  0x69   :  { %527 = vmatmul.bf16.vlgmr.msra.gmra.mxu2 %v4236_v9  ;;  %v3626_v9 = vld [vmem:[#allocation5 + $0x190] sm:$0xf0] }
  0x6a   :  { %v4502_v6 = vor.u32 %v3860_v63, %v3626_v9  ;;  %v3854_v63 = vld [vmem:[#allocation5 + $0x14c] sm:$0xf0]  ;;  %v3852_v9 = vld [vmem:[#allocation5 + $0x144] sm:$0xf] }
  0x6b   :  { %v4525_v11 = vor.u32 %v3854_v63, %v3592_v62  ;;  %v3578_v62 = vld [vmem:[#allocation5 + $0x130] sm:$0xf0] }
  0x6c   :  { %6051 = vst [vmem:[#allocation40_spill] sm:$0xff] %v4502_v6  ;;  %985 = vmatpush.bf16.msra.mxu3 %v4502_v6 }
  0x6d   :  { %6059 = vst [vmem:[#allocation48_spill] sm:$0xff] %v4525_v11  ;;  %961 = vmatpush.bf16.msra.mxu1 %v4525_v11 }
  0x70   :  { %986 = vmatpush.bf16.msra.mxu3 %v4515_v43 }
  0x96   :  { %v4468_v16 = vpop.f32.mrf.mxu0 }
  0x97   :  { %v4472_v17 = vpop.f32.mrf.mxu1 }
  0x9c   :  { %v144_v36 = vpop.f32.mrf.mxu2 }
  0x9d   :  { %v4486_v46 = vadd.f32 %v144_v36, %v4477_v30  ;;  %v4513_v36 = vperm.slane %v4466_v15, 1 }
  0x9e   :  { %v4488_v47 = vpop.f32.mrf.mxu3  ;;  %v4492_v52 = vpop.f32.mrf.mxu0 }
  0x9f   :  { %6048 = vst [vmem:[#allocation37_spill] sm:$0xff] %v4486_v46  ;;  %v4496_v60 = vpop.f32.mrf.mxu1  ;;  %v3848_v46 = vld [vmem:[#allocation5 + $0x124] sm:$0xf] }
  0xa0   :  { %6049 = vst [vmem:[#allocation38_spill] sm:$0xff] %v4492_v52  ;;  %v3560_v52 = vld [vmem:[#allocation5 + $0x100] sm:$0xf] }
  0xa1   :  { %6050 = vst [vmem:[#allocation39_spill] sm:$0xff] %v4496_v60  ;;  %v3846_v60 = vld [vmem:[#allocation5 + $0x10c] sm:$0xf0] }
  0xa2   :  { %6055 = vst [vmem:[#allocation44_spill] sm:$0xff] %v4513_v36  ;;  %v4549_v58 = vor.u32 %v3846_v60, %v3560_v52  ;;  %v3544_v52 = vld [vmem:[#allocation5 + $0xe0] sm:$0xf]  ;;  %v3842_v60 = vld [vmem:[#allocation5 + $0xec] sm:$0xf0] }
  0xa4   :  { %v4505_v10 = vpop.f32.mrf.mxu2  ;;  %6067 = vst [vmem:[#allocation56_spill] sm:$0xff] %v4549_v58 }
  0xa5   :  { %6052 = vst [vmem:[#allocation41_spill] sm:$0xff] %v4505_v10  ;;  %v4527_v10 = vor.u32 %v3852_v9, %v3594_v14  ;;  %v4543_v14 = vor.u32 %v3848_v46, %v3578_v62  ;;  %v3873_v46 = vld [vmem:[#allocation5 + $0x1ec] sm:$0xf]  ;;  %v3682_v62 = vld [vmem:[#allocation5 + $0x1f8] sm:$0xf0] }
  0xa6   :  { %v4508_v23 = vpop.f32.mrf.mxu3  ;;  %v134_v39 = vpop.f32.mrf.mxu0 }
  0xa7   :  { %6053 = vst [vmem:[#allocation42_spill] sm:$0xff] %v4508_v23  ;;  %v4518_v44 = vadd.f32 %v134_v39, %v4477_v30  ;;  %v163_v51 = vpop.f32.mrf.mxu1  ;;  %987 = vmatpush.bf16.msra.mxu3 %v4527_v10  ;;  %v3576_v39 = vld [vmem:[#allocation5 + $0x120] sm:$0xf] }
  0xa8   :  { %v4522_v61 = vadd.f32 %v163_v51, %v4513_v36  ;;  %6060 = vst [vmem:[#allocation49_spill] sm:$0xff] %v4527_v10  ;;  %v3850_v51 = vld [vmem:[#allocation5 + $0x12c] sm:$0xf0] }
  0xa9   :  { %6057 = vst [vmem:[#allocation46_spill] sm:$0xff] %v4518_v44 }
  0xaa   :  { %6058 = vst [vmem:[#allocation47_spill] sm:$0xff] %v4522_v61  ;;  %v4536_v61 = vor.u32 %v3850_v51, %v3576_v39  ;;  %v3562_v39 = vld [vmem:[#allocation5 + $0x110] sm:$0xf0]  ;;  %v3680_v51 = vld [vmem:[#allocation5 + $0x1e8] sm:$0xf] }
  0xab   :  { %6065 = vst [vmem:[#allocation54_spill] sm:$0xff] %v4543_v14  ;;  %988 = vmatpush.bf16.msra.mxu3 %v4543_v14 }
  0xac   :  { %v4533_v32 = vpop.f32.mrf.mxu2  ;;  %6062 = vst [vmem:[#allocation51_spill] sm:$0xff] %v4536_v61  ;;  %962 = vmatpush.bf16.msra.mxu1 %v4536_v61 }
  0xae   :  { %v221_v44 = vpop.f32.mrf.mxu3  ;;  %v4541_v9 = vpop.f32.mrf.mxu0 }
  0xaf   :  { %v4539_v63 = vadd.f32 %v221_v44, %v4530_v22  ;;  %6064 = vst [vmem:[#allocation53_spill] sm:$0xff] %v4541_v9  ;;  %v4545_v23 = vpop.f32.mrf.mxu1  ;;  %v4551_v44 = vor.u32 %v3844_v8, %v3562_v39  ;;  %v4556_v9 = vor.u32 %v3873_v46, %v3682_v62  ;;  %v3546_v8 = vld [vmem:[#allocation5 + $0xf0] sm:$0xf0]  ;;  %v3664_v39 = vld [vmem:[#allocation5 + $0x1c8] sm:$0xf] }
  0xb0   :  { %6066 = vst [vmem:[#allocation55_spill] sm:$0xff] %v4545_v23  ;;  %963 = vmatpush.bf16.msra.mxu1 %v4549_v58  ;;  %v4567_v62 = vor.u32 %v3840_v41, %v3546_v8  ;;  %v3528_v41 = vld [vmem:[#allocation5 + $0xc0] sm:$0xf]  ;;  %v3836_v8 = vld [vmem:[#allocation5 + $0xc4] sm:$0xf] }
  0xb1   :  { %6063 = vst [vmem:[#allocation52_spill] sm:$0xff] %v4539_v63  ;;  %v4553_v63 = vor.u32 %v3875_v2, %v3680_v51  ;;  %989 = vmatpush.bf16.msra.mxu3 %v4551_v44  ;;  %v4565_v2 = vor.u32 %v3842_v60, %v3544_v52  ;;  %v3871_v51 = vld [vmem:[#allocation5 + $0x1d4] sm:$0xf0]  ;;  %v3838_v60 = vld [vmem:[#allocation5 + $0xcc] sm:$0xf0] }
  0xb2   :  { %6068 = vst [vmem:[#allocation57_spill] sm:$0xff] %v4551_v44  ;;  %969 = vmatpush.bf16.msrb.mxu2 %v4567_v62 }
  0xb3   :  { %6069 = vst [vmem:[#allocation58_spill] sm:$0xff] %v4553_v63  ;;  %943 = vmatpush.bf16.msra.mxu0 %v4565_v2 }
  0xb4   :  { %6070 = vst [vmem:[#allocation59_spill] sm:$0xff] %v4556_v9  ;;  %v4558_v23 = vpop.f32.mrf.mxu2  ;;  %1008 = vmatpush.bf16.msrb.mxu1 %v4553_v63 }
  0xb5   :  { %6071 = vst [vmem:[#allocation60_spill] sm:$0xff] %v4558_v23  ;;  %1034 = vmatpush.bf16.msrb.mxu3 %v4556_v9  ;;  %v4569_v23 = vor.u32 %v3871_v51, %v3664_v39  ;;  %v4583_v39 = vor.u32 %v3838_v60, %v3528_v41  ;;  %v3530_v51 = vld [vmem:[#allocation5 + $0xd0] sm:$0xf0]  ;;  %v3512_v41 = vld [vmem:[#allocation5 + $0xa0] sm:$0xf] }
  0xb6   :  { %v4562_v34 = vpop.f32.mrf.mxu3  ;;  %6073 = vst [vmem:[#allocation62_spill] sm:$0xff] %v4565_v2  ;;  %v139_v46 = vpop.f32.mrf.mxu0  ;;  %v4585_v2 = vor.u32 %v3836_v8, %v3530_v51  ;;  %v3834_v60 = vld [vmem:[#allocation5 + $0xac] sm:$0xf0]  ;;  %v3832_v8 = vld [vmem:[#allocation5 + $0xa4] sm:$0xf] }
  0xb7   :  { %6072 = vst [vmem:[#allocation61_spill] sm:$0xff] %v4562_v34  ;;  %v4572_v7 = vadd.f32 %v139_v46, %v4477_v30  ;;  %v168_v1 = vpop.f32.mrf.mxu1  ;;  %v4575_v34 = vor.u32 %v3869_v20, %v3666_v21  ;;  %v3648_v46 = vld [vmem:[#allocation5 + $0x1a8] sm:$0xf]  ;;  %v3650_v21 = vld [vmem:[#allocation5 + $0x1b8] sm:$0xf0]  ;;  %944 = vmatpush.bf16.msra.mxu0 %v4583_v39 }
  0xb8   :  { %6074 = vst [vmem:[#allocation63_spill] sm:$0xff] %v4567_v62  ;;  %v4578_v52 = vadd.f32 %v168_v1, %v4513_v36  ;;  %1009 = vmatpush.bf16.msrb.mxu1 %v4569_v23  ;;  %v3865_v1 = vld [vmem:[#allocation5 + $0x1ac] sm:$0xf]  ;;  %970 = vmatpush.bf16.msrb.mxu2 %v4585_v2 }
  0xb9   :  { %6075 = vst [vmem:[#allocation64_spill] sm:$0xff] %v4569_v23  ;;  %1035 = vmatpush.bf16.msrb.mxu3 %v4575_v34  ;;  %v4593_v62 = vor.u32 %v3865_v1, %v3650_v21  ;;  %v3863_v1 = vld [vmem:[#allocation5 + $0x194] sm:$0xf0] }
  0xba   :  { %6076 = vst [vmem:[#allocation65_spill] sm:$0xff] %v4572_v7  ;;  %v3867_v7 = vld [vmem:[#allocation5 + $0x1b4] sm:$0xf0] }
  0xbb   :  { %6077 = vst [vmem:[#allocation66_spill] sm:$0xff] %v4575_v34  ;;  %v4587_v20 = vor.u32 %v3867_v7, %v3648_v46  ;;  %v3514_v46 = vld [vmem:[#allocation5 + $0xb0] sm:$0xf0] }
  0xbc   :  { %6078 = vst [vmem:[#allocation67_spill] sm:$0xff] %v4578_v52  ;;  %v4590_v52 = vperm.slane %v4466_v15, 2  ;;  %v192_v0 = vpop.f32.mrf.mxu2  ;;  %v4601_v15 = vor.u32 %v3834_v60, %v3512_v41  ;;  %v3496_v60 = vld [vmem:[#allocation5 + $0x80] sm:$0xf] }
  0xbd   :  { %6079 = vst [vmem:[#allocation68_spill] sm:$0xff] %v4583_v39  ;;  %1010 = vmatpush.bf16.msrb.mxu1 %v4587_v20  ;;  %1036 = vmatpush.bf16.msrb.mxu3 %v4593_v62  ;;  %v3632_v39 = vld [vmem:[#allocation5 + $0x188] sm:$0xf] }
  0xbe   :  { %6080 = vst [vmem:[#allocation69_spill] sm:$0xff] %v4585_v2  ;;  %v4598_v7 = vadd.f32 %v192_v0, %v4590_v52  ;;  %v226_v51 = vpop.f32.mrf.mxu3  ;;  %v4606_v2 = vpop.f32.mrf.mxu0  ;;  %v4610_v53 = vor.u32 %v3863_v1, %v3632_v39  ;;  %v3634_v0 = vld [vmem:[#allocation5 + $0x198] sm:$0xf0]  ;;  %945 = vmatpush.bf16.msra.mxu0 %v4601_v15  ;;  %v3498_v39 = vld [vmem:[#allocation5 + $0x90] sm:$0xf0] }
  0xbf   :  { %6081 = vst [vmem:[#allocation70_spill] sm:$0xff] %v4587_v20  ;;  %v4604_v21 = vadd.f32 %v226_v51, %v4530_v22  ;;  %v4608_v20 = vor.u32 %v3832_v8, %v3514_v46  ;;  %v4615_v41 = vor.u32 %v3861_v50, %v3634_v0  ;;  %v3830_v51 = vld [vmem:[#allocation5 + $0x8c] sm:$0xf0]  ;;  %v3616_v46 = vld [vmem:[#allocation5 + $0x168] sm:$0xf] }
  0xc0   :  { %6082 = vst [vmem:[#allocation71_spill] sm:$0xff] %v4590_v52  ;;  %v4620_v8 = vor.u32 %v3830_v51, %v3496_v60  ;;  %v3859_v1 = vld [vmem:[#allocation5 + $0x174] sm:$0xf0]  ;;  %v3857_v50 = vld [vmem:[#allocation5 + $0x16c] sm:$0xf] }
  0xc1   :  { %6083 = vst [vmem:[#allocation72_spill] sm:$0xff] %v4593_v62  ;;  %971 = vmatpush.bf16.msrb.mxu2 %v4608_v20  ;;  %1011 = vmatpush.bf16.msrb.mxu1 %v4610_v53  ;;  %v3618_v0 = vld [vmem:[#allocation5 + $0x178] sm:$0xf0]  ;;  %v3480_v60 = vld [vmem:[#allocation5 + $0x60] sm:$0xf] }
  0xc2   :  { %6084 = vst [vmem:[#allocation73_spill] sm:$0xff] %v4598_v7  ;;  %v4612_v7 = vpop.f32.mrf.mxu1  ;;  %1037 = vmatpush.bf16.msrb.mxu3 %v4615_v41  ;;  %946 = vmatpush.bf16.msra.mxu0 %v4620_v8  ;;  %v3826_v51 = vld [vmem:[#allocation5 + $0x6c] sm:$0xf0] }
  0xc3   :  { %6085 = vst [vmem:[#allocation74_spill] sm:$0xff] %v4601_v15 }
  0xc4   :  { %6086 = vst [vmem:[#allocation75_spill] sm:$0xff] %v4604_v21  ;;  %v3828_v21 = vld [vmem:[#allocation5 + $0x84] sm:$0xf]  ;;  %v4629_v15 = vpop.f32.mrf.mxu2 }
  0xc5   :  { %6087 = vst [vmem:[#allocation76_spill] sm:$0xff] %v4606_v2  ;;  %v4622_v2 = vor.u32 %v3828_v21, %v3498_v39  ;;  %v130_v21 = vadd.f32 %v4468_v16, %v4477_v30 }
  0xc6   :  { %6088 = vst [vmem:[#allocation77_spill] sm:$0xff] %v4608_v20  ;;  %v4627_v20 = vor.u32 %v3857_v50, %v3618_v0  ;;  %v4635_v39 = vpop.f32.mrf.mxu3  ;;  %v3600_v50 = vld [vmem:[#allocation5 + $0x148] sm:$0xf]  ;;  %v3855_v0 = vld [vmem:[#allocation5 + $0x154] sm:$0xf0] }
  0xc7   :  { %6089 = vst [vmem:[#allocation78_spill] sm:$0xff] %v4610_v53  ;;  %972 = vmatpush.bf16.msrb.mxu2 %v4622_v2  ;;  %v3602_v53 = vld [vmem:[#allocation5 + $0x158] sm:$0xf0] }
  0xc8   :  { %6090 = vst [vmem:[#allocation79_spill] sm:$0xff] %v4612_v7  ;;  %v4624_v7 = vor.u32 %v3859_v1, %v3616_v46  ;;  %1038 = vmatpush.bf16.msrb.mxu3 %v4627_v20  ;;  %v4638_v46 = vor.u32 %v3826_v51, %v3480_v60  ;;  %v3482_v1 = vld [vmem:[#allocation5 + $0x70] sm:$0xf0]  ;;  %v3464_v60 = vld [vmem:[#allocation5 + $0x40] sm:$0xf] }
  0xc9   :  { %6091 = vst [vmem:[#allocation80_spill] sm:$0xff] %v4615_v41  ;;  %v3824_v41 = vld [vmem:[#allocation5 + $0x64] sm:$0xf] }
  0xca   :  { %6092 = vst [vmem:[#allocation81_spill] sm:$0xff] %v4620_v8  ;;  %1012 = vmatpush.bf16.msrb.mxu1 %v4624_v7  ;;  %v4640_v8 = vor.u32 %v3824_v41, %v3482_v1  ;;  %v173_v62 = vpop.f32.mrf.mxu1  ;;  %947 = vmatpush.bf16.msra.mxu0 %v4638_v46  ;;  %v3822_v41 = vld [vmem:[#allocation5 + $0x4c] sm:$0xf0]  ;;  %v3820_v51 = vld [vmem:[#allocation5 + $0x44] sm:$0xf] }
  0xcb   :  { %6093 = vst [vmem:[#allocation82_spill] sm:$0xff] %v4622_v2  ;;  %v4642_v2 = vor.u32 %v3855_v0, %v3600_v50  ;;  %v4653_v50 = vor.u32 %v3822_v41, %v3464_v60  ;;  %v3818_v60 = vld [vmem:[#allocation5 + $0x2c] sm:$0xf0]  ;;  %v3816_v41 = vld [vmem:[#allocation5 + $0x24] sm:$0xf] }
  0xcc   :  { %6094 = vst [vmem:[#allocation83_spill] sm:$0xff] %v4624_v7  ;;  %v3853_v7 = vld [vmem:[#allocation5 + $0x14c] sm:$0xf]  ;;  %973 = vmatpush.bf16.msrb.mxu2 %v4640_v8 }
  0xcd   :  { %6095 = vst [vmem:[#allocation84_spill] sm:$0xff] %v4627_v20  ;;  %v4645_v16 = vor.u32 %v3853_v7, %v3602_v53  ;;  %v3851_v53 = vld [vmem:[#allocation5 + $0x134] sm:$0xf0]  ;;  %v3849_v7 = vld [vmem:[#allocation5 + $0x12c] sm:$0xf] }
  0xce   :  { %6096 = vst [vmem:[#allocation85_spill] sm:$0xff] %v4629_v15  ;;  %v502_v15 = vpop.f32.mrf.mxu0  ;;  %1013 = vmatpush.bf16.msrb.mxu1 %v4642_v2  ;;  %948 = vmatpush.bf16.msra.mxu0 %v4653_v50 }
  0xcf   :  { %6097 = vst [vmem:[#allocation86_spill] sm:$0xff] %v4635_v39  ;;  %v545_v34 = vadd.f32 %v502_v15, %v130_v21  ;;  %v4648_v39 = vadd.f32 %v173_v62, %v4513_v36  ;;  %1039 = vmatpush.bf16.msrb.mxu3 %v4645_v16  ;;  %v3466_v15 = vld [vmem:[#allocation5 + $0x50] sm:$0xf0]  ;;  %v3584_v21 = vld [vmem:[#allocation5 + $0x128] sm:$0xf] }
  0xd0   :  { %6098 = vst [vmem:[#allocation87_spill] sm:$0xff] %v4638_v46  ;;  %v4655_v0 = vor.u32 %v3820_v51, %v3466_v15  ;;  %v3586_v62 = vld [vmem:[#allocation5 + $0x138] sm:$0xf0]  ;;  %v231_v51 = vpop.f32.mrf.mxu3  ;;  %v3450_v15 = vld [vmem:[#allocation5 + $0x30] sm:$0xf0] }
  0xd1   :  { %6099 = vst [vmem:[#allocation88_spill] sm:$0xff] %v4640_v8  ;;  %v3427_v1 = vmul.f32 -1.442695, %v545_v34  ;;  %v4660_v30 = vor.u32 %v3849_v7, %v3586_v62  ;;  %v197_v8 = vpop.f32.mrf.mxu2  ;;  %v3448_v34 = vld [vmem:[#allocation5 + $0x20] sm:$0xf]  ;;  %v4671_v7 = vadd.f32 %v231_v51, %v4530_v22 }
  0xd2   :  { %6100 = vst [vmem:[#allocation89_spill] sm:$0xff] %v4642_v2  ;;  %974 = vmatpush.bf16.msrb.mxu2 %v4655_v0  ;;  %v4664_v46 = vadd.f32 %v197_v8, %v4590_v52  ;;  %v3845_v8 = vld [vmem:[#allocation5 + $0x10c] sm:$0xf]  ;;  %v3814_v51 = vld [vmem:[#allocation5 + $0xc] sm:$0xf0] }
  0xd3   :  { %6101 = vst [vmem:[#allocation90_spill] sm:$0xff] %v4645_v16  ;;  %3898 = vpow2.f32 %v3427_v1  ;;  %1040 = vmatpush.bf16.msrb.mxu3 %v4660_v30  ;;  %v4668_v1 = vor.u32 %v3818_v60, %v3448_v34  ;;  %v4677_v16 = vpop.f32.mrf.mxu1  ;;  %v5900_v34 = vmov 0.0|0.0   ;;  %v3432_v60 = vld [vmem:[#allocation5] sm:$0xf] }
  0xd4   :  { %6102 = vst [vmem:[#allocation91_spill] sm:$0xff] %v4648_v39  ;;  %v4658_v39 = vor.u32 %v3851_v53, %v3584_v21  ;;  %v3568_v21 = vld [vmem:[#allocation5 + $0x108] sm:$0xf]  ;;  %v3847_v53 = vld [vmem:[#allocation5 + $0x114] sm:$0xf0]  ;;  %964 = vmatmul.bf16.vlgmr.msra.gmra.mxu1 %v5900_v34  ;;  %990 = vmatmul.bf16.vlgmr.msra.gmra.mxu3 %v5900_v34 }
  0xd5   :  { %6103 = vst [vmem:[#allocation92_spill] sm:$0xff] %v4653_v50  ;;  %v4675_v50 = vor.u32 %v3847_v53, %v3568_v21  ;;  %949 = vmatpush.bf16.msra.mxu0 %v4668_v1  ;;  %v3434_v21 = vld [vmem:[#allocation5 + $0x10] sm:$0xf0]  ;;  %v3552_v53 = vld [vmem:[#allocation5 + $0xe8] sm:$0xf] }
  0xd6   :  { %6104 = vst [vmem:[#allocation93_spill] sm:$0xff] %v4655_v0  ;;  %1014 = vmatpush.bf16.msrb.mxu1 %v4658_v39  ;;  %v504_v62 = vpop.f32.mrf.mxu0  ;;  %v4673_v0 = vor.u32 %v3816_v41, %v3450_v15  ;;  %v4686_v15 = vor.u32 %v3814_v51, %v3432_v60 }
  0xd7   :  { %6105 = vst [vmem:[#allocation94_spill] sm:$0xff] %v4658_v39  ;;  %v3812_v62 = vld [vmem:[#allocation5 + $0x4] sm:$0xf] }
  0xd8   :  { %6106 = vst [vmem:[#allocation95_spill] sm:$0xff] %v4660_v30  ;;  %975 = vmatpush.bf16.msrb.mxu2 %v4673_v0 }
  0xd9   :  { %6107 = vst [vmem:[#allocation96_spill] sm:$0xff] %v4664_v46  ;;  %v3570_v46 = vld [vmem:[#allocation5 + $0x118] sm:$0xf0]  ;;  %v3899_v41 = vpop.eup %3898  ;;  %950 = vmatpush.bf16.msra.mxu0 %v4686_v15  ;;  %v4701_v51 = vpop.f32.mrf.mxu2 }
  0xda   :  { %6108 = vst [vmem:[#allocation97_spill] sm:$0xff] %v4668_v1  ;;  %v4680_v30 = vor.u32 %v3845_v8, %v3570_v46  ;;  %1015 = vmatpush.bf16.msrb.mxu1 %v4675_v50  ;;  %v4688_v46 = vadd.f32 1.0, %v3899_v41  ;;  %v4692_v8 = vor.u32 %v3812_v62, %v3434_v21  ;;  %v3554_v1 = vld [vmem:[#allocation5 + $0xf8] sm:$0xf0]  ;;  %v4705_v62 = vpop.f32.mrf.mxu3  ;;  %v3839_v41 = vld [vmem:[#allocation5 + $0xd4] sm:$0xf0] }
  0xdb   :  { %6109 = vst [vmem:[#allocation98_spill] sm:$0xff] %v4671_v7  ;;  %v3837_v21 = vld [vmem:[#allocation5 + $0xcc] sm:$0xf]  ;;  %v515_v34 = vpop.f32.mrf.mxu1 }
  0xdc   :  { %6110 = vst [vmem:[#allocation99_spill] sm:$0xff] %v4673_v0  ;;  %1041 = vmatpush.bf16.msrb.mxu3 %v4680_v30  ;;  %v3841_v0 = vld [vmem:[#allocation5 + $0xec] sm:$0xf]  ;;  %3900 = vrcp.f32 %v4688_v46  ;;  %976 = vmatpush.bf16.msrb.mxu2 %v4692_v8  ;;  %vm566_vm3 = vweird.f32 %v4688_v46 }
  0xdd   :  { %6111 = vst [vmem:[#allocation100_spill] sm:$0xff] %v4675_v50  ;;  %v4698_v60 = vor.u32 %v3841_v0, %v3554_v1  ;;  %v3538_v1 = vld [vmem:[#allocation5 + $0xd8] sm:$0xf0] }
  0xde   :  { %6112 = vst [vmem:[#allocation101_spill] sm:$0xff] %v4677_v16  ;;  %v3843_v16 = vld [vmem:[#allocation5 + $0xf4] sm:$0xf0]  ;;  %1123 = vmatpush.bf16.msra.mxu1 %v4317_v18 }
  0xdf   :  { %6113 = vst [vmem:[#allocation102_spill] sm:$0xff] %v4680_v30  ;;  %v4694_v7 = vor.u32 %v3843_v16, %v3552_v53  ;;  %v3536_v16 = vld [vmem:[#allocation5 + $0xc8] sm:$0xf]  ;;  %v159_v53 = vadd.f32 %v4472_v17, %v4513_v36  ;;  %v3835_v18 = vld [vmem:[#allocation5 + $0xb4] sm:$0xf0] }
  0xe0   :  { %6114 = vst [vmem:[#allocation103_spill] sm:$0xff] %v4686_v15  ;;  %1149 = vmatpush.bf16.msra.mxu3 %v4332_v33  ;;  %1021 = vmatpush.bf16.msra.mxu2 %v4698_v60  ;;  %v4711_v0 = vor.u32 %v3839_v41, %v3536_v16  ;;  %v3522_v41 = vld [vmem:[#allocation5 + $0xb8] sm:$0xf0] }
  0xe1   :  { %6115 = vst [vmem:[#allocation104_spill] sm:$0xff] %v4692_v8  ;;  %995 = vmatpush.bf16.msrb.mxu0 %v4694_v7  ;;  %v546_v33 = vadd.f32 %v515_v34, %v159_v53  ;;  %v217_v34 = vadd.f32 %v4488_v47, %v4530_v22  ;;  %v202_v53 = vpop.f32.mrf.mxu2  ;;  %v3829_v47 = vld [vmem:[#allocation5 + $0x8c] sm:$0xf] }
  0xe2   :  { %6116 = vst [vmem:[#allocation105_spill] sm:$0xff] %v4694_v7  ;;  %1124 = vmatpush.bf16.msra.mxu1 %v4330_v29  ;;  %v3901_v7 = vpop.eup %3900 }
  0xe3   :  { %6117 = vst [vmem:[#allocation106_spill] sm:$0xff] %v4698_v60  ;;  %v3833_v60 = vld [vmem:[#allocation5 + $0xac] sm:$0xf]  ;;  %v3428_v17 = vmul.f32 -1.442695, %v546_v33  ;;  %v562_v29 = vmul.f32 %v3901_v7, %v4688_v46  ;;  %v4729_v33 = vadd.f32 %v202_v53, %v4590_v52  ;;  %vm567_vm2 = vweird.f32 %v3901_v7  ;;  %v517_v53 = vpop.f32.mrf.mxu1 }
  0xe4   :  { %6118 = vst [vmem:[#allocation107_spill] sm:$0xff] %v4701_v51  ;;  %1150 = vmatpush.bf16.msra.mxu3 %v4352_v45  ;;  %v4714_v51 = vor.u32 %v3837_v21, %v3538_v1  ;;  %v4723_v21 = vor.u32 %v3833_v60, %v3522_v41  ;;  %v572_v60 = vand.u32 2147483648, %v4688_v46  ;;  %vm568_vm4 = vmor %vm566_vm3, %vm567_vm2 }
  0xe5   :  { %6119 = vst [vmem:[#allocation108_spill] sm:$0xff] %v4705_v62  ;;  %996 = vmatpush.bf16.msrb.mxu0 %v4711_v0  ;;  %v3520_v62 = vld [vmem:[#allocation5 + $0xa8] sm:$0xf]  ;;  %3902 = vpow2.f32 %v3428_v17  ;;  %v563_v1 = vsub.f32 1.0, %v562_v29  ;;  %v3506_v17 = vld [vmem:[#allocation5 + $0x98] sm:$0xf0] }
  0xe6   :  { %6120 = vst [vmem:[#allocation109_spill] sm:$0xff] %v4711_v0  ;;  %1022 = vmatpush.bf16.msra.mxu2 %v4714_v51  ;;  %1125 = vmatpush.bf16.msra.mxu1 %v4350_v42  ;;  %v4719_v16 = vor.u32 %v3835_v18, %v3520_v62  ;;  %v541_v18 = vpop.f32.mrf.mxu3  ;;  %v3504_v62 = vld [vmem:[#allocation5 + $0x88] sm:$0xf]  ;;  %v3831_v42 = vld [vmem:[#allocation5 + $0x94] sm:$0xf0] }
  0xe7   :  { %6121 = vst [vmem:[#allocation110_spill] sm:$0xff] %v4714_v51  ;;  %v548_v45 = vadd.f32 %v541_v18, %v217_v34  ;;  %v4734_v41 = vor.u32 %v3831_v42, %v3504_v62  ;;  %v570_v29 = vand.u32 2147483647, %v4688_v46  ;;  %v6127_v34 = vmov 0.0|0.0   ;;  %v3488_v42 = vld [vmem:[#allocation5 + $0x68] sm:$0xf] }
  0xe8   :  { %6122 = vst [vmem:[#allocation111_spill] sm:$0xff] %v4719_v16  ;;  %1151 = vmatpush.bf16.msra.mxu3 %v4364_v57  ;;  %v564_v57 = vmul.f32 %v3901_v7, %v563_v1  ;;  %1016 = vmatmul.bf16.vlgmr.msrb.gmra.mxu1 %v6127_v34  ;;  %v3827_v1 = vld [vmem:[#allocation5 + $0x74] sm:$0xf0]  ;;  %v3825_v62 = vld [vmem:[#allocation5 + $0x6c] sm:$0xf] }
  0xe9   :  { %6123 = vst [vmem:[#allocation112_spill] sm:$0xff] %v4723_v21  ;;  %997 = vmatpush.bf16.msrb.mxu0 %v4719_v16  ;;  %3904 = vtanh.f32 %v548_v45  ;;  %1042 = vmatmul.bf16.vlgmr.msrb.gmra.mxu3 %v6127_v34  ;;  %v4747_v45 = vor.u32 %v3827_v1, %v3488_v42  ;;  %vm571_vm5 = vcmp.eq.f32.partialorder %v570_v29, 8.507059e+37  ;;  %v3472_v42 = vld [vmem:[#allocation5 + $0x48] sm:$0xf]  ;;  %v3821_v29 = vld [vmem:[#allocation5 + $0x4c] sm:$0xf] }
  0xea   :  { %6124 = vst [vmem:[#allocation113_spill] sm:$0xff] %v4729_v33  ;;  %1023 = vmatpush.bf16.msra.mxu2 %v4723_v21  ;;  %1126 = vmatpush.bf16.msra.mxu1 %v4362_v54  ;;  %v4738_v33 = vor.u32 %v3829_v47, %v3506_v17  ;;  %v565_v18 = vadd.f32 %v3901_v7, %v564_v57  ;;  %v573_v47 = vor.u32 1.1754944e-38, %v572_v60  ;;  %v3490_v17 = vld [vmem:[#allocation5 + $0x78] sm:$0xf0]  ;;  %v4754_v54 = vpop.f32.mrf.mxu2 }
  0xeb   :  { %6125 = vst [vmem:[#allocation114_spill] sm:$0xff] %v4734_v41  ;;  %v3903_v53 = vpop.eup %3902  ;;  %v4752_v46 = vor.u32 %v3825_v62, %v3490_v17  ;;  %v3456_v17 = vld [vmem:[#allocation5 + $0x28] sm:$0xf] }
  0xec   :  { %1152 = vmatpush.bf16.msra.mxu3 %v4382_v5  ;;  %6126 = vst [vmem:[#allocation115_spill] sm:$0xff] %v4738_v33  ;;  %v4749_v5 = vadd.f32 1.0, %v3903_v53  ;;  %v569_v57 = vsel %vm568_vm4, %v3901_v7, %v565_v18  ;;  %v3823_v7 = vld [vmem:[#allocation5 + $0x54] sm:$0xf0]  ;;  %v3474_v18 = vld [vmem:[#allocation5 + $0x58] sm:$0xf0] }
  0xed   :  { %998 = vmatpush.bf16.msrb.mxu0 %v4734_v41  ;;  %6128 = vst [vmem:[#allocation116_spill] sm:$0xff] %v4747_v45  ;;  %v574_v34 = vsel %vm571_vm5, %v573_v47, %v569_v57  ;;  %v4761_v62 = vor.u32 %v3823_v7, %v3472_v42  ;;  %v4763_v47 = vor.u32 %v3821_v29, %v3474_v18  ;;  %v3819_v57 = vld [vmem:[#allocation5 + $0x34] sm:$0xf0]  ;;  %v3440_v18 = vld [vmem:[#allocation5 + $0x8] sm:$0xf] }
  0xee   :  { %1024 = vmatpush.bf16.msra.mxu2 %v4738_v33  ;;  %1127 = vmatpush.bf16.msra.mxu1 %v4380_v4  ;;  %6129 = vst [vmem:[#allocation117_spill] sm:$0xff] %v4752_v46  ;;  %3906 = vrcp.f32 %v4749_v5  ;;  %v543_v60 = vpop.f32.mrf.mxu3  ;;  %vm581_vm7 = vweird.f32 %v4749_v5 }
  0xef   :  { %6130 = vst [vmem:[#allocation118_spill] sm:$0xff] %v4754_v54  ;;  %v3905_v1 = vpop.eup %3904  ;;  %v3817_v60 = vld [vmem:[#allocation5 + $0x2c] sm:$0xf]  ;;  %v4768_v54 = vor.u32 %v3819_v57, %v3456_v17  ;;  %v3442_v57 = vld [vmem:[#allocation5 + $0x18] sm:$0xf0] }
  0xf0   :  { %1153 = vmatpush.bf16.msra.mxu3 %v4396_v12  ;;  %v608_v53 = vmul.f32 %v3905_v1, %v574_v34  ;;  %6131 = vst [vmem:[#allocation119_spill] sm:$0xff] %v4761_v62  ;;  %v188_v34 = vadd.f32 %v4533_v32, %v4590_v52  ;;  %v3813_v32 = vld [vmem:[#allocation5 + $0xc] sm:$0xf] }
  0xf1   :  { %999 = vmatpush.bf16.msrb.mxu0 %v4747_v45  ;;  %6132 = vst [vmem:[#allocation120_spill] sm:$0xff] %v4763_v47 }
  0xf2   :  { %1025 = vmatpush.bf16.msra.mxu2 %v4752_v46  ;;  %1128 = vmatpush.bf16.msra.mxu1 %v4408_v25  ;;  %6133 = vst [vmem:[#allocation121_spill] sm:$0xff] %v4768_v54  ;;  %v3458_v25 = vld [vmem:[#allocation5 + $0x38] sm:$0xf0]  ;;  %v528_v7 = vpop.f32.mrf.mxu2 }
  0xf3   :  { %v4773_v42 = vor.u32 %v3817_v60, %v3458_v25  ;;  %v547_v29 = vadd.f32 %v528_v7, %v188_v34  ;;  %v587_v25 = vand.u32 2147483648, %v4749_v5 }
  0xf4   :  { %1154 = vmatpush.bf16.msra.mxu3 %v4410_v28  ;;  %v3907_v12 = vpop.eup %3906  ;;  %v3815_v28 = vld [vmem:[#allocation5 + $0x14] sm:$0xf0] }
  0xf5   :  { %1000 = vmatpush.bf16.msrb.mxu0 %v4761_v62  ;;  %6134 = vst [vmem:[#allocation122_spill] sm:$0xff] %v4773_v42  ;;  %v577_v1 = vmul.f32 %v3907_v12, %v4749_v5  ;;  %v4779_v17 = vor.u32 %v3815_v28, %v3440_v18  ;;  %v3429_v60 = vmul.f32 -1.442695, %v547_v29  ;;  %vm582_vm6 = vweird.f32 %v3907_v12 }
  0xf6   :  { %1026 = vmatpush.bf16.msra.mxu2 %v4763_v47  ;;  %1129 = vmatpush.bf16.msra.mxu1 %v4416_v40  ;;  %v588_v7 = vor.u32 1.1754944e-38, %v587_v25  ;;  %vm583_vm8 = vmor %vm581_vm7, %vm582_vm6 }
  0xf7   :  { %v578_v40 = vsub.f32 1.0, %v577_v1  ;;  %6135 = vst [vmem:[#allocation123_spill] sm:$0xff] %v4779_v17  ;;  %v585_v1 = vand.u32 2147483647, %v4749_v5  ;;  %3908 = vpow2.f32 %v3429_v60 }
  0xf8   :  { %1155 = vmatpush.bf16.msra.mxu3 %v4422_v48  ;;  %v4783_v48 = vor.u32 %v3813_v32, %v3442_v57 }
  0xf9   :  { %1001 = vmatpush.bf16.msrb.mxu0 %v4768_v54  ;;  %v579_v34 = vmul.f32 %v3907_v12, %v578_v40  ;;  %vm586_vm9 = vcmp.eq.f32.partialorder %v585_v1, 8.507059e+37 }
  0xfa   :  { %1027 = vmatpush.bf16.msra.mxu2 %v4773_v42  ;;  %1130 = vmatpush.bf16.msra.mxu1 %v4432_v56  ;;  %6136 = vst [vmem:[#allocation124_spill] sm:$0xff] %v4783_v48  ;;  %v530_v40 = vpop.f32.mrf.mxu2 }
  0xfb   :  { %v580_v28 = vadd.f32 %v3907_v12, %v579_v34 }
  0xfc   :  { %1156 = vmatpush.bf16.msra.mxu3 %v4438_v59 }
  0xfd   :  { %1002 = vmatpush.bf16.msrb.mxu0 %v4779_v17  ;;  %v584_v29 = vsel %vm583_vm8, %v3907_v12, %v580_v28  ;;  %v3909_v57 = vpop.eup %3908 }
  0xfe   :  { %1244 = vmatpush.bf16.msrb.mxu1 %v4461_v13  ;;  %1028 = vmatpush.bf16.msra.mxu2 %v4783_v48  ;;  %v589_v18 = vsel %vm586_vm9, %v588_v7, %v584_v29  ;;  %v560_v5 = vadd.f32 1.0, %v3909_v57 }
  0xff   :  { %v607_v32 = vmul.f32 0.0, %v589_v18 }
 0x100   :  { %1270 = vmatpush.bf16.msrb.mxu3 %v4470_v19  ;;  %3910 = vrcp.f32 %v560_v5  ;;  %v600_v28 = vand.u32 2147483647, %v560_v5  ;;  %vm596_vm11 = vweird.f32 %v560_v5 }
 0x101   :  { %v4794_v60 = vadd.f32 %v608_v53, %v607_v32  ;;  %v602_v53 = vand.u32 2147483648, %v560_v5 }
 0x102   :  { %1245 = vmatpush.bf16.msrb.mxu1 %v4479_v31  ;;  %vm601_vm13 = vcmp.eq.f32.partialorder %v600_v28, 8.507059e+37  ;;  %v6142_v28 = vld [vmem:[#allocation20_spill] sm:$0xff] }
 0x103   :  { %3912 = vtanh.f32 %v4794_v60  ;;  %v603_v29 = vor.u32 1.1754944e-38, %v602_v53  ;;  %v6140_v53 = vld [vmem:[#allocation70_spill] sm:$0xff] }
 0x104   :  { %1271 = vmatpush.bf16.msrb.mxu3 %v4481_v35 }
 0x106   :  { %1246 = vmatpush.bf16.msrb.mxu1 %v4490_v49  ;;  %v3911_v12 = vpop.eup %3910 }
 0x107   :  { %v592_v25 = vmul.f32 %v3911_v12, %v560_v5  ;;  %vm597_vm10 = vweird.f32 %v3911_v12  ;;  %v6137_v5 = vld [vmem:[#allocation66_spill] sm:$0xff] }
 0x108   :  { %1272 = vmatpush.bf16.msrb.mxu3 %v4494_v55  ;;  %vm598_vm12 = vmor %vm596_vm11, %vm597_vm10 }
 0x109   :  { %v593_v34 = vsub.f32 1.0, %v592_v25  ;;  %v3913_v18 = vpop.eup %3912 }
 0x10a   :  { %1247 = vmatpush.bf16.msrb.mxu1 %v4500_v3 }
 0x10b   :  { %v594_v1 = vmul.f32 %v3911_v12, %v593_v34  ;;  %v6139_v34 = vld [vmem:[#allocation17_spill] sm:$0xff] }
 0x10c   :  { %1273 = vmatpush.bf16.msrb.mxu3 %v4502_v6 }
 0x10d   :  { %v595_v7 = vadd.f32 %v3911_v12, %v594_v1  ;;  %v6141_v1 = vld [vmem:[#allocation72_spill] sm:$0xff] }
 0x10e   :  { %1248 = vmatpush.bf16.msrb.mxu1 %v4510_v24 }
 0x10f   :  { %v599_v40 = vsel %vm598_vm12, %v3911_v12, %v595_v7  ;;  %v6138_v12 = vld [vmem:[#allocation16_spill] sm:$0xff]  ;;  %v6143_v7 = vld [vmem:[#allocation21_spill] sm:$0xff] }
 0x110   :  { %1274 = vmatpush.bf16.msrb.mxu3 %v4515_v43  ;;  %v604_v32 = vsel %vm601_vm13, %v603_v29, %v599_v40  ;;  %v6144_v29 = vld [vmem:[#allocation78_spill] sm:$0xff]  ;;  %v6145_v40 = vld [vmem:[#allocation80_spill] sm:$0xff] }
 0x111   :  { %v611_v57 = vmul.f32 %v3913_v18, %v604_v32  ;;  %v6146_v18 = vld [vmem:[#allocation23_spill] sm:$0xff]  ;;  %v6147_v32 = vld [vmem:[#allocation26_spill] sm:$0xff] }
 0x112   :  { %1249 = vmatpush.bf16.msrb.mxu1 %v4525_v11 }
 0x113   :  { %v612_v25 = vpack.c.bf16 %v611_v57, %v611_v57  ;;  %v6148_v57 = vld [vmem:[#allocation83_spill] sm:$0xff] }
 0x114   :  { %1275 = vmatpush.bf16.msrb.mxu3 %v4527_v10 }
 0x115   :  { %951 = vmatmul.bf16.vlgmr.msra.gmra.mxu0 %v612_v25  ;;  %977 = vmatmul.bf16.vlgmr.msrb.gmra.mxu2 %v612_v25 }
 0x116   :  { %1250 = vmatpush.bf16.msrb.mxu1 %v4536_v61  ;;  %1157 = vmatmul.bf16.vlgmr.msra.gmra.mxu3 %v612_v25 }
 0x117   :  { %1131 = vmatmul.bf16.vlgmr.msra.gmra.mxu1 %v612_v25  ;;  %1110 = vmatpush.bf16.msra.mxu0 %v4327_v27 }
 0x118   :  { %1276 = vmatpush.bf16.msrb.mxu3 %v4543_v14  ;;  %1136 = vmatpush.bf16.msrb.mxu2 %v4325_v26  ;;  %v6165_v14 = vld [vmem:[#allocation87_spill] sm:$0xff] }
 0x11a   :  { %1251 = vmatpush.bf16.msrb.mxu1 %v4549_v58  ;;  %v6164_v58 = vld [vmem:[#allocation82_spill] sm:$0xff] }
 0x11b   :  { %1111 = vmatpush.bf16.msra.mxu0 %v4344_v37 }
 0x11c   :  { %1277 = vmatpush.bf16.msrb.mxu3 %v4551_v44  ;;  %1137 = vmatpush.bf16.msrb.mxu2 %v4346_v38  ;;  %v6163_v44 = vld [vmem:[#allocation81_spill] sm:$0xff] }
 0x11e   :  { %1296 = vmatpush.bf16.msra.mxu1 %v4553_v63  ;;  %v6158_v63 = vld [vmem:[#allocation63_spill] sm:$0xff] }
 0x11f   :  { %1112 = vmatpush.bf16.msra.mxu0 %v6138_v12 }
 0x120   :  { %1322 = vmatpush.bf16.msra.mxu3 %v4556_v9  ;;  %1138 = vmatpush.bf16.msrb.mxu2 %v6139_v34  ;;  %v6155_v9 = vld [vmem:[#allocation33_spill] sm:$0xff] }
 0x122   :  { %1297 = vmatpush.bf16.msra.mxu1 %v4569_v23  ;;  %v6154_v23 = vld [vmem:[#allocation95_spill] sm:$0xff] }
 0x123   :  { %1113 = vmatpush.bf16.msra.mxu0 %v6142_v28 }
 0x124   :  { %1323 = vmatpush.bf16.msra.mxu3 %v6137_v5  ;;  %1139 = vmatpush.bf16.msrb.mxu2 %v6143_v7  ;;  %v6151_v5 = vld [vmem:[#allocation90_spill] sm:$0xff] }
 0x125   :  { %1003 = vmatmul.bf16.vlgmr.msrb.gmra.mxu0 %v612_v25  ;;  %1029 = vmatmul.bf16.vlgmr.msra.gmra.mxu2 %v612_v25 }
 0x126   :  { %1298 = vmatpush.bf16.msra.mxu1 %v6140_v53  ;;  %v6149_v53 = vld [vmem:[#allocation25_spill] sm:$0xff] }
 0x127   :  { %1114 = vmatpush.bf16.msra.mxu0 %v6146_v18 }
 0x128   :  { %1324 = vmatpush.bf16.msra.mxu3 %v6141_v1  ;;  %1140 = vmatpush.bf16.msrb.mxu2 %v6147_v32  ;;  %v6150_v1 = vld [vmem:[#allocation29_spill] sm:$0xff] }
 0x12a   :  { %1299 = vmatpush.bf16.msra.mxu1 %v6144_v29  ;;  %v6152_v29 = vld [vmem:[#allocation31_spill] sm:$0xff] }
 0x12b   :  { %1115 = vmatpush.bf16.msra.mxu0 %v6149_v53 }
 0x12c   :  { %1325 = vmatpush.bf16.msra.mxu3 %v6145_v40  ;;  %1141 = vmatpush.bf16.msrb.mxu2 %v6150_v1  ;;  %v6153_v40 = vld [vmem:[#allocation34_spill] sm:$0xff] }
 0x12e   :  { %1300 = vmatpush.bf16.msra.mxu1 %v6148_v57  ;;  %v6156_v57 = vld [vmem:[#allocation35_spill] sm:$0xff] }
 0x12f   :  { %1116 = vmatpush.bf16.msra.mxu0 %v6152_v29 }
 0x130   :  { %1326 = vmatpush.bf16.msra.mxu3 %v4627_v20  ;;  %1142 = vmatpush.bf16.msrb.mxu2 %v6153_v40  ;;  %v6157_v20 = vld [vmem:[#allocation62_spill] sm:$0xff] }
 0x132   :  { %1301 = vmatpush.bf16.msra.mxu1 %v4642_v2  ;;  %v6160_v2 = vld [vmem:[#allocation69_spill] sm:$0xff] }
 0x133   :  { %1117 = vmatpush.bf16.msra.mxu0 %v6155_v9 }
 0x134   :  { %1327 = vmatpush.bf16.msra.mxu3 %v6151_v5  ;;  %1143 = vmatpush.bf16.msrb.mxu2 %v6156_v57  ;;  %v6159_v5 = vld [vmem:[#allocation68_spill] sm:$0xff] }
 0x136   :  { %1302 = vmatpush.bf16.msra.mxu1 %v4658_v39  ;;  %1118 = vmatmul.bf16.vlgmr.msra.gmra.mxu0 %v612_v25  ;;  %v6161_v39 = vld [vmem:[#allocation74_spill] sm:$0xff] }
 0x137   :  { %1231 = vmatpush.bf16.msrb.mxu0 %v6157_v20  ;;  %1144 = vmatmul.bf16.vlgmr.msrb.gmra.mxu2 %v612_v25  ;;  %v6169_v25 = vld [vmem:[#allocation97_spill] sm:$0xff] }
 0x138   :  { %1328 = vmatpush.bf16.msra.mxu3 %v6154_v23  ;;  %1257 = vmatpush.bf16.msra.mxu2 %v6158_v63  ;;  %v6162_v23 = vld [vmem:[#allocation77_spill] sm:$0xff]  ;;  %v6166_v63 = vld [vmem:[#allocation88_spill] sm:$0xff] }
 0x13a   :  { %1303 = vmatpush.bf16.msra.mxu1 %v4675_v50  ;;  %v6167_v50 = vld [vmem:[#allocation92_spill] sm:$0xff] }
 0x13b   :  { %1232 = vmatpush.bf16.msrb.mxu0 %v6159_v5  ;;  %v6170_v5 = vld [vmem:[#allocation99_spill] sm:$0xff] }
 0x13c   :  { %1329 = vmatpush.bf16.msra.mxu3 %v4680_v30  ;;  %1258 = vmatpush.bf16.msra.mxu2 %v6160_v2  ;;  %v6168_v30 = vld [vmem:[#allocation93_spill] sm:$0xff] }
 0x13f   :  { %1233 = vmatpush.bf16.msrb.mxu0 %v6161_v39 }
 0x140   :  { %1259 = vmatpush.bf16.msra.mxu2 %v6162_v23  ;;  %v6171_v23 = vld [vmem:[#allocation105_spill] sm:$0xff] }
 0x143   :  { %1234 = vmatpush.bf16.msrb.mxu0 %v6163_v44  ;;  %v6172_v44 = vld [vmem:[#allocation106_spill] sm:$0xff] }
 0x144   :  { %1260 = vmatpush.bf16.msra.mxu2 %v6164_v58 }
 0x147   :  { %1235 = vmatpush.bf16.msrb.mxu0 %v6165_v14 }
 0x148   :  { %1261 = vmatpush.bf16.msra.mxu2 %v6166_v63 }
 0x14b   :  { %1236 = vmatpush.bf16.msrb.mxu0 %v6167_v50 }
 0x14c   :  { %1262 = vmatpush.bf16.msra.mxu2 %v6168_v30 }
 0x14f   :  { %1237 = vmatpush.bf16.msrb.mxu0 %v6169_v25 }
 0x150   :  { %1263 = vmatpush.bf16.msra.mxu2 %v6170_v5 }
 0x151   :  { %v965_v58 = vpop.f32.mrf.mxu1 }
 0x153   :  { %1238 = vmatpush.bf16.msrb.mxu0 %v4686_v15 }
 0x154   :  { %1264 = vmatpush.bf16.msra.mxu2 %v4692_v8 }
 0x157   :  { %1283 = vmatpush.bf16.msra.mxu0 %v6171_v23  ;;  %v991_v50 = vpop.f32.mrf.mxu3 }
 0x158   :  { %1309 = vmatpush.bf16.msrb.mxu2 %v6172_v44 }
 0x159   :  { %v967_v25 = vpop.f32.mrf.mxu1 }
 0x15b   :  { %1284 = vmatpush.bf16.msra.mxu0 %v4711_v0  ;;  %v6175_v0 = vld [vmem:[#allocation39_spill] sm:$0xff] }
 0x15c   :  { %1310 = vmatpush.bf16.msrb.mxu2 %v4714_v51  ;;  %v161_v23 = vadd.f32 %v6175_v0, %v4513_v36 }
 0x15f   :  { %1285 = vmatpush.bf16.msra.mxu0 %v4719_v16  ;;  %v993_v8 = vpop.f32.mrf.mxu3 }
 0x160   :  { %1311 = vmatpush.bf16.msrb.mxu2 %v4723_v21 }
 0x163   :  { %1286 = vmatpush.bf16.msra.mxu0 %v4734_v41 }
 0x164   :  { %1312 = vmatpush.bf16.msrb.mxu2 %v4738_v33 }
 0x165   :  { %v1017_v44 = vpop.f32.mrf.mxu1 }
 0x167   :  { %1287 = vmatpush.bf16.msra.mxu0 %v4747_v45 }
 0x168   :  { %1313 = vmatpush.bf16.msrb.mxu2 %v4752_v46  ;;  %v332_v46 = vld [vmem:[%s5824_s5] sm:$0xf] }
 0x169   :  { %v4875_v45 = vperm.slane %v332_v46, 0 }
 0x16b   :  { %1288 = vmatpush.bf16.msra.mxu0 %v4761_v62  ;;  %6173 = vst [vmem:[#allocation16_spill] sm:$0xff] %v4875_v45 }
 0x16c   :  { %1314 = vmatpush.bf16.msrb.mxu2 %v4763_v47  ;;  %v1043_v51 = vpop.f32.mrf.mxu3 }
 0x16d   :  { %v1019_v25 = vpop.f32.mrf.mxu1 }
 0x16f   :  { %1289 = vmatpush.bf16.msra.mxu0 %v4768_v54  ;;  %v4878_v54 = vperm.slane %v332_v46, 1 }
 0x170   :  { %1315 = vmatpush.bf16.msrb.mxu2 %v4773_v42 }
 0x171   :  { %6174 = vst [vmem:[#allocation17_spill] sm:$0xff] %v4878_v54 }
 0x173   :  { %1290 = vmatpush.bf16.msra.mxu0 %v4779_v17 }
 0x174   :  { %1316 = vmatpush.bf16.msrb.mxu2 %v4783_v48  ;;  %v1045_v8 = vpop.f32.mrf.mxu3 }
 0x192   :  { %v952_v62 = vpop.f32.mrf.mxu0 }
 0x193   :  { %v953_v47 = vadd.f32 %v952_v62, %v4875_v45 }
 0x194   :  { %v1132_v33 = vpop.f32.mrf.mxu1 }
 0x195   :  { %v966_v41 = vadd.f32 %v965_v58, %v953_v47  ;;  %v1163_v5 = vadd.f32 %v1132_v33, %v161_v23  ;;  %v4885_v58 = vperm.slane %v332_v46, 2 }
 0x197   :  { %v3686_v42 = vmul.f32 -1.442695, %v966_v41  ;;  %6176 = vst [vmem:[#allocation20_spill] sm:$0xff] %v4885_v58 }
 0x198   :  { %v978_v25 = vpop.f32.mrf.mxu2 }
 0x199   :  { %3914 = vpow2.f32 %v3686_v42  ;;  %v979_v17 = vadd.f32 %v978_v25, %v4878_v54  ;;  %v4881_v48 = vpop.f32.mrf.mxu3  ;;  %v3690_v42 = vmul.f32 -1.442695, %v1163_v5 }
 0x19a   :  { %v954_v8 = vpop.f32.mrf.mxu0 }
 0x19b   :  { %v992_v21 = vadd.f32 %v991_v50, %v979_v17 }
 0x19c   :  { %v1134_v16 = vpop.f32.mrf.mxu1 }
 0x19d   :  { %v3687_v15 = vmul.f32 -1.442695, %v992_v21  ;;  %v4888_v16 = vperm.slane %v332_v46, 3 }
 0x19f   :  { %v3915_v62 = vpop.eup %3914  ;;  %3916 = vpow2.f32 %v3687_v15  ;;  %6177 = vst [vmem:[#allocation21_spill] sm:$0xff] %v4888_v16 }
 0x1a0   :  { %v1056_v47 = vadd.f32 1.0, %v3915_v62  ;;  %v980_v41 = vpop.f32.mrf.mxu2 }
 0x1a1   :  { %v1160_v45 = vpop.f32.mrf.mxu3 }
 0x1a2   :  { %3918 = vrcp.f32 %v1056_v47  ;;  %v1004_v25 = vpop.f32.mrf.mxu0  ;;  %v1070_v36 = vand.u32 2147483648, %v1056_v47  ;;  %vm1064_vm15 = vweird.f32 %v1056_v47 }
 0x1a3   :  { %v1005_v54 = vadd.f32 %v1004_v25, %v4885_v58  ;;  %3920 = vpow2.f32 %v3690_v42 }
 0x1a5   :  { %v3917_v8 = vpop.eup %3916  ;;  %v1018_v50 = vadd.f32 %v1017_v44, %v1005_v54  ;;  %v1068_v54 = vand.u32 2147483647, %v1056_v47 }
 0x1a6   :  { %v1057_v0 = vadd.f32 1.0, %v3917_v8 }
 0x1a7   :  { %v3688_v21 = vmul.f32 -1.442695, %v1018_v50  ;;  %vm1069_vm1 = vcmp.eq.f32.partialorder %v1068_v54, 8.507059e+37 }
 0x1a8   :  { %v3919_v23 = vpop.eup %3918  ;;  %3922 = vrcp.f32 %v1057_v0  ;;  %v1030_v15 = vpop.f32.mrf.mxu2  ;;  %vm1079_vm3 = vweird.f32 %v1057_v0 }
 0x1a9   :  { %v1060_v33 = vmul.f32 %v3919_v23, %v1056_v47  ;;  %3924 = vpow2.f32 %v3688_v21  ;;  %v1031_v17 = vadd.f32 %v1030_v15, %v4888_v16  ;;  %v3921_v41 = vpop.eup %3920  ;;  %vm1065_vm14 = vweird.f32 %v3919_v23 }
 0x1aa   :  { %v1006_v45 = vpop.f32.mrf.mxu0  ;;  %v4891_v42 = vadd.f32 1.0, %v3921_v41  ;;  %vm1066_vm0 = vmor %vm1064_vm15, %vm1065_vm14  ;;  %v1071_v21 = vor.u32 1.1754944e-38, %v1070_v36  ;;  %v1085_v16 = vand.u32 2147483648, %v1057_v0 }
 0x1ab   :  { %v1061_v62 = vsub.f32 1.0, %v1060_v33  ;;  %v1044_v5 = vadd.f32 %v1043_v51, %v1031_v17  ;;  %v6178_v51 = vld [vmem:[#allocation36_spill] sm:$0xff]  ;;  %v6179_v17 = vld [vmem:[#allocation38_spill] sm:$0xff] }
 0x1ac   :  { %vm1198_vm11 = vweird.f32 %v4891_v42 }
 0x1ad   :  { %v1062_v25 = vmul.f32 %v3919_v23, %v1061_v62  ;;  %3926 = vtanh.f32 %v1044_v5  ;;  %v132_v62 = vadd.f32 %v6179_v17, %v6178_v51 }
 0x1ae   :  { %v3923_v44 = vpop.eup %3922 }
 0x1af   :  { %v3925_v46 = vpop.eup %3924  ;;  %v1075_v8 = vmul.f32 %v3923_v44, %v1057_v0  ;;  %v1063_v50 = vadd.f32 %v3919_v23, %v1062_v25  ;;  %vm1080_vm2 = vweird.f32 %v3923_v44  ;;  %v1083_v25 = vand.u32 2147483647, %v1057_v0 }
 0x1b0   :  { %v1058_v58 = vadd.f32 1.0, %v3925_v46  ;;  %v1032_v15 = vpop.f32.mrf.mxu2  ;;  %vm1081_vm4 = vmor %vm1079_vm3, %vm1080_vm2 }
 0x1b1   :  { %v1076_v45 = vsub.f32 1.0, %v1075_v8  ;;  %v1067_v33 = vsel %vm1066_vm0, %v3919_v23, %v1063_v50  ;;  %v1086_v8 = vor.u32 1.1754944e-38, %v1085_v16  ;;  %vm1084_vm5 = vcmp.eq.f32.partialorder %v1083_v25, 8.507059e+37  ;;  %v6180_v15 = vld [vmem:[#allocation60_spill] sm:$0xff] }
 0x1b2   :  { %3928 = vrcp.f32 %v1058_v58  ;;  %v1072_v5 = vsel %vm1069_vm1, %v1071_v21, %v1067_v33  ;;  %v190_v21 = vadd.f32 %v6180_v15, %v4590_v52  ;;  %vm1094_vm7 = vweird.f32 %v1058_v58 }
 0x1b3   :  { %v3927_v30 = vpop.eup %3926  ;;  %3930 = vrcp.f32 %v4891_v42  ;;  %v1077_v41 = vmul.f32 %v3923_v44, %v1076_v45  ;;  %v1119_v47 = vpop.f32.mrf.mxu0 }
 0x1b4   :  { %v1106_v46 = vmul.f32 %v3927_v30, %v1072_v5  ;;  %v1162_v63 = vadd.f32 %v1119_v47, %v132_v62  ;;  %v1098_v47 = vand.u32 2147483647, %v1058_v58 }
 0x1b5   :  { %v1078_v36 = vadd.f32 %v3923_v44, %v1077_v41  ;;  %v1100_v41 = vand.u32 2147483648, %v1058_v58 }
 0x1b6   :  { %v3689_v23 = vmul.f32 -1.442695, %v1162_v63  ;;  %vm1099_vm9 = vcmp.eq.f32.partialorder %v1098_v47, 8.507059e+37  ;;  %v6183_v47 = vld [vmem:[#allocation13_spill] sm:$0xff] }
 0x1b7   :  { %v1082_v54 = vsel %vm1081_vm4, %v3923_v44, %v1078_v36 }
 0x1b8   :  { %v3929_v50 = vpop.eup %3928  ;;  %v1087_v33 = vsel %vm1084_vm5, %v1086_v8, %v1082_v54  ;;  %3932 = vpow2.f32 %v3689_v23 }
 0x1b9   :  { %v4898_v17 = vpop.eup %3930  ;;  %v1090_v45 = vmul.f32 %v3929_v50, %v1058_v58  ;;  %v1105_v51 = vmul.f32 0.0, %v1087_v33  ;;  %vm1095_vm6 = vweird.f32 %v3929_v50 }
 0x1ba   :  { %v1145_v14 = vpop.f32.mrf.mxu2  ;;  %v1194_v63 = vmul.f32 %v4898_v17, %v4891_v42  ;;  %vm1096_vm8 = vmor %vm1094_vm7, %vm1095_vm6  ;;  %vm1199_vm10 = vweird.f32 %v4898_v17 }
 0x1bb   :  { %v1164_v30 = vadd.f32 %v1145_v14, %v190_v21  ;;  %v1091_v62 = vsub.f32 1.0, %v1090_v45  ;;  %v4900_v0 = vadd.f32 %v1106_v46, %v1105_v51  ;;  %v1121_v16 = vpop.f32.mrf.mxu0  ;;  %v1101_v51 = vor.u32 1.1754944e-38, %v1100_v41  ;;  %vm4916_vm12 = vmor %vm1198_vm11, %vm1199_vm10 }
 0x1bc   :  { %v1195_v23 = vsub.f32 1.0, %v1194_v63  ;;  %v1204_v41 = vand.u32 2147483648, %v4891_v42 }
 0x1bd   :  { %v3691_v44 = vmul.f32 -1.442695, %v1164_v30  ;;  %3934 = vtanh.f32 %v4900_v0  ;;  %v1092_v5 = vmul.f32 %v3929_v50, %v1091_v62  ;;  %v6181_v30 = vld [vmem:[#allocation42_spill] sm:$0xff] }
 0x1be   :  { %v3933_v25 = vpop.eup %3932  ;;  %v1196_v33 = vmul.f32 %v4898_v17, %v1195_v23  ;;  %v219_v62 = vadd.f32 %v6181_v30, %v4530_v22  ;;  %v6189_v22 = vld [vmem:[#allocation19_spill] sm:$0xff] }
 0x1bf   :  { %3936 = vpow2.f32 %v3691_v44  ;;  %v1175_v36 = vadd.f32 1.0, %v3933_v25  ;;  %v1093_v8 = vadd.f32 %v3929_v50, %v1092_v5  ;;  %v6182_v25 = vld [vmem:[#allocation11_spill] sm:$0xff] }
 0x1c0   :  { %v1165_v58 = vadd.f32 %v4881_v48, %v219_v62  ;;  %v1197_v63 = vadd.f32 %v4898_v17, %v1196_v33  ;;  %v6186_v33 = vld [vmem:[#allocation12_spill] sm:$0xff] }
 0x1c1   :  { %3938 = vrcp.f32 %v1175_v36  ;;  %v1097_v46 = vsel %vm1096_vm8, %v3929_v50, %v1093_v8  ;;  %v1202_v8 = vand.u32 2147483647, %v4891_v42  ;;  %vm1183_vm15 = vweird.f32 %v1175_v36 }
 0x1c2   :  { %v1147_v14 = vpop.f32.mrf.mxu2  ;;  %v1102_v15 = vsel %vm1099_vm9, %v1101_v51, %v1097_v46  ;;  %v1201_v51 = vsel %vm4916_vm12, %v4898_v17, %v1197_v63 }
 0x1c3   :  { %v3935_v54 = vpop.eup %3934  ;;  %v1189_v14 = vand.u32 2147483648, %v1175_v36  ;;  %vm1203_vm14 = vcmp.eq.f32.partialorder %v1202_v8, 8.507059e+37 }
 0x1c4   :  { %v1109_v45 = vmul.f32 %v3935_v54, %v1102_v15  ;;  %v1187_v54 = vand.u32 2147483647, %v1175_v36 }
 0x1c5   :  { %v3937_v21 = vpop.eup %3936 }
 0x1c6   :  { %v1177_v16 = vadd.f32 1.0, %v3937_v21  ;;  %v1230_v44 = vpack.c.bf16 %v1109_v45, %v1109_v45  ;;  %v1205_v21 = vor.u32 1.1754944e-38, %v1204_v41  ;;  %v6187_v45 = vld [vmem:[#allocation15_spill] sm:$0xff]  ;;  %vm1188_vm1 = vcmp.eq.f32.partialorder %v1187_v54, 8.507059e+37 }
 0x1c7   :  { %v3939_v5 = vpop.eup %3938 }
 0x1c8   :  { %3940 = vrcp.f32 %v1177_v16  ;;  %v1179_v50 = vmul.f32 %v3939_v5, %v1175_v36  ;;  %1252 = vmatmul.bf16.vlgmr.msrb.gmra.mxu1 %v1230_v44  ;;  %1278 = vmatmul.bf16.vlgmr.msrb.gmra.mxu3 %v1230_v44  ;;  %vm1184_vm13 = vweird.f32 %v3939_v5  ;;  %v1206_v62 = vsel %vm1203_vm14, %v1205_v21, %v1201_v51  ;;  %v6190_v51 = vld [vmem:[#allocation18_spill] sm:$0xff] }
 0x1c9   :  { %1411 = vmatpush.bf16.msrb.mxu1 %v6182_v25  ;;  %1437 = vmatpush.bf16.msrb.mxu3 %v6183_v47  ;;  %3942 = vtanh.f32 %v1165_v58  ;;  %vm1185_vm0 = vmor %vm1183_vm15, %vm1184_vm13  ;;  %v1190_v58 = vor.u32 1.1754944e-38, %v1189_v14  ;;  %v1224_v41 = vmul.f32 %v1206_v62, %v4794_v60  ;;  %v6191_v14 = vld [vmem:[#allocation22_spill] sm:$0xff]  ;;  %vm1213_vm3 = vweird.f32 %v1177_v16  ;;  %v6192_v60 = vld [vmem:[#allocation24_spill] sm:$0xff] }
 0x1ca   :  { %v1180_v23 = vsub.f32 1.0, %v1179_v50  ;;  %v6194_v62 = vld [vmem:[#allocation28_spill] sm:$0xff] }
 0x1cc   :  { %v1181_v46 = vmul.f32 %v3939_v5, %v1180_v23  ;;  %v6188_v23 = vld [vmem:[#allocation14_spill] sm:$0xff] }
 0x1cd   :  { %1412 = vmatpush.bf16.msrb.mxu1 %v6186_v33  ;;  %1438 = vmatpush.bf16.msrb.mxu3 %v6187_v45 }
 0x1ce   :  { %v3941_v15 = vpop.eup %3940  ;;  %v1182_v42 = vadd.f32 %v3939_v5, %v1181_v46  ;;  %v1217_v46 = vand.u32 2147483647, %v1177_v16 }
 0x1cf   :  { %v1209_v30 = vmul.f32 %v3941_v15, %v1177_v16  ;;  %v3943_v17 = vpop.eup %3942  ;;  %vm1214_vm2 = vweird.f32 %v3941_v15 }
 0x1d0   :  { %v1186_v50 = vsel %vm1185_vm0, %v3939_v5, %v1182_v42  ;;  %v1219_v5 = vand.u32 2147483648, %v1177_v16  ;;  %vm1215_vm4 = vmor %vm1213_vm3, %vm1214_vm2  ;;  %vm1218_vm5 = vcmp.eq.f32.partialorder %v1217_v46, 8.507059e+37  ;;  %v6195_v16 = vld [vmem:[#allocation30_spill] sm:$0xff]  ;;  %v6205_v46 = vld [vmem:[#allocation64_spill] sm:$0xff] }
 0x1d1   :  { %v1210_v48 = vsub.f32 1.0, %v1209_v30  ;;  %v1191_v63 = vsel %vm1188_vm1, %v1190_v58, %v1186_v50  ;;  %1413 = vmatpush.bf16.msrb.mxu1 %v6188_v23  ;;  %1439 = vmatpush.bf16.msrb.mxu3 %v6189_v22  ;;  %v6193_v30 = vld [vmem:[#allocation27_spill] sm:$0xff]  ;;  %v6198_v50 = vld [vmem:[#allocation54_spill] sm:$0xff] }
 0x1d2   :  { %v1225_v52 = vmul.f32 %v3943_v17, %v1191_v63  ;;  %v6200_v17 = vld [vmem:[#allocation56_spill] sm:$0xff]  ;;  %v6201_v63 = vld [vmem:[#allocation57_spill] sm:$0xff] }
 0x1d3   :  { %v1211_v45 = vmul.f32 %v3941_v15, %v1210_v48  ;;  %v6199_v48 = vld [vmem:[#allocation68_spill] sm:$0xff] }
 0x1d4   :  { %v4928_v8 = vadd.f32 %v1225_v52, %v1224_v41  ;;  %v1220_v52 = vor.u32 1.1754944e-38, %v1219_v5  ;;  %v6202_v41 = vld [vmem:[#allocation58_spill] sm:$0xff]  ;;  %v6204_v5 = vld [vmem:[#allocation77_spill] sm:$0xff] }
 0x1d5   :  { %v1212_v36 = vadd.f32 %v3941_v15, %v1211_v45  ;;  %1414 = vmatpush.bf16.msrb.mxu1 %v6190_v51  ;;  %1440 = vmatpush.bf16.msrb.mxu3 %v6191_v14 }
 0x1d6   :  { %3944 = vtanh.f32 %v4928_v8 }
 0x1d7   :  { %v1216_v54 = vsel %vm1215_vm4, %v3941_v15, %v1212_v36  ;;  %v6197_v15 = vld [vmem:[#allocation63_spill] sm:$0xff] }
 0x1d8   :  { %1304 = vmatmul.bf16.vlgmr.msra.gmra.mxu1 %v1230_v44  ;;  %1330 = vmatmul.bf16.vlgmr.msra.gmra.mxu3 %v1230_v44  ;;  %v1221_v45 = vsel %vm1218_vm5, %v1220_v52, %v1216_v54  ;;  %v6196_v44 = vld [vmem:[#allocation32_spill] sm:$0xff]  ;;  %v6203_v36 = vld [vmem:[#allocation59_spill] sm:$0xff]  ;;  %v6206_v54 = vld [vmem:[#allocation66_spill] sm:$0xff] }
 0x1d9   :  { %1415 = vmatpush.bf16.msrb.mxu1 %v4380_v4  ;;  %1441 = vmatpush.bf16.msrb.mxu3 %v6192_v60  ;;  %v6207_v52 = vld [vmem:[#allocation81_spill] sm:$0xff] }
 0x1dc   :  { %v3945_v21 = vpop.eup %3944 }
 0x1dd   :  { %v1228_v42 = vmul.f32 %v3945_v21, %v1221_v45  ;;  %1416 = vmatpush.bf16.msrb.mxu1 %v6193_v30  ;;  %1442 = vmatpush.bf16.msrb.mxu3 %v6194_v62  ;;  %v6208_v21 = vld [vmem:[#allocation82_spill] sm:$0xff] }
 0x1de   :  { %v6209_v45 = vld [vmem:[#allocation70_spill] sm:$0xff] }
 0x1df   :  { %v1229_v58 = vpack.c.bf16 %v1228_v42, %v1228_v42  ;;  %v6210_v42 = vld [vmem:[#allocation72_spill] sm:$0xff] }
 0x1e1   :  { %1239 = vmatmul.bf16.vlgmr.msrb.gmra.mxu0 %v1229_v58  ;;  %1265 = vmatmul.bf16.vlgmr.msra.gmra.mxu2 %v1229_v58 }
 0x1e2   :  { %1398 = vmatpush.bf16.msrb.mxu0 %v4327_v27  ;;  %1417 = vmatpush.bf16.msrb.mxu1 %v6195_v16 }
 0x1e3   :  { %1424 = vmatpush.bf16.msra.mxu2 %v4325_v26  ;;  %1443 = vmatpush.bf16.msrb.mxu3 %v6196_v44 }
 0x1e6   :  { %1399 = vmatpush.bf16.msrb.mxu0 %v4344_v37  ;;  %1418 = vmatpush.bf16.msrb.mxu1 %v4432_v56 }
 0x1e7   :  { %1425 = vmatpush.bf16.msra.mxu2 %v4346_v38  ;;  %1444 = vmatpush.bf16.msrb.mxu3 %v4438_v59 }
 0x1e9   :  { %1419 = vmatmul.bf16.vlgmr.msrb.gmra.mxu1 %v1229_v58 }
 0x1ea   :  { %1532 = vmatpush.bf16.msra.mxu1 %v4461_v13  ;;  %1445 = vmatmul.bf16.vlgmr.msrb.gmra.mxu3 %v1229_v58 }
 0x1eb   :  { %1558 = vmatpush.bf16.msra.mxu3 %v4470_v19  ;;  %1400 = vmatpush.bf16.msrb.mxu0 %v6138_v12 }
 0x1ec   :  { %1426 = vmatpush.bf16.msra.mxu2 %v6139_v34 }
 0x1ee   :  { %1533 = vmatpush.bf16.msra.mxu1 %v4479_v31 }
 0x1ef   :  { %1559 = vmatpush.bf16.msra.mxu3 %v4481_v35  ;;  %1401 = vmatpush.bf16.msrb.mxu0 %v6142_v28 }
 0x1f0   :  { %1427 = vmatpush.bf16.msra.mxu2 %v6143_v7 }
 0x1f1   :  { %1291 = vmatmul.bf16.vlgmr.msra.gmra.mxu0 %v1229_v58  ;;  %1317 = vmatmul.bf16.vlgmr.msrb.gmra.mxu2 %v1229_v58 }
 0x1f2   :  { %1534 = vmatpush.bf16.msra.mxu1 %v4490_v49 }
 0x1f3   :  { %1560 = vmatpush.bf16.msra.mxu3 %v4494_v55  ;;  %1402 = vmatpush.bf16.msrb.mxu0 %v6146_v18 }
 0x1f4   :  { %1428 = vmatpush.bf16.msra.mxu2 %v6147_v32 }
 0x1f6   :  { %1535 = vmatpush.bf16.msra.mxu1 %v4500_v3 }
 0x1f7   :  { %1561 = vmatpush.bf16.msra.mxu3 %v4502_v6  ;;  %1403 = vmatpush.bf16.msrb.mxu0 %v6149_v53 }
 0x1f8   :  { %1429 = vmatpush.bf16.msra.mxu2 %v6150_v1 }
 0x1fa   :  { %1536 = vmatpush.bf16.msra.mxu1 %v4510_v24 }
 0x1fb   :  { %1562 = vmatpush.bf16.msra.mxu3 %v4515_v43  ;;  %1404 = vmatpush.bf16.msrb.mxu0 %v6152_v29 }
 0x1fc   :  { %1430 = vmatpush.bf16.msra.mxu2 %v6153_v40 }
 0x1fe   :  { %1537 = vmatpush.bf16.msra.mxu1 %v4525_v11  ;;  %v6247_v11 = vld [vmem:[#allocation47_spill] sm:$0xff] }
 0x1ff   :  { %1563 = vmatpush.bf16.msra.mxu3 %v4527_v10  ;;  %1405 = vmatpush.bf16.msrb.mxu0 %v6155_v9 }
 0x200   :  { %1431 = vmatpush.bf16.msra.mxu2 %v6156_v57 }
 0x202   :  { %1538 = vmatpush.bf16.msra.mxu1 %v4536_v61  ;;  %1406 = vmatmul.bf16.vlgmr.msrb.gmra.mxu0 %v1229_v58 }
 0x203   :  { %1519 = vmatpush.bf16.msra.mxu0 %v6157_v20  ;;  %1564 = vmatpush.bf16.msra.mxu3 %v6198_v50 }
 0x204   :  { %1545 = vmatpush.bf16.msrb.mxu2 %v6197_v15 }
 0x205   :  { %1432 = vmatmul.bf16.vlgmr.msra.gmra.mxu2 %v1229_v58  ;;  %v6211_v58 = vld [vmem:[#allocation87_spill] sm:$0xff] }
 0x206   :  { %1539 = vmatpush.bf16.msra.mxu1 %v6200_v17 }
 0x207   :  { %1520 = vmatpush.bf16.msra.mxu0 %v6199_v48  ;;  %1565 = vmatpush.bf16.msra.mxu3 %v6201_v63  ;;  %v6245_v48 = vld [vmem:[#allocation16_spill] sm:$0xff] }
 0x208   :  { %1546 = vmatpush.bf16.msrb.mxu2 %v6160_v2 }
 0x20a   :  { %1584 = vmatpush.bf16.msrb.mxu1 %v6202_v41  ;;  %v6212_v41 = vld [vmem:[#allocation88_spill] sm:$0xff] }
 0x20b   :  { %1610 = vmatpush.bf16.msrb.mxu3 %v6203_v36  ;;  %1521 = vmatpush.bf16.msra.mxu0 %v6161_v39  ;;  %v6213_v36 = vld [vmem:[#allocation78_spill] sm:$0xff]  ;;  %v6214_v39 = vld [vmem:[#allocation80_spill] sm:$0xff] }
 0x20c   :  { %1547 = vmatpush.bf16.msrb.mxu2 %v6204_v5  ;;  %v6215_v5 = vld [vmem:[#allocation92_spill] sm:$0xff] }
 0x20e   :  { %1585 = vmatpush.bf16.msrb.mxu1 %v6205_v46  ;;  %v6216_v46 = vld [vmem:[#allocation93_spill] sm:$0xff] }
 0x20f   :  { %1611 = vmatpush.bf16.msrb.mxu3 %v6206_v54  ;;  %1522 = vmatpush.bf16.msra.mxu0 %v6207_v52  ;;  %v6217_v54 = vld [vmem:[#allocation83_spill] sm:$0xff]  ;;  %v6218_v52 = vld [vmem:[#allocation84_spill] sm:$0xff] }
 0x210   :  { %1548 = vmatpush.bf16.msrb.mxu2 %v6208_v21  ;;  %v6219_v21 = vld [vmem:[#allocation97_spill] sm:$0xff] }
 0x212   :  { %1586 = vmatpush.bf16.msrb.mxu1 %v6209_v45  ;;  %v6220_v45 = vld [vmem:[#allocation99_spill] sm:$0xff] }
 0x213   :  { %1612 = vmatpush.bf16.msrb.mxu3 %v6210_v42  ;;  %1523 = vmatpush.bf16.msra.mxu0 %v6211_v58  ;;  %v6221_v42 = vld [vmem:[#allocation89_spill] sm:$0xff]  ;;  %v6222_v58 = vld [vmem:[#allocation90_spill] sm:$0xff] }
 0x214   :  { %1549 = vmatpush.bf16.msrb.mxu2 %v6212_v41  ;;  %v6223_v41 = vld [vmem:[#allocation103_spill] sm:$0xff] }
 0x216   :  { %1587 = vmatpush.bf16.msrb.mxu1 %v6213_v36  ;;  %v6224_v36 = vld [vmem:[#allocation104_spill] sm:$0xff] }
 0x217   :  { %1613 = vmatpush.bf16.msrb.mxu3 %v6214_v39  ;;  %1524 = vmatpush.bf16.msra.mxu0 %v6215_v5  ;;  %v6225_v39 = vld [vmem:[#allocation105_spill] sm:$0xff]  ;;  %v6226_v5 = vld [vmem:[#allocation94_spill] sm:$0xff] }
 0x218   :  { %1550 = vmatpush.bf16.msrb.mxu2 %v6216_v46  ;;  %v6227_v46 = vld [vmem:[#allocation106_spill] sm:$0xff] }
 0x21a   :  { %1588 = vmatpush.bf16.msrb.mxu1 %v6217_v54  ;;  %v6228_v54 = vld [vmem:[#allocation95_spill] sm:$0xff] }
 0x21b   :  { %1614 = vmatpush.bf16.msrb.mxu3 %v6218_v52  ;;  %1525 = vmatpush.bf16.msra.mxu0 %v6219_v21  ;;  %v6229_v52 = vld [vmem:[#allocation109_spill] sm:$0xff]  ;;  %v6230_v21 = vld [vmem:[#allocation100_spill] sm:$0xff] }
 0x21c   :  { %1551 = vmatpush.bf16.msrb.mxu2 %v6220_v45  ;;  %v6231_v45 = vld [vmem:[#allocation110_spill] sm:$0xff] }
 0x21e   :  { %1589 = vmatpush.bf16.msrb.mxu1 %v6221_v42  ;;  %v6232_v42 = vld [vmem:[#allocation102_spill] sm:$0xff] }
 0x21f   :  { %1615 = vmatpush.bf16.msrb.mxu3 %v6222_v58  ;;  %1526 = vmatpush.bf16.msra.mxu0 %v6223_v41  ;;  %v6233_v58 = vld [vmem:[#allocation111_spill] sm:$0xff]  ;;  %v6234_v41 = vld [vmem:[#allocation112_spill] sm:$0xff] }
 0x220   :  { %1552 = vmatpush.bf16.msrb.mxu2 %v6224_v36  ;;  %v6235_v36 = vld [vmem:[#allocation114_spill] sm:$0xff] }
 0x222   :  { %1590 = vmatpush.bf16.msrb.mxu1 %v6226_v5  ;;  %v6237_v5 = vld [vmem:[#allocation116_spill] sm:$0xff] }
 0x223   :  { %1571 = vmatpush.bf16.msrb.mxu0 %v6225_v39  ;;  %1616 = vmatpush.bf16.msrb.mxu3 %v6228_v54  ;;  %v6236_v39 = vld [vmem:[#allocation115_spill] sm:$0xff] }
 0x224   :  { %1597 = vmatpush.bf16.msra.mxu2 %v6227_v46  ;;  %v6238_v46 = vld [vmem:[#allocation117_spill] sm:$0xff]  ;;  %v6239_v54 = vld [vmem:[#allocation119_spill] sm:$0xff] }
 0x226   :  { %1591 = vmatpush.bf16.msrb.mxu1 %v6230_v21  ;;  %v6241_v21 = vld [vmem:[#allocation121_spill] sm:$0xff] }
 0x227   :  { %1572 = vmatpush.bf16.msrb.mxu0 %v6229_v52  ;;  %1617 = vmatpush.bf16.msrb.mxu3 %v6232_v42  ;;  %v6240_v52 = vld [vmem:[#allocation120_spill] sm:$0xff]  ;;  %v6243_v42 = vld [vmem:[#allocation123_spill] sm:$0xff] }
 0x228   :  { %1598 = vmatpush.bf16.msra.mxu2 %v6231_v45  ;;  %v6242_v45 = vld [vmem:[#allocation122_spill] sm:$0xff] }
 0x22b   :  { %1573 = vmatpush.bf16.msrb.mxu0 %v6233_v58  ;;  %v6244_v58 = vld [vmem:[#allocation124_spill] sm:$0xff] }
 0x22c   :  { %1599 = vmatpush.bf16.msra.mxu2 %v6234_v41 }
 0x22f   :  { %1574 = vmatpush.bf16.msrb.mxu0 %v6235_v36 }
 0x230   :  { %1600 = vmatpush.bf16.msra.mxu2 %v6236_v39 }
 0x233   :  { %1575 = vmatpush.bf16.msrb.mxu0 %v6237_v5 }
 0x234   :  { %1601 = vmatpush.bf16.msra.mxu2 %v6238_v46 }
 0x237   :  { %1576 = vmatpush.bf16.msrb.mxu0 %v6239_v54 }
 0x238   :  { %1602 = vmatpush.bf16.msra.mxu2 %v6240_v52 }
 0x23b   :  { %1577 = vmatpush.bf16.msrb.mxu0 %v6241_v21 }
 0x23c   :  { %1603 = vmatpush.bf16.msra.mxu2 %v6242_v45  ;;  %v6246_v45 = vld [vmem:[#allocation17_spill] sm:$0xff] }
 0x23f   :  { %1578 = vmatpush.bf16.msrb.mxu0 %v6243_v42 }
 0x240   :  { %1604 = vmatpush.bf16.msra.mxu2 %v6244_v58 }
 0x245   :  { %v1253_v41 = vpop.f32.mrf.mxu1 }
 0x24b   :  { %v1279_v36 = vpop.f32.mrf.mxu3 }
 0x24d   :  { %v1255_v63 = vpop.f32.mrf.mxu1 }
 0x253   :  { %v1281_v39 = vpop.f32.mrf.mxu3 }
 0x255   :  { %v1305_v17 = vpop.f32.mrf.mxu1 }
 0x25b   :  { %v1331_v5 = vpop.f32.mrf.mxu3 }
 0x25d   :  { %v1307_v2 = vpop.f32.mrf.mxu1 }
 0x25e   :  { %v1240_v46 = vpop.f32.mrf.mxu0 }
 0x25f   :  { %v1241_v54 = vadd.f32 %v1240_v46, %v6245_v48 }
 0x261   :  { %v1254_v50 = vadd.f32 %v1253_v41, %v1241_v54  ;;  %v6248_v41 = vld [vmem:[#allocation20_spill] sm:$0xff] }
 0x263   :  { %v3692_v52 = vmul.f32 -1.442695, %v1254_v50  ;;  %v1333_v61 = vpop.f32.mrf.mxu3 }
 0x264   :  { %v1266_v21 = vpop.f32.mrf.mxu2 }
 0x265   :  { %3946 = vpow2.f32 %v3692_v52  ;;  %v1267_v15 = vadd.f32 %v1266_v21, %v6246_v45 }
 0x266   :  { %v1242_v42 = vpop.f32.mrf.mxu0  ;;  %v1420_v20 = vpop.f32.mrf.mxu1 }
 0x267   :  { %v1280_v58 = vadd.f32 %v1279_v36, %v1267_v15  ;;  %v1451_v63 = vadd.f32 %v1420_v20, %v6247_v11  ;;  %v6249_v42 = vld [vmem:[#allocation21_spill] sm:$0xff] }
 0x269   :  { %v3693_v10 = vmul.f32 -1.442695, %v1280_v58  ;;  %v3696_v9 = vmul.f32 -1.442695, %v1451_v63 }
 0x26b   :  { %v3947_v39 = vpop.eup %3946  ;;  %3948 = vpow2.f32 %v3693_v10 }
 0x26c   :  { %v1344_v57 = vadd.f32 1.0, %v3947_v39  ;;  %v1268_v2 = vpop.f32.mrf.mxu2 }
 0x26d   :  { %v5024_v43 = vpop.f32.mrf.mxu3 }
 0x26e   :  { %3950 = vrcp.f32 %v1344_v57  ;;  %v1292_v50 = vpop.f32.mrf.mxu0  ;;  %v1422_v61 = vpop.f32.mrf.mxu1  ;;  %vm1352_vm7 = vweird.f32 %v1344_v57 }
 0x26f   :  { %v1293_v46 = vadd.f32 %v1292_v50, %v6248_v41  ;;  %3952 = vpow2.f32 %v3696_v9 }
 0x271   :  { %v3949_v54 = vpop.eup %3948  ;;  %v1306_v52 = vadd.f32 %v1305_v17, %v1293_v46 }
 0x272   :  { %v1345_v21 = vadd.f32 1.0, %v3949_v54  ;;  %v1358_v54 = vand.u32 2147483648, %v1344_v57 }
 0x273   :  { %v3694_v15 = vmul.f32 -1.442695, %v1306_v52 }
 0x274   :  { %v3951_v36 = vpop.eup %3950  ;;  %3954 = vrcp.f32 %v1345_v21  ;;  %v1318_v11 = vpop.f32.mrf.mxu2  ;;  %vm1367_vm10 = vweird.f32 %v1345_v21 }
 0x275   :  { %v1348_v20 = vmul.f32 %v3951_v36, %v1344_v57  ;;  %v1448_v10 = vpop.f32.mrf.mxu3  ;;  %3956 = vpow2.f32 %v3694_v15  ;;  %v1319_v58 = vadd.f32 %v1318_v11, %v6249_v42  ;;  %v3953_v39 = vpop.eup %3952  ;;  %vm1353_vm6 = vweird.f32 %v3951_v36 }
 0x276   :  { %v1294_v63 = vpop.f32.mrf.mxu0  ;;  %v5028_v50 = vadd.f32 1.0, %v3953_v39  ;;  %v1356_v15 = vand.u32 2147483647, %v1344_v57  ;;  %v1373_v11 = vand.u32 2147483648, %v1345_v21  ;;  %vm5031_vm9 = vmor %vm1352_vm7, %vm1353_vm6  ;;  %v6252_v39 = vld [vmem:[#allocation46_spill] sm:$0xff] }
 0x277   :  { %v1349_v2 = vsub.f32 1.0, %v1348_v20  ;;  %v1332_v45 = vadd.f32 %v1331_v5, %v1319_v58  ;;  %v1371_v20 = vand.u32 2147483647, %v1345_v21 }
 0x278   :  { %vm1357_vm11 = vcmp.eq.f32.partialorder %v1356_v15, 8.507059e+37  ;;  %v6253_v15 = vld [vmem:[#allocation73_spill] sm:$0xff]  ;;  %vm1486_vm3 = vweird.f32 %v5028_v50 }
 0x279   :  { %v1350_v61 = vmul.f32 %v3951_v36, %v1349_v2  ;;  %3958 = vtanh.f32 %v1332_v45  ;;  %vm1372_vm13 = vcmp.eq.f32.partialorder %v1371_v20, 8.507059e+37 }
 0x27a   :  { %v3955_v48 = vpop.eup %3954  ;;  %3960 = vrcp.f32 %v5028_v50 }
 0x27b   :  { %v1363_v9 = vmul.f32 %v3955_v48, %v1345_v21  ;;  %v1351_v17 = vadd.f32 %v3951_v36, %v1350_v61  ;;  %v3957_v46 = vpop.eup %3956  ;;  %vm1368_vm8 = vweird.f32 %v3955_v48  ;;  %v1359_v61 = vor.u32 1.1754944e-38, %v1358_v54 }
 0x27c   :  { %v1320_v52 = vpop.f32.mrf.mxu2  ;;  %v1346_v10 = vadd.f32 1.0, %v3957_v46  ;;  %vm1369_vm12 = vmor %vm1367_vm10, %vm1368_vm8 }
 0x27d   :  { %v1364_v41 = vsub.f32 1.0, %v1363_v9  ;;  %v1355_v45 = vsel %vm5031_vm9, %v3951_v36, %v1351_v17  ;;  %v1374_v52 = vor.u32 1.1754944e-38, %v1373_v11 }
 0x27e   :  { %3962 = vrcp.f32 %v1346_v10  ;;  %v1360_v42 = vsel %vm1357_vm11, %v1359_v61, %v1355_v45  ;;  %vm1382_vm15 = vweird.f32 %v1346_v10 }
 0x27f   :  { %v1407_v58 = vpop.f32.mrf.mxu0  ;;  %v1365_v63 = vmul.f32 %v3955_v48, %v1364_v41  ;;  %v3959_v46 = vpop.eup %3958 }
 0x280   :  { %v1450_v2 = vadd.f32 %v1407_v58, %v6252_v39  ;;  %v5039_v41 = vpop.eup %3960  ;;  %v1394_v17 = vmul.f32 %v3959_v46, %v1360_v42  ;;  %v1386_v42 = vand.u32 2147483647, %v1346_v10 }
 0x281   :  { %v1366_v57 = vadd.f32 %v3955_v48, %v1365_v63  ;;  %v1482_v39 = vmul.f32 %v5039_v41, %v5028_v50  ;;  %vm1487_vm2 = vweird.f32 %v5039_v41 }
 0x282   :  { %v3695_v9 = vmul.f32 -1.442695, %v1450_v2  ;;  %vm1387_vm1 = vcmp.eq.f32.partialorder %v1386_v42, 8.507059e+37  ;;  %vm5056_vm4 = vmor %vm1486_vm3, %vm1487_vm2 }
 0x283   :  { %v1370_v24 = vsel %vm1369_vm12, %v3955_v48, %v1366_v57 }
 0x284   :  { %3964 = vpow2.f32 %v3695_v9  ;;  %v1375_v40 = vsel %vm1372_vm13, %v1374_v52, %v1370_v24  ;;  %v3963_v5 = vpop.eup %3962 }
 0x285   :  { %v1393_v36 = vmul.f32 %v1375_v40, %v4900_v0  ;;  %v1378_v21 = vmul.f32 %v3963_v5, %v1346_v10  ;;  %v1388_v40 = vand.u32 2147483648, %v1346_v10  ;;  %v1483_v0 = vsub.f32 1.0, %v1482_v39 }
 0x286   :  { %vm1383_vm14 = vweird.f32 %v3963_v5 }
 0x287   :  { %v1409_v63 = vpop.f32.mrf.mxu0  ;;  %v5045_v11 = vadd.f32 %v1394_v17, %v1393_v36  ;;  %v1379_v48 = vsub.f32 1.0, %v1378_v21  ;;  %vm1384_vm0 = vmor %vm1382_vm15, %vm1383_vm14  ;;  %v1389_v9 = vor.u32 1.1754944e-38, %v1388_v40  ;;  %v1484_v52 = vmul.f32 %v5039_v41, %v1483_v0 }
 0x288   :  { %v1433_v54 = vpop.f32.mrf.mxu2  ;;  %v6254_v63 = vld [vmem:[#allocation52_spill] sm:$0xff] }
 0x289   :  { %v1452_v58 = vadd.f32 %v1433_v54, %v6253_v15  ;;  %3966 = vtanh.f32 %v5045_v11  ;;  %v1380_v2 = vmul.f32 %v3963_v5, %v1379_v48  ;;  %v1453_v39 = vadd.f32 %v5024_v43, %v6254_v63 }
 0x28a   :  { %v3965_v45 = vpop.eup %3964  ;;  %v1485_v48 = vadd.f32 %v5039_v41, %v1484_v52 }
 0x28b   :  { %v3697_v20 = vmul.f32 -1.442695, %v1452_v58  ;;  %v1463_v24 = vadd.f32 1.0, %v3965_v45  ;;  %v1381_v57 = vadd.f32 %v3963_v5, %v1380_v2 }
 0x28c   :  { %v1489_v0 = vsel %vm5056_vm4, %v5039_v41, %v1485_v48  ;;  %v6257_v41 = vld [vmem:[#allocation15_spill] sm:$0xff] }
 0x28d   :  { %3968 = vpow2.f32 %v3697_v20  ;;  %v1385_v36 = vsel %vm1384_vm0, %v3963_v5, %v1381_v57  ;;  %v1492_v20 = vand.u32 2147483648, %v5028_v50  ;;  %v1490_v5 = vand.u32 2147483647, %v5028_v50 }
 0x28e   :  { %3970 = vrcp.f32 %v1463_v24  ;;  %v1390_v54 = vsel %vm1387_vm1, %v1389_v9, %v1385_v36  ;;  %v1477_v43 = vand.u32 2147483648, %v1463_v24  ;;  %vm1471_vm7 = vweird.f32 %v1463_v24 }
 0x28f   :  { %v3967_v46 = vpop.eup %3966  ;;  %v1493_v50 = vor.u32 1.1754944e-38, %v1492_v20  ;;  %vm1491_vm6 = vcmp.eq.f32.partialorder %v1490_v5, 8.507059e+37 }
 0x290   :  { %v1435_v61 = vpop.f32.mrf.mxu2  ;;  %v1397_v15 = vmul.f32 %v3967_v46, %v1390_v54  ;;  %v1478_v52 = vor.u32 1.1754944e-38, %v1477_v43 }
 0x291   :  { %v1475_v61 = vand.u32 2147483647, %v1463_v24  ;;  %v1494_v46 = vsel %vm1491_vm6, %v1493_v50, %v1489_v0  ;;  %v6261_v50 = vld [vmem:[#allocation33_spill] sm:$0xff] }
 0x292   :  { %v1518_v45 = vpack.c.bf16 %v1397_v15, %v1397_v15 }
 0x293   :  { %v3969_v17 = vpop.eup %3968  ;;  %vm1476_vm9 = vcmp.eq.f32.partialorder %v1475_v61, 8.507059e+37  ;;  %v6260_v61 = vld [vmem:[#allocation45_spill] sm:$0xff] }
 0x294   :  { %v1465_v21 = vadd.f32 1.0, %v3969_v17  ;;  %v3971_v58 = vpop.eup %3970  ;;  %1540 = vmatmul.bf16.vlgmr.msra.gmra.mxu1 %v1518_v45  ;;  %1566 = vmatmul.bf16.vlgmr.msra.gmra.mxu3 %v1518_v45 }
 0x295   :  { %v1467_v10 = vmul.f32 %v3971_v58, %v1463_v24  ;;  %vm1472_vm5 = vweird.f32 %v3971_v58  ;;  %1699 = vmatpush.bf16.msra.mxu1 %v6182_v25  ;;  %1725 = vmatpush.bf16.msra.mxu3 %v6183_v47 }
 0x296   :  { %3972 = vrcp.f32 %v1465_v21  ;;  %vm1473_vm8 = vmor %vm1471_vm7, %vm1472_vm5  ;;  %vm1501_vm11 = vweird.f32 %v1465_v21  ;;  %v1505_v5 = vand.u32 2147483647, %v1465_v21 }
 0x297   :  { %v1468_v2 = vsub.f32 1.0, %v1467_v10  ;;  %3974 = vtanh.f32 %v1453_v39  ;;  %v1512_v39 = vmul.f32 %v1494_v46, %v4928_v8  ;;  %v6264_v46 = vld [vmem:[#allocation49_spill] sm:$0xff] }
 0x298   :  { %vm1506_vm13 = vcmp.eq.f32.partialorder %v1505_v5, 8.507059e+37  ;;  %v6276_v5 = vld [vmem:[#allocation77_spill] sm:$0xff] }
 0x299   :  { %v1469_v42 = vmul.f32 %v3971_v58, %v1468_v2  ;;  %1700 = vmatpush.bf16.msra.mxu1 %v6186_v33  ;;  %1726 = vmatpush.bf16.msra.mxu3 %v6257_v41 }
 0x29b   :  { %v1470_v9 = vadd.f32 %v3971_v58, %v1469_v42 }
 0x29c   :  { %v3973_v57 = vpop.eup %3972 }
 0x29d   :  { %v1497_v36 = vmul.f32 %v3973_v57, %v1465_v21  ;;  %v1474_v17 = vsel %vm1473_vm8, %v3971_v58, %v1470_v9  ;;  %v3975_v54 = vpop.eup %3974  ;;  %1701 = vmatpush.bf16.msra.mxu1 %v6188_v23  ;;  %1727 = vmatpush.bf16.msra.mxu3 %v6189_v22  ;;  %vm1502_vm10 = vweird.f32 %v3973_v57  ;;  %v1507_v58 = vand.u32 2147483648, %v1465_v21  ;;  %v6258_v21 = vld [vmem:[#allocation34_spill] sm:$0xff]  ;;  %v6263_v9 = vld [vmem:[#allocation48_spill] sm:$0xff] }
 0x29e   :  { %v1479_v15 = vsel %vm1476_vm9, %v1478_v52, %v1474_v17  ;;  %vm1503_vm12 = vmor %vm1501_vm11, %vm1502_vm10  ;;  %v6265_v52 = vld [vmem:[#allocation62_spill] sm:$0xff]  ;;  %v6267_v17 = vld [vmem:[#allocation51_spill] sm:$0xff] }
 0x29f   :  { %v1498_v63 = vsub.f32 1.0, %v1497_v36  ;;  %v1513_v48 = vmul.f32 %v3975_v54, %v1479_v15  ;;  %v1508_v2 = vor.u32 1.1754944e-38, %v1507_v58  ;;  %v6266_v36 = vld [vmem:[#allocation63_spill] sm:$0xff]  ;;  %v6268_v54 = vld [vmem:[#allocation54_spill] sm:$0xff]  ;;  %v6269_v15 = vld [vmem:[#allocation68_spill] sm:$0xff] }
 0x2a0   :  { %v6275_v58 = vld [vmem:[#allocation74_spill] sm:$0xff] }
 0x2a1   :  { %v1499_v10 = vmul.f32 %v3973_v57, %v1498_v63  ;;  %v5068_v20 = vadd.f32 %v1513_v48, %v1512_v39  ;;  %1702 = vmatpush.bf16.msra.mxu1 %v6190_v51  ;;  %1728 = vmatpush.bf16.msra.mxu3 %v6191_v14  ;;  %v6270_v63 = vld [vmem:[#allocation69_spill] sm:$0xff]  ;;  %v6271_v39 = vld [vmem:[#allocation56_spill] sm:$0xff] }
 0x2a2   :  { %v6272_v48 = vld [vmem:[#allocation57_spill] sm:$0xff] }
 0x2a3   :  { %v1500_v24 = vadd.f32 %v3973_v57, %v1499_v10  ;;  %3976 = vtanh.f32 %v5068_v20  ;;  %v6273_v10 = vld [vmem:[#allocation58_spill] sm:$0xff] }
 0x2a4   :  { %1592 = vmatmul.bf16.vlgmr.msrb.gmra.mxu1 %v1518_v45  ;;  %1618 = vmatmul.bf16.vlgmr.msrb.gmra.mxu3 %v1518_v45  ;;  %v6259_v45 = vld [vmem:[#allocation43_spill] sm:$0xff] }
 0x2a5   :  { %v1504_v8 = vsel %vm1503_vm12, %v3973_v57, %v1500_v24  ;;  %1703 = vmatpush.bf16.msra.mxu1 %v4380_v4  ;;  %1729 = vmatpush.bf16.msra.mxu3 %v6192_v60  ;;  %v6262_v57 = vld [vmem:[#allocation35_spill] sm:$0xff] }
 0x2a6   :  { %v1509_v43 = vsel %vm1506_vm13, %v1508_v2, %v1504_v8  ;;  %v6274_v24 = vld [vmem:[#allocation59_spill] sm:$0xff]  ;;  %v6277_v8 = vld [vmem:[#allocation64_spill] sm:$0xff]  ;;  %v6278_v2 = vld [vmem:[#allocation66_spill] sm:$0xff] }
 0x2a9   :  { %v3977_v40 = vpop.eup %3976  ;;  %1704 = vmatpush.bf16.msra.mxu1 %v6193_v30  ;;  %1730 = vmatpush.bf16.msra.mxu3 %v6194_v62 }
 0x2aa   :  { %v1516_v0 = vmul.f32 %v3977_v40, %v1509_v43  ;;  %v6279_v40 = vld [vmem:[#allocation81_spill] sm:$0xff]  ;;  %v6280_v43 = vld [vmem:[#allocation82_spill] sm:$0xff] }
 0x2ac   :  { %v1517_v42 = vpack.c.bf16 %v1516_v0, %v1516_v0  ;;  %v6281_v0 = vld [vmem:[#allocation70_spill] sm:$0xff] }
 0x2ad   :  { %1705 = vmatpush.bf16.msra.mxu1 %v6195_v16  ;;  %1731 = vmatpush.bf16.msra.mxu3 %v6196_v44 }
 0x2ae   :  { %1527 = vmatmul.bf16.vlgmr.msra.gmra.mxu0 %v1517_v42  ;;  %1553 = vmatmul.bf16.vlgmr.msrb.gmra.mxu2 %v1517_v42 }
 0x2af   :  { %1686 = vmatpush.bf16.msra.mxu0 %v4327_v27  ;;  %1712 = vmatpush.bf16.msrb.mxu2 %v4325_v26 }
 0x2b1   :  { %1706 = vmatpush.bf16.msra.mxu1 %v4432_v56  ;;  %1732 = vmatpush.bf16.msra.mxu3 %v4438_v59 }
 0x2b3   :  { %1687 = vmatpush.bf16.msra.mxu0 %v4344_v37  ;;  %1713 = vmatpush.bf16.msrb.mxu2 %v4346_v38 }
 0x2b4   :  { %1707 = vmatmul.bf16.vlgmr.msra.gmra.mxu1 %v1517_v42  ;;  %1733 = vmatmul.bf16.vlgmr.msra.gmra.mxu3 %v1517_v42 }
 0x2b5   :  { %1820 = vmatpush.bf16.msrb.mxu1 %v4461_v13  ;;  %1846 = vmatpush.bf16.msrb.mxu3 %v4470_v19 }
 0x2b7   :  { %1688 = vmatpush.bf16.msra.mxu0 %v6138_v12  ;;  %1714 = vmatpush.bf16.msrb.mxu2 %v6139_v34 }
 0x2b9   :  { %1821 = vmatpush.bf16.msrb.mxu1 %v4479_v31  ;;  %1847 = vmatpush.bf16.msrb.mxu3 %v4481_v35 }
 0x2bb   :  { %1689 = vmatpush.bf16.msra.mxu0 %v6142_v28  ;;  %1715 = vmatpush.bf16.msrb.mxu2 %v6143_v7 }
 0x2bd   :  { %1822 = vmatpush.bf16.msrb.mxu1 %v4490_v49  ;;  %1848 = vmatpush.bf16.msrb.mxu3 %v4494_v55 }
 0x2be   :  { %1579 = vmatmul.bf16.vlgmr.msrb.gmra.mxu0 %v1517_v42  ;;  %1605 = vmatmul.bf16.vlgmr.msra.gmra.mxu2 %v1517_v42 }
 0x2bf   :  { %1690 = vmatpush.bf16.msra.mxu0 %v6146_v18  ;;  %1716 = vmatpush.bf16.msrb.mxu2 %v6147_v32 }
 0x2c1   :  { %1823 = vmatpush.bf16.msrb.mxu1 %v4500_v3  ;;  %1849 = vmatpush.bf16.msrb.mxu3 %v4502_v6 }
 0x2c3   :  { %1691 = vmatpush.bf16.msra.mxu0 %v6149_v53  ;;  %1717 = vmatpush.bf16.msrb.mxu2 %v6150_v1  ;;  %v6328_v1 = vld [vmem:[#allocation85_spill] sm:$0xff] }
 0x2c5   :  { %1824 = vmatpush.bf16.msrb.mxu1 %v6259_v45  ;;  %1850 = vmatpush.bf16.msrb.mxu3 %v6260_v61  ;;  %v6327_v45 = vld [vmem:[#allocation71_spill] sm:$0xff] }
 0x2c6   :  { %v195_v53 = vadd.f32 %v6328_v1, %v6327_v45  ;;  %v6358_v45 = vld [vmem:[#allocation72_spill] sm:$0xff] }
 0x2c7   :  { %1692 = vmatpush.bf16.msra.mxu0 %v6152_v29  ;;  %1718 = vmatpush.bf16.msrb.mxu2 %v6258_v21 }
 0x2c9   :  { %1825 = vmatpush.bf16.msrb.mxu1 %v6263_v9  ;;  %1851 = vmatpush.bf16.msrb.mxu3 %v6264_v46 }
 0x2cb   :  { %1693 = vmatpush.bf16.msra.mxu0 %v6261_v50  ;;  %1719 = vmatpush.bf16.msrb.mxu2 %v6262_v57  ;;  %v6319_v57 = vld [vmem:[#allocation44_spill] sm:$0xff] }
 0x2cd   :  { %1826 = vmatpush.bf16.msrb.mxu1 %v6267_v17  ;;  %1852 = vmatpush.bf16.msrb.mxu3 %v6268_v54 }
 0x2ce   :  { %1694 = vmatmul.bf16.vlgmr.msra.gmra.mxu0 %v1517_v42  ;;  %1720 = vmatmul.bf16.vlgmr.msrb.gmra.mxu2 %v1517_v42  ;;  %v6282_v42 = vld [vmem:[#allocation72_spill] sm:$0xff] }
 0x2cf   :  { %1807 = vmatpush.bf16.msrb.mxu0 %v6265_v52  ;;  %1833 = vmatpush.bf16.msra.mxu2 %v6266_v36 }
 0x2d1   :  { %1827 = vmatpush.bf16.msrb.mxu1 %v6271_v39  ;;  %1853 = vmatpush.bf16.msrb.mxu3 %v6272_v48  ;;  %v6283_v48 = vld [vmem:[#allocation87_spill] sm:$0xff] }
 0x2d3   :  { %1808 = vmatpush.bf16.msrb.mxu0 %v6269_v15  ;;  %1834 = vmatpush.bf16.msra.mxu2 %v6270_v63 }
 0x2d5   :  { %1872 = vmatpush.bf16.msra.mxu1 %v6273_v10  ;;  %1898 = vmatpush.bf16.msra.mxu3 %v6274_v24  ;;  %v6284_v10 = vld [vmem:[#allocation88_spill] sm:$0xff]  ;;  %v6285_v24 = vld [vmem:[#allocation78_spill] sm:$0xff] }
 0x2d7   :  { %1809 = vmatpush.bf16.msrb.mxu0 %v6275_v58  ;;  %1835 = vmatpush.bf16.msra.mxu2 %v6276_v5  ;;  %v6286_v58 = vld [vmem:[#allocation80_spill] sm:$0xff] }
 0x2d8   :  { %v6287_v5 = vld [vmem:[#allocation92_spill] sm:$0xff] }
 0x2d9   :  { %1873 = vmatpush.bf16.msra.mxu1 %v6277_v8  ;;  %1899 = vmatpush.bf16.msra.mxu3 %v6278_v2  ;;  %v6288_v8 = vld [vmem:[#allocation93_spill] sm:$0xff]  ;;  %v6289_v2 = vld [vmem:[#allocation83_spill] sm:$0xff] }
 0x2db   :  { %1810 = vmatpush.bf16.msrb.mxu0 %v6279_v40  ;;  %1836 = vmatpush.bf16.msra.mxu2 %v6280_v43  ;;  %v6290_v40 = vld [vmem:[#allocation84_spill] sm:$0xff]  ;;  %v6291_v43 = vld [vmem:[#allocation97_spill] sm:$0xff] }
 0x2dd   :  { %1874 = vmatpush.bf16.msra.mxu1 %v6281_v0  ;;  %1900 = vmatpush.bf16.msra.mxu3 %v6282_v42  ;;  %v6292_v0 = vld [vmem:[#allocation99_spill] sm:$0xff]  ;;  %v6293_v42 = vld [vmem:[#allocation89_spill] sm:$0xff] }
 0x2df   :  { %1811 = vmatpush.bf16.msrb.mxu0 %v6283_v48  ;;  %1837 = vmatpush.bf16.msra.mxu2 %v6284_v10  ;;  %v6294_v48 = vld [vmem:[#allocation90_spill] sm:$0xff]  ;;  %v6295_v10 = vld [vmem:[#allocation103_spill] sm:$0xff] }
 0x2e1   :  { %1875 = vmatpush.bf16.msra.mxu1 %v6285_v24  ;;  %1901 = vmatpush.bf16.msra.mxu3 %v6286_v58  ;;  %v6296_v24 = vld [vmem:[#allocation104_spill] sm:$0xff]  ;;  %v6297_v58 = vld [vmem:[#allocation105_spill] sm:$0xff] }
 0x2e3   :  { %1812 = vmatpush.bf16.msrb.mxu0 %v6287_v5  ;;  %1838 = vmatpush.bf16.msra.mxu2 %v6288_v8  ;;  %v6298_v5 = vld [vmem:[#allocation106_spill] sm:$0xff] }
 0x2e4   :  { %v6299_v8 = vld [vmem:[#allocation94_spill] sm:$0xff] }
 0x2e5   :  { %1876 = vmatpush.bf16.msra.mxu1 %v6289_v2  ;;  %1902 = vmatpush.bf16.msra.mxu3 %v6290_v40  ;;  %v6300_v2 = vld [vmem:[#allocation95_spill] sm:$0xff]  ;;  %v6301_v40 = vld [vmem:[#allocation109_spill] sm:$0xff] }
 0x2e7   :  { %1813 = vmatpush.bf16.msrb.mxu0 %v6291_v43  ;;  %1839 = vmatpush.bf16.msra.mxu2 %v6292_v0  ;;  %v6302_v43 = vld [vmem:[#allocation110_spill] sm:$0xff]  ;;  %v6303_v0 = vld [vmem:[#allocation100_spill] sm:$0xff] }
 0x2e9   :  { %1877 = vmatpush.bf16.msra.mxu1 %v6293_v42  ;;  %1903 = vmatpush.bf16.msra.mxu3 %v6294_v48  ;;  %v6304_v42 = vld [vmem:[#allocation102_spill] sm:$0xff]  ;;  %v6305_v48 = vld [vmem:[#allocation111_spill] sm:$0xff] }
 0x2eb   :  { %1814 = vmatpush.bf16.msrb.mxu0 %v6295_v10  ;;  %1840 = vmatpush.bf16.msra.mxu2 %v6296_v24  ;;  %v6306_v10 = vld [vmem:[#allocation112_spill] sm:$0xff]  ;;  %v6307_v24 = vld [vmem:[#allocation114_spill] sm:$0xff] }
 0x2ed   :  { %1878 = vmatpush.bf16.msra.mxu1 %v6299_v8  ;;  %1904 = vmatpush.bf16.msra.mxu3 %v6300_v2  ;;  %v6310_v8 = vld [vmem:[#allocation117_spill] sm:$0xff]  ;;  %v6311_v2 = vld [vmem:[#allocation119_spill] sm:$0xff] }
 0x2ef   :  { %1859 = vmatpush.bf16.msra.mxu0 %v6297_v58  ;;  %1885 = vmatpush.bf16.msrb.mxu2 %v6298_v5  ;;  %v6308_v58 = vld [vmem:[#allocation115_spill] sm:$0xff]  ;;  %v6309_v5 = vld [vmem:[#allocation116_spill] sm:$0xff] }
 0x2f1   :  { %1879 = vmatpush.bf16.msra.mxu1 %v6303_v0  ;;  %1905 = vmatpush.bf16.msra.mxu3 %v6304_v42  ;;  %v6314_v0 = vld [vmem:[#allocation122_spill] sm:$0xff]  ;;  %v6315_v42 = vld [vmem:[#allocation123_spill] sm:$0xff] }
 0x2f3   :  { %1860 = vmatpush.bf16.msra.mxu0 %v6301_v40  ;;  %1886 = vmatpush.bf16.msrb.mxu2 %v6302_v43  ;;  %v6312_v40 = vld [vmem:[#allocation120_spill] sm:$0xff]  ;;  %v6313_v43 = vld [vmem:[#allocation121_spill] sm:$0xff] }
 0x2f7   :  { %1861 = vmatpush.bf16.msra.mxu0 %v6305_v48  ;;  %1887 = vmatpush.bf16.msrb.mxu2 %v6306_v10  ;;  %v6316_v48 = vld [vmem:[#allocation124_spill] sm:$0xff] }
 0x2fb   :  { %1862 = vmatpush.bf16.msra.mxu0 %v6307_v24  ;;  %1888 = vmatpush.bf16.msrb.mxu2 %v6308_v58 }
 0x2ff   :  { %1863 = vmatpush.bf16.msra.mxu0 %v6309_v5  ;;  %1889 = vmatpush.bf16.msrb.mxu2 %v6310_v8  ;;  %v6317_v8 = vld [vmem:[#allocation16_spill] sm:$0xff] }
 0x303   :  { %1864 = vmatpush.bf16.msra.mxu0 %v6311_v2  ;;  %1890 = vmatpush.bf16.msrb.mxu2 %v6312_v40 }
 0x307   :  { %1865 = vmatpush.bf16.msra.mxu0 %v6313_v43  ;;  %1891 = vmatpush.bf16.msrb.mxu2 %v6314_v0  ;;  %v6318_v43 = vld [vmem:[#allocation17_spill] sm:$0xff] }
 0x30b   :  { %1866 = vmatpush.bf16.msra.mxu0 %v6315_v42  ;;  %1892 = vmatpush.bf16.msrb.mxu2 %v6316_v48  ;;  %v6320_v48 = vld [vmem:[#allocation55_spill] sm:$0xff] }
 0x30c   :  { %v166_v50 = vadd.f32 %v6320_v48, %v6319_v57 }
 0x311   :  { %v1541_v10 = vpop.f32.mrf.mxu1 }
 0x317   :  { %v1567_v24 = vpop.f32.mrf.mxu3 }
 0x319   :  { %v1543_v63 = vpop.f32.mrf.mxu1 }
 0x31f   :  { %v1569_v58 = vpop.f32.mrf.mxu3 }
 0x321   :  { %v1593_v39 = vpop.f32.mrf.mxu1 }
 0x327   :  { %v1619_v5 = vpop.f32.mrf.mxu3 }
 0x329   :  { %v1595_v2 = vpop.f32.mrf.mxu1 }
 0x32b   :  { %v1528_v15 = vpop.f32.mrf.mxu0 }
 0x32c   :  { %v1529_v54 = vadd.f32 %v1528_v15, %v6317_v8 }
 0x32e   :  { %v1542_v36 = vadd.f32 %v1541_v10, %v1529_v54  ;;  %v6321_v10 = vld [vmem:[#allocation20_spill] sm:$0xff] }
 0x32f   :  { %v1621_v52 = vpop.f32.mrf.mxu3 }
 0x330   :  { %v3698_v40 = vmul.f32 -1.442695, %v1542_v36 }
 0x331   :  { %v1554_v17 = vpop.f32.mrf.mxu2  ;;  %v1708_v63 = vpop.f32.mrf.mxu1 }
 0x332   :  { %3978 = vpow2.f32 %v3698_v40  ;;  %v1555_v0 = vadd.f32 %v1554_v17, %v6318_v43  ;;  %v1739_v9 = vadd.f32 %v1708_v63, %v166_v50 }
 0x333   :  { %v1530_v42 = vpop.f32.mrf.mxu0 }
 0x334   :  { %v1568_v46 = vadd.f32 %v1567_v24, %v1555_v0  ;;  %v3702_v15 = vmul.f32 -1.442695, %v1739_v9 }
 0x336   :  { %v3699_v58 = vmul.f32 -1.442695, %v1568_v46 }
 0x337   :  { %v5167_v36 = vpop.f32.mrf.mxu3 }
 0x338   :  { %v3979_v21 = vpop.eup %3978  ;;  %3980 = vpow2.f32 %v3699_v58 }
 0x339   :  { %v1632_v29 = vadd.f32 1.0, %v3979_v21  ;;  %v1556_v2 = vpop.f32.mrf.mxu2  ;;  %v1710_v52 = vpop.f32.mrf.mxu1  ;;  %v6322_v21 = vld [vmem:[#allocation21_spill] sm:$0xff] }
 0x33b   :  { %3982 = vrcp.f32 %v1632_v29  ;;  %v1580_v54 = vpop.f32.mrf.mxu0  ;;  %vm1640_vm15 = vweird.f32 %v1632_v29 }
 0x33c   :  { %v1581_v17 = vadd.f32 %v1580_v54, %v6321_v10  ;;  %3984 = vpow2.f32 %v3702_v15 }
 0x33e   :  { %v3981_v40 = vpop.eup %3980  ;;  %v1594_v42 = vadd.f32 %v1593_v39, %v1581_v17 }
 0x33f   :  { %v1633_v48 = vadd.f32 1.0, %v3981_v40  ;;  %v1736_v58 = vpop.f32.mrf.mxu3  ;;  %v6323_v40 = vld [vmem:[#allocation36_spill] sm:$0xff] }
 0x340   :  { %v3700_v24 = vmul.f32 -1.442695, %v1594_v42  ;;  %v6324_v42 = vld [vmem:[#allocation53_spill] sm:$0xff] }
 0x341   :  { %v3983_v0 = vpop.eup %3982  ;;  %3986 = vrcp.f32 %v1633_v48  ;;  %v1606_v50 = vpop.f32.mrf.mxu2  ;;  %v137_v10 = vadd.f32 %v6324_v42, %v6323_v40  ;;  %vm1655_vm2 = vweird.f32 %v1633_v48 }
 0x342   :  { %v1636_v46 = vmul.f32 %v3983_v0, %v1632_v29  ;;  %3988 = vpow2.f32 %v3700_v24  ;;  %v1607_v9 = vadd.f32 %v1606_v50, %v6322_v21  ;;  %v3985_v63 = vpop.eup %3984  ;;  %vm1641_vm14 = vweird.f32 %v3983_v0 }
 0x343   :  { %v1582_v2 = vpop.f32.mrf.mxu0  ;;  %v5171_v8 = vadd.f32 1.0, %v3985_v63  ;;  %v1646_v24 = vand.u32 2147483648, %v1632_v29  ;;  %vm5176_vm0 = vmor %vm1640_vm15, %vm1641_vm14 }
 0x344   :  { %v1637_v57 = vsub.f32 1.0, %v1636_v46  ;;  %v1620_v43 = vadd.f32 %v1619_v5, %v1607_v9  ;;  %v1644_v5 = vand.u32 2147483647, %v1632_v29  ;;  %v1661_v46 = vand.u32 2147483648, %v1633_v48 }
 0x345   :  { %v1659_v9 = vand.u32 2147483647, %v1633_v48  ;;  %vm1774_vm11 = vweird.f32 %v5171_v8 }
 0x346   :  { %v1638_v15 = vmul.f32 %v3983_v0, %v1637_v57  ;;  %3990 = vtanh.f32 %v1620_v43  ;;  %vm1645_vm3 = vcmp.eq.f32.partialorder %v1644_v5, 8.507059e+37  ;;  %v1662_v42 = vor.u32 1.1754944e-38, %v1661_v46 }
 0x347   :  { %v3987_v54 = vpop.eup %3986  ;;  %3992 = vrcp.f32 %v5171_v8  ;;  %vm1660_vm5 = vcmp.eq.f32.partialorder %v1659_v9, 8.507059e+37 }
 0x348   :  { %v3989_v52 = vpop.eup %3988  ;;  %v1651_v39 = vmul.f32 %v3987_v54, %v1633_v48  ;;  %v1639_v17 = vadd.f32 %v3983_v0, %v1638_v15  ;;  %vm1656_vm1 = vweird.f32 %v3987_v54  ;;  %v1647_v15 = vor.u32 1.1754944e-38, %v1646_v24 }
 0x349   :  { %v1634_v61 = vadd.f32 1.0, %v3989_v52  ;;  %v1608_v50 = vpop.f32.mrf.mxu2  ;;  %vm1657_vm4 = vmor %vm1655_vm2, %vm1656_vm1 }
 0x34a   :  { %v1652_v21 = vsub.f32 1.0, %v1651_v39  ;;  %v1643_v2 = vsel %vm5176_vm0, %v3983_v0, %v1639_v17 }
 0x34b   :  { %3994 = vrcp.f32 %v1634_v61  ;;  %v1695_v63 = vpop.f32.mrf.mxu0  ;;  %v1648_v50 = vsel %vm1645_vm3, %v1647_v15, %v1643_v2  ;;  %v1676_v1 = vand.u32 2147483648, %v1634_v61  ;;  %v1674_v15 = vand.u32 2147483647, %v1634_v61 }
 0x34c   :  { %v1653_v58 = vmul.f32 %v3987_v54, %v1652_v21  ;;  %v1738_v43 = vadd.f32 %v1695_v63, %v137_v10  ;;  %v3991_v29 = vpop.eup %3990  ;;  %vm1670_vm7 = vweird.f32 %v1634_v61 }
 0x34d   :  { %v5182_v40 = vpop.eup %3992  ;;  %v1682_v24 = vmul.f32 %v3991_v29, %v1648_v50  ;;  %v1677_v29 = vor.u32 1.1754944e-38, %v1676_v1  ;;  %vm1675_vm9 = vcmp.eq.f32.partialorder %v1674_v15, 8.507059e+37  ;;  %v1780_v1 = vand.u32 2147483648, %v5171_v8 }
 0x34e   :  { %v1654_v52 = vadd.f32 %v3987_v54, %v1653_v58  ;;  %v3701_v39 = vmul.f32 -1.442695, %v1738_v43  ;;  %v1770_v46 = vmul.f32 %v5182_v40, %v5171_v8  ;;  %vm1775_vm10 = vweird.f32 %v5182_v40 }
 0x34f   :  { %vm1776_vm12 = vmor %vm1774_vm11, %vm1775_vm10 }
 0x350   :  { %v1658_v21 = vsel %vm1657_vm4, %v3987_v54, %v1654_v52  ;;  %3996 = vpow2.f32 %v3701_v39 }
 0x351   :  { %v3995_v57 = vpop.eup %3994  ;;  %v1663_v0 = vsel %vm1660_vm5, %v1662_v42, %v1658_v21  ;;  %v1721_v10 = vpop.f32.mrf.mxu2 }
 0x352   :  { %v1666_v17 = vmul.f32 %v3995_v57, %v1634_v61  ;;  %v1681_v48 = vmul.f32 %v1663_v0, %v5045_v11  ;;  %v1740_v5 = vadd.f32 %v1721_v10, %v195_v53  ;;  %vm1671_vm6 = vweird.f32 %v3995_v57 }
 0x353   :  { %v1697_v63 = vpop.f32.mrf.mxu0  ;;  %v1771_v11 = vsub.f32 1.0, %v1770_v46  ;;  %vm1672_vm8 = vmor %vm1670_vm7, %vm1671_vm6 }
 0x354   :  { %v1667_v58 = vsub.f32 1.0, %v1666_v17  ;;  %v5189_v2 = vadd.f32 %v1682_v24, %v1681_v48  ;;  %v3703_v43 = vmul.f32 -1.442695, %v1740_v5  ;;  %v6329_v17 = vld [vmem:[#allocation50_spill] sm:$0xff]  ;;  %v6330_v48 = vld [vmem:[#allocation61_spill] sm:$0xff] }
 0x355   :  { %v1772_v0 = vmul.f32 %v5182_v40, %v1771_v11  ;;  %v224_v24 = vadd.f32 %v6330_v48, %v6329_v17  ;;  %v6357_v17 = vld [vmem:[#allocation70_spill] sm:$0xff] }
 0x356   :  { %v3997_v54 = vpop.eup %3996  ;;  %v1668_v9 = vmul.f32 %v3995_v57, %v1667_v58  ;;  %3998 = vtanh.f32 %v5189_v2 }
 0x357   :  { %v1751_v52 = vadd.f32 1.0, %v3997_v54  ;;  %4000 = vpow2.f32 %v3703_v43  ;;  %v1741_v61 = vadd.f32 %v5167_v36, %v224_v24  ;;  %v1773_v43 = vadd.f32 %v5182_v40, %v1772_v0 }
 0x358   :  { %v1669_v53 = vadd.f32 %v3995_v57, %v1668_v9  ;;  %v1778_v54 = vand.u32 2147483647, %v5171_v8 }
 0x359   :  { %4002 = vrcp.f32 %v1751_v52  ;;  %v1723_v39 = vpop.f32.mrf.mxu2  ;;  %v1765_v36 = vand.u32 2147483648, %v1751_v52  ;;  %v1777_v15 = vsel %vm1776_vm12, %v5182_v40, %v1773_v43  ;;  %vm1759_vm15 = vweird.f32 %v1751_v52 }
 0x35a   :  { %v1673_v42 = vsel %vm1672_vm8, %v3995_v57, %v1669_v53  ;;  %v1763_v53 = vand.u32 2147483647, %v1751_v52  ;;  %v1781_v39 = vor.u32 1.1754944e-38, %v1780_v1  ;;  %vm1779_vm14 = vcmp.eq.f32.partialorder %v1778_v54, 8.507059e+37 }
 0x35b   :  { %v1678_v50 = vsel %vm1675_vm9, %v1677_v29, %v1673_v42 }
 0x35c   :  { %v3999_v21 = vpop.eup %3998  ;;  %v1782_v8 = vsel %vm1779_vm14, %v1781_v39, %v1777_v15  ;;  %vm1764_vm1 = vcmp.eq.f32.partialorder %v1763_v53, 8.507059e+37  ;;  %v6334_v53 = vld [vmem:[#allocation45_spill] sm:$0xff]  ;;  %v6335_v39 = vld [vmem:[#allocation31_spill] sm:$0xff] }
 0x35d   :  { %v4001_v10 = vpop.eup %4000  ;;  %v1685_v5 = vmul.f32 %v3999_v21, %v1678_v50  ;;  %v1766_v50 = vor.u32 1.1754944e-38, %v1765_v36  ;;  %v1800_v24 = vmul.f32 %v1782_v8, %v5068_v20  ;;  %v6338_v8 = vld [vmem:[#allocation49_spill] sm:$0xff] }
 0x35e   :  { %v1753_v63 = vadd.f32 1.0, %v4001_v10 }
 0x35f   :  { %v4003_v58 = vpop.eup %4002  ;;  %v1806_v46 = vpack.c.bf16 %v1685_v5, %v1685_v5 }
 0x360   :  { %v1755_v57 = vmul.f32 %v4003_v58, %v1751_v52  ;;  %4004 = vrcp.f32 %v1753_v63  ;;  %vm1760_vm13 = vweird.f32 %v4003_v58  ;;  %vm1789_vm3 = vweird.f32 %v1753_v63 }
 0x361   :  { %1828 = vmatmul.bf16.vlgmr.msrb.gmra.mxu1 %v1806_v46  ;;  %1854 = vmatmul.bf16.vlgmr.msrb.gmra.mxu3 %v1806_v46  ;;  %4006 = vtanh.f32 %v1741_v61  ;;  %vm1761_vm0 = vmor %vm1759_vm15, %vm1760_vm13 }
 0x362   :  { %v1756_v9 = vsub.f32 1.0, %v1755_v57  ;;  %1987 = vmatpush.bf16.msrb.mxu1 %v6182_v25  ;;  %2013 = vmatpush.bf16.msrb.mxu3 %v6183_v47  ;;  %v1795_v57 = vand.u32 2147483648, %v1753_v63 }
 0x364   :  { %v1757_v11 = vmul.f32 %v4003_v58, %v1756_v9  ;;  %v1796_v1 = vor.u32 1.1754944e-38, %v1795_v57  ;;  %v6349_v57 = vld [vmem:[#allocation58_spill] sm:$0xff] }
 0x366   :  { %v4005_v29 = vpop.eup %4004  ;;  %v1758_v42 = vadd.f32 %v4003_v58, %v1757_v11  ;;  %1988 = vmatpush.bf16.msrb.mxu1 %v6186_v33  ;;  %2014 = vmatpush.bf16.msrb.mxu3 %v6257_v41  ;;  %v6333_v11 = vld [vmem:[#allocation43_spill] sm:$0xff] }
 0x367   :  { %v1785_v21 = vmul.f32 %v4005_v29, %v1753_v63  ;;  %v4007_v10 = vpop.eup %4006  ;;  %vm1790_vm2 = vweird.f32 %v4005_v29 }
 0x368   :  { %v1762_v0 = vsel %vm1761_vm0, %v4003_v58, %v1758_v42  ;;  %v1793_v58 = vand.u32 2147483647, %v1753_v63  ;;  %vm1791_vm4 = vmor %vm1789_vm3, %vm1790_vm2  ;;  %v6331_v63 = vld [vmem:[#allocation25_spill] sm:$0xff]  ;;  %v6337_v42 = vld [vmem:[#allocation48_spill] sm:$0xff] }
 0x369   :  { %v1767_v40 = vsel %vm1764_vm1, %v1766_v50, %v1762_v0  ;;  %v1786_v48 = vsub.f32 1.0, %v1785_v21  ;;  %v6339_v50 = vld [vmem:[#allocation33_spill] sm:$0xff]  ;;  %v6340_v21 = vld [vmem:[#allocation35_spill] sm:$0xff]  ;;  %v6341_v0 = vld [vmem:[#allocation62_spill] sm:$0xff] }
 0x36a   :  { %v1801_v5 = vmul.f32 %v4007_v10, %v1767_v40  ;;  %1989 = vmatpush.bf16.msrb.mxu1 %v6188_v23  ;;  %2015 = vmatpush.bf16.msrb.mxu3 %v6189_v22  ;;  %vm1794_vm5 = vcmp.eq.f32.partialorder %v1793_v58, 8.507059e+37  ;;  %v6342_v10 = vld [vmem:[#allocation51_spill] sm:$0xff] }
 0x36b   :  { %v1787_v52 = vmul.f32 %v4005_v29, %v1786_v48  ;;  %v6343_v40 = vld [vmem:[#allocation63_spill] sm:$0xff]  ;;  %v6344_v48 = vld [vmem:[#allocation54_spill] sm:$0xff] }
 0x36c   :  { %v5209_v61 = vadd.f32 %v1801_v5, %v1800_v24  ;;  %v6345_v24 = vld [vmem:[#allocation68_spill] sm:$0xff]  ;;  %v6350_v58 = vld [vmem:[#allocation59_spill] sm:$0xff] }
 0x36d   :  { %v1788_v43 = vadd.f32 %v4005_v29, %v1787_v52  ;;  %v6346_v5 = vld [vmem:[#allocation56_spill] sm:$0xff]  ;;  %v6347_v52 = vld [vmem:[#allocation69_spill] sm:$0xff] }
 0x36e   :  { %4008 = vtanh.f32 %v5209_v61  ;;  %1990 = vmatpush.bf16.msrb.mxu1 %v6190_v51  ;;  %2016 = vmatpush.bf16.msrb.mxu3 %v6191_v14 }
 0x36f   :  { %v1792_v20 = vsel %vm1791_vm4, %v4005_v29, %v1788_v43  ;;  %v6336_v29 = vld [vmem:[#allocation34_spill] sm:$0xff]  ;;  %v6348_v43 = vld [vmem:[#allocation57_spill] sm:$0xff] }
 0x370   :  { %v1797_v9 = vsel %vm1794_vm5, %v1796_v1, %v1792_v20  ;;  %v6351_v20 = vld [vmem:[#allocation74_spill] sm:$0xff]  ;;  %v6352_v1 = vld [vmem:[#allocation77_spill] sm:$0xff] }
 0x371   :  { %1880 = vmatmul.bf16.vlgmr.msra.gmra.mxu1 %v1806_v46  ;;  %1906 = vmatmul.bf16.vlgmr.msra.gmra.mxu3 %v1806_v46  ;;  %v6332_v46 = vld [vmem:[#allocation29_spill] sm:$0xff] }
 0x372   :  { %1991 = vmatpush.bf16.msrb.mxu1 %v4380_v4  ;;  %2017 = vmatpush.bf16.msrb.mxu3 %v6192_v60 }
 0x374   :  { %v4009_v54 = vpop.eup %4008 }
 0x375   :  { %v1804_v36 = vmul.f32 %v4009_v54, %v1797_v9  ;;  %v6353_v54 = vld [vmem:[#allocation64_spill] sm:$0xff]  ;;  %v6354_v9 = vld [vmem:[#allocation66_spill] sm:$0xff] }
 0x376   :  { %1992 = vmatpush.bf16.msrb.mxu1 %v6193_v30  ;;  %2018 = vmatpush.bf16.msrb.mxu3 %v6194_v62 }
 0x377   :  { %v1805_v15 = vpack.c.bf16 %v1804_v36, %v1804_v36  ;;  %v6355_v36 = vld [vmem:[#allocation81_spill] sm:$0xff] }
 0x379   :  { %1815 = vmatmul.bf16.vlgmr.msrb.gmra.mxu0 %v1805_v15  ;;  %1841 = vmatmul.bf16.vlgmr.msra.gmra.mxu2 %v1805_v15 }
 0x37a   :  { %1974 = vmatpush.bf16.msrb.mxu0 %v4327_v27  ;;  %1993 = vmatpush.bf16.msrb.mxu1 %v6195_v16 }
 0x37b   :  { %2000 = vmatpush.bf16.msra.mxu2 %v4325_v26  ;;  %2019 = vmatpush.bf16.msrb.mxu3 %v6196_v44 }
 0x37e   :  { %1975 = vmatpush.bf16.msrb.mxu0 %v4344_v37  ;;  %1994 = vmatpush.bf16.msrb.mxu1 %v4432_v56 }
 0x37f   :  { %2001 = vmatpush.bf16.msra.mxu2 %v4346_v38  ;;  %2020 = vmatpush.bf16.msrb.mxu3 %v4438_v59 }
 0x381   :  { %1995 = vmatmul.bf16.vlgmr.msrb.gmra.mxu1 %v1805_v15 }
 0x382   :  { %2108 = vmatpush.bf16.msra.mxu1 %v4461_v13  ;;  %2021 = vmatmul.bf16.vlgmr.msrb.gmra.mxu3 %v1805_v15 }
 0x383   :  { %2134 = vmatpush.bf16.msra.mxu3 %v4470_v19  ;;  %1976 = vmatpush.bf16.msrb.mxu0 %v6138_v12 }
 0x384   :  { %2002 = vmatpush.bf16.msra.mxu2 %v6139_v34 }
 0x386   :  { %2109 = vmatpush.bf16.msra.mxu1 %v4479_v31 }
 0x387   :  { %2135 = vmatpush.bf16.msra.mxu3 %v4481_v35  ;;  %1977 = vmatpush.bf16.msrb.mxu0 %v6142_v28 }
 0x388   :  { %2003 = vmatpush.bf16.msra.mxu2 %v6143_v7 }
 0x389   :  { %1867 = vmatmul.bf16.vlgmr.msra.gmra.mxu0 %v1805_v15  ;;  %1893 = vmatmul.bf16.vlgmr.msrb.gmra.mxu2 %v1805_v15 }
 0x38a   :  { %2110 = vmatpush.bf16.msra.mxu1 %v4490_v49 }
 0x38b   :  { %2136 = vmatpush.bf16.msra.mxu3 %v4494_v55  ;;  %1978 = vmatpush.bf16.msrb.mxu0 %v6146_v18 }
 0x38c   :  { %2004 = vmatpush.bf16.msra.mxu2 %v6147_v32 }
 0x38e   :  { %2111 = vmatpush.bf16.msra.mxu1 %v4500_v3 }
 0x38f   :  { %2137 = vmatpush.bf16.msra.mxu3 %v4502_v6  ;;  %1979 = vmatpush.bf16.msrb.mxu0 %v6331_v63 }
 0x390   :  { %2005 = vmatpush.bf16.msra.mxu2 %v6332_v46 }
 0x392   :  { %2112 = vmatpush.bf16.msra.mxu1 %v6333_v11 }
 0x393   :  { %2138 = vmatpush.bf16.msra.mxu3 %v6334_v53  ;;  %1980 = vmatpush.bf16.msrb.mxu0 %v6335_v39 }
 0x394   :  { %2006 = vmatpush.bf16.msra.mxu2 %v6336_v29 }
 0x396   :  { %2113 = vmatpush.bf16.msra.mxu1 %v6337_v42 }
 0x397   :  { %2139 = vmatpush.bf16.msra.mxu3 %v6338_v8  ;;  %1981 = vmatpush.bf16.msrb.mxu0 %v6339_v50  ;;  %v6395_v8 = vld [vmem:[#allocation67_spill] sm:$0xff] }
 0x398   :  { %2007 = vmatpush.bf16.msra.mxu2 %v6340_v21 }
 0x39a   :  { %2114 = vmatpush.bf16.msra.mxu1 %v6342_v10  ;;  %1982 = vmatmul.bf16.vlgmr.msrb.gmra.mxu0 %v1805_v15 }
 0x39b   :  { %2095 = vmatpush.bf16.msra.mxu0 %v6341_v0  ;;  %2140 = vmatpush.bf16.msra.mxu3 %v6344_v48  ;;  %v6393_v48 = vld [vmem:[#allocation16_spill] sm:$0xff] }
 0x39c   :  { %2121 = vmatpush.bf16.msrb.mxu2 %v6343_v40 }
 0x39d   :  { %2008 = vmatmul.bf16.vlgmr.msra.gmra.mxu2 %v1805_v15  ;;  %v6356_v15 = vld [vmem:[#allocation82_spill] sm:$0xff] }
 0x39e   :  { %2115 = vmatpush.bf16.msra.mxu1 %v6346_v5 }
 0x39f   :  { %2096 = vmatpush.bf16.msra.mxu0 %v6345_v24  ;;  %2141 = vmatpush.bf16.msra.mxu3 %v6348_v43  ;;  %v6359_v43 = vld [vmem:[#allocation87_spill] sm:$0xff] }
 0x3a0   :  { %2122 = vmatpush.bf16.msrb.mxu2 %v6347_v52 }
 0x3a2   :  { %2160 = vmatpush.bf16.msrb.mxu1 %v6349_v57  ;;  %v6360_v57 = vld [vmem:[#allocation88_spill] sm:$0xff] }
 0x3a3   :  { %2186 = vmatpush.bf16.msrb.mxu3 %v6350_v58  ;;  %2097 = vmatpush.bf16.msra.mxu0 %v6351_v20  ;;  %v6361_v58 = vld [vmem:[#allocation78_spill] sm:$0xff]  ;;  %v6362_v20 = vld [vmem:[#allocation80_spill] sm:$0xff] }
 0x3a4   :  { %2123 = vmatpush.bf16.msrb.mxu2 %v6352_v1  ;;  %v6363_v1 = vld [vmem:[#allocation92_spill] sm:$0xff] }
 0x3a6   :  { %2161 = vmatpush.bf16.msrb.mxu1 %v6353_v54  ;;  %v6364_v54 = vld [vmem:[#allocation93_spill] sm:$0xff] }
 0x3a7   :  { %2187 = vmatpush.bf16.msrb.mxu3 %v6354_v9  ;;  %2098 = vmatpush.bf16.msra.mxu0 %v6355_v36  ;;  %v6365_v9 = vld [vmem:[#allocation83_spill] sm:$0xff]  ;;  %v6366_v36 = vld [vmem:[#allocation84_spill] sm:$0xff] }
 0x3a8   :  { %2124 = vmatpush.bf16.msrb.mxu2 %v6356_v15  ;;  %v6367_v15 = vld [vmem:[#allocation97_spill] sm:$0xff] }
 0x3aa   :  { %2162 = vmatpush.bf16.msrb.mxu1 %v6357_v17  ;;  %v6368_v17 = vld [vmem:[#allocation99_spill] sm:$0xff] }
 0x3ab   :  { %2188 = vmatpush.bf16.msrb.mxu3 %v6358_v45  ;;  %2099 = vmatpush.bf16.msra.mxu0 %v6359_v43  ;;  %v6369_v45 = vld [vmem:[#allocation89_spill] sm:$0xff]  ;;  %v6370_v43 = vld [vmem:[#allocation90_spill] sm:$0xff] }
 0x3ac   :  { %2125 = vmatpush.bf16.msrb.mxu2 %v6360_v57  ;;  %v6371_v57 = vld [vmem:[#allocation103_spill] sm:$0xff] }
 0x3ae   :  { %2163 = vmatpush.bf16.msrb.mxu1 %v6361_v58  ;;  %v6372_v58 = vld [vmem:[#allocation104_spill] sm:$0xff] }
 0x3af   :  { %2189 = vmatpush.bf16.msrb.mxu3 %v6362_v20  ;;  %2100 = vmatpush.bf16.msra.mxu0 %v6363_v1  ;;  %v6373_v20 = vld [vmem:[#allocation105_spill] sm:$0xff]  ;;  %v6374_v1 = vld [vmem:[#allocation94_spill] sm:$0xff] }
 0x3b0   :  { %2126 = vmatpush.bf16.msrb.mxu2 %v6364_v54  ;;  %v6375_v54 = vld [vmem:[#allocation106_spill] sm:$0xff] }
 0x3b2   :  { %2164 = vmatpush.bf16.msrb.mxu1 %v6365_v9  ;;  %v6376_v9 = vld [vmem:[#allocation95_spill] sm:$0xff] }
 0x3b3   :  { %2190 = vmatpush.bf16.msrb.mxu3 %v6366_v36  ;;  %2101 = vmatpush.bf16.msra.mxu0 %v6367_v15  ;;  %v6377_v36 = vld [vmem:[#allocation109_spill] sm:$0xff]  ;;  %v6378_v15 = vld [vmem:[#allocation100_spill] sm:$0xff] }
 0x3b4   :  { %2127 = vmatpush.bf16.msrb.mxu2 %v6368_v17  ;;  %v6379_v17 = vld [vmem:[#allocation110_spill] sm:$0xff] }
 0x3b6   :  { %2165 = vmatpush.bf16.msrb.mxu1 %v6369_v45  ;;  %v6380_v45 = vld [vmem:[#allocation102_spill] sm:$0xff] }
 0x3b7   :  { %2191 = vmatpush.bf16.msrb.mxu3 %v6370_v43  ;;  %2102 = vmatpush.bf16.msra.mxu0 %v6371_v57  ;;  %v6381_v43 = vld [vmem:[#allocation111_spill] sm:$0xff]  ;;  %v6382_v57 = vld [vmem:[#allocation112_spill] sm:$0xff] }
 0x3b8   :  { %2128 = vmatpush.bf16.msrb.mxu2 %v6372_v58  ;;  %v6383_v58 = vld [vmem:[#allocation114_spill] sm:$0xff] }
 0x3ba   :  { %2166 = vmatpush.bf16.msrb.mxu1 %v6374_v1  ;;  %v6385_v1 = vld [vmem:[#allocation116_spill] sm:$0xff] }
 0x3bb   :  { %2147 = vmatpush.bf16.msrb.mxu0 %v6373_v20  ;;  %2192 = vmatpush.bf16.msrb.mxu3 %v6376_v9  ;;  %v6384_v20 = vld [vmem:[#allocation115_spill] sm:$0xff] }
 0x3bc   :  { %2173 = vmatpush.bf16.msra.mxu2 %v6375_v54  ;;  %v6386_v54 = vld [vmem:[#allocation117_spill] sm:$0xff]  ;;  %v6387_v9 = vld [vmem:[#allocation119_spill] sm:$0xff] }
 0x3be   :  { %2167 = vmatpush.bf16.msrb.mxu1 %v6378_v15  ;;  %v6389_v15 = vld [vmem:[#allocation121_spill] sm:$0xff] }
 0x3bf   :  { %2148 = vmatpush.bf16.msrb.mxu0 %v6377_v36  ;;  %2193 = vmatpush.bf16.msrb.mxu3 %v6380_v45  ;;  %v6388_v36 = vld [vmem:[#allocation120_spill] sm:$0xff]  ;;  %v6391_v45 = vld [vmem:[#allocation123_spill] sm:$0xff] }
 0x3c0   :  { %2174 = vmatpush.bf16.msra.mxu2 %v6379_v17  ;;  %v6390_v17 = vld [vmem:[#allocation122_spill] sm:$0xff] }
 0x3c3   :  { %2149 = vmatpush.bf16.msrb.mxu0 %v6381_v43  ;;  %v6392_v43 = vld [vmem:[#allocation124_spill] sm:$0xff] }
 0x3c4   :  { %2175 = vmatpush.bf16.msra.mxu2 %v6382_v57 }
 0x3c7   :  { %2150 = vmatpush.bf16.msrb.mxu0 %v6383_v58 }
 0x3c8   :  { %2176 = vmatpush.bf16.msra.mxu2 %v6384_v20 }
 0x3cb   :  { %2151 = vmatpush.bf16.msrb.mxu0 %v6385_v1 }
 0x3cc   :  { %2177 = vmatpush.bf16.msra.mxu2 %v6386_v54 }
 0x3cf   :  { %2152 = vmatpush.bf16.msrb.mxu0 %v6387_v9 }
 0x3d0   :  { %2178 = vmatpush.bf16.msra.mxu2 %v6388_v36 }
 0x3d3   :  { %2153 = vmatpush.bf16.msrb.mxu0 %v6389_v15 }
 0x3d4   :  { %2179 = vmatpush.bf16.msra.mxu2 %v6390_v17  ;;  %v6394_v17 = vld [vmem:[#allocation17_spill] sm:$0xff] }
 0x3d7   :  { %2154 = vmatpush.bf16.msrb.mxu0 %v6391_v45 }
 0x3d8   :  { %2180 = vmatpush.bf16.msra.mxu2 %v6392_v43 }
 0x3de   :  { %v1829_v57 = vpop.f32.mrf.mxu1 }
 0x3e4   :  { %v1855_v58 = vpop.f32.mrf.mxu3 }
 0x3e6   :  { %v1831_v52 = vpop.f32.mrf.mxu1 }
 0x3ec   :  { %v1857_v20 = vpop.f32.mrf.mxu3 }
 0x3ee   :  { %v1881_v5 = vpop.f32.mrf.mxu1 }
 0x3f4   :  { %v1907_v1 = vpop.f32.mrf.mxu3 }
 0x3f6   :  { %v1816_v24 = vpop.f32.mrf.mxu0  ;;  %v1883_v54 = vpop.f32.mrf.mxu1 }
 0x3f7   :  { %v1817_v9 = vadd.f32 %v1816_v24, %v6393_v48 }
 0x3f9   :  { %v1830_v40 = vadd.f32 %v1829_v57, %v1817_v9  ;;  %v6396_v57 = vld [vmem:[#allocation20_spill] sm:$0xff] }
 0x3fb   :  { %v3704_v36 = vmul.f32 -1.442695, %v1830_v40 }
 0x3fc   :  { %v1842_v10 = vpop.f32.mrf.mxu2  ;;  %v1909_v15 = vpop.f32.mrf.mxu3 }
 0x3fd   :  { %4010 = vpow2.f32 %v3704_v36  ;;  %v1843_v0 = vadd.f32 %v1842_v10, %v6394_v17 }
 0x3fe   :  { %v1818_v45 = vpop.f32.mrf.mxu0  ;;  %v1996_v21 = vpop.f32.mrf.mxu1 }
 0x3ff   :  { %v1856_v43 = vadd.f32 %v1855_v58, %v1843_v0  ;;  %v2027_v52 = vadd.f32 %v1996_v21, %v6395_v8 }
 0x401   :  { %v3705_v50 = vmul.f32 -1.442695, %v1856_v43  ;;  %v3708_v54 = vmul.f32 -1.442695, %v2027_v52 }
 0x403   :  { %v4011_v20 = vpop.eup %4010  ;;  %4012 = vpow2.f32 %v3705_v50 }
 0x404   :  { %v1920_v42 = vadd.f32 1.0, %v4011_v20  ;;  %v1844_v29 = vpop.f32.mrf.mxu2 }
 0x405   :  { %v5305_v39 = vpop.f32.mrf.mxu3  ;;  %v6397_v29 = vld [vmem:[#allocation21_spill] sm:$0xff] }
 0x406   :  { %4014 = vrcp.f32 %v1920_v42  ;;  %v1868_v40 = vpop.f32.mrf.mxu0  ;;  %v1998_v24 = vpop.f32.mrf.mxu1  ;;  %vm1928_vm7 = vweird.f32 %v1920_v42 }
 0x407   :  { %v1869_v9 = vadd.f32 %v1868_v40, %v6396_v57  ;;  %4016 = vpow2.f32 %v3708_v54 }
 0x409   :  { %v4013_v36 = vpop.eup %4012  ;;  %v1882_v45 = vadd.f32 %v1881_v5, %v1869_v9 }
 0x40a   :  { %v1921_v10 = vadd.f32 1.0, %v4013_v36  ;;  %v1934_v36 = vand.u32 2147483648, %v1920_v42 }
 0x40b   :  { %v3706_v0 = vmul.f32 -1.442695, %v1882_v45 }
 0x40c   :  { %v4015_v43 = vpop.eup %4014  ;;  %4018 = vrcp.f32 %v1921_v10  ;;  %v1894_v8 = vpop.f32.mrf.mxu2  ;;  %vm1943_vm10 = vweird.f32 %v1921_v10 }
 0x40d   :  { %v1924_v21 = vmul.f32 %v4015_v43, %v1920_v42  ;;  %v2024_v50 = vpop.f32.mrf.mxu3  ;;  %4020 = vpow2.f32 %v3706_v0  ;;  %v1895_v58 = vadd.f32 %v1894_v8, %v6397_v29  ;;  %v4017_v52 = vpop.eup %4016  ;;  %vm1929_vm6 = vweird.f32 %v4015_v43 }
 0x40e   :  { %v1870_v15 = vpop.f32.mrf.mxu0  ;;  %v5309_v40 = vadd.f32 1.0, %v4017_v52  ;;  %v1932_v0 = vand.u32 2147483647, %v1920_v42  ;;  %v1949_v8 = vand.u32 2147483648, %v1921_v10  ;;  %vm5312_vm8 = vmor %vm1928_vm7, %vm1929_vm6  ;;  %v1935_v52 = vor.u32 1.1754944e-38, %v1934_v36 }
 0x40f   :  { %v1925_v20 = vsub.f32 1.0, %v1924_v21  ;;  %v1908_v17 = vadd.f32 %v1907_v1, %v1895_v58  ;;  %v1947_v21 = vand.u32 2147483647, %v1921_v10 }
 0x410   :  { %vm1933_vm11 = vcmp.eq.f32.partialorder %v1932_v0, 8.507059e+37  ;;  %vm2062_vm3 = vweird.f32 %v5309_v40 }
 0x411   :  { %v1926_v24 = vmul.f32 %v4015_v43, %v1925_v20  ;;  %4022 = vtanh.f32 %v1908_v17  ;;  %v6400_v20 = vld [vmem:[#allocation65_spill] sm:$0xff]  ;;  %vm1948_vm13 = vcmp.eq.f32.partialorder %v1947_v21, 8.507059e+37 }
 0x412   :  { %v4019_v48 = vpop.eup %4018  ;;  %4024 = vrcp.f32 %v5309_v40 }
 0x413   :  { %v1939_v54 = vmul.f32 %v4019_v48, %v1921_v10  ;;  %v1927_v5 = vadd.f32 %v4015_v43, %v1926_v24  ;;  %v4021_v9 = vpop.eup %4020  ;;  %vm1944_vm9 = vweird.f32 %v4019_v48  ;;  %v6401_v10 = vld [vmem:[#allocation96_spill] sm:$0xff] }
 0x414   :  { %v1896_v45 = vpop.f32.mrf.mxu2  ;;  %v1922_v50 = vadd.f32 1.0, %v4021_v9  ;;  %vm1945_vm12 = vmor %vm1943_vm10, %vm1944_vm9  ;;  %v1950_v9 = vor.u32 1.1754944e-38, %v1949_v8 }
 0x415   :  { %v1940_v57 = vsub.f32 1.0, %v1939_v54  ;;  %v1931_v17 = vsel %vm5312_vm8, %v4015_v43, %v1927_v5 }
 0x416   :  { %4026 = vrcp.f32 %v1922_v50  ;;  %v1936_v45 = vsel %vm1933_vm11, %v1935_v52, %v1931_v17  ;;  %v1964_v17 = vand.u32 2147483648, %v1922_v50  ;;  %vm1958_vm15 = vweird.f32 %v1922_v50 }
 0x417   :  { %v1983_v58 = vpop.f32.mrf.mxu0  ;;  %v1941_v15 = vmul.f32 %v4019_v48, %v1940_v57  ;;  %v4023_v54 = vpop.eup %4022 }
 0x418   :  { %v2026_v24 = vadd.f32 %v1983_v58, %v6400_v20  ;;  %v5319_v11 = vpop.eup %4024  ;;  %v1970_v5 = vmul.f32 %v4023_v54, %v1936_v45  ;;  %v1965_v54 = vor.u32 1.1754944e-38, %v1964_v17 }
 0x419   :  { %v1942_v42 = vadd.f32 %v4019_v48, %v1941_v15  ;;  %v2058_v8 = vmul.f32 %v5319_v11, %v5309_v40  ;;  %vm2063_vm2 = vweird.f32 %v5319_v11 }
 0x41a   :  { %v3707_v29 = vmul.f32 -1.442695, %v2026_v24  ;;  %vm5338_vm4 = vmor %vm2062_vm3, %vm2063_vm2 }
 0x41b   :  { %v1946_v53 = vsel %vm1945_vm12, %v4019_v48, %v1942_v42  ;;  %v2059_v20 = vsub.f32 1.0, %v2058_v8 }
 0x41c   :  { %v1951_v57 = vsel %vm1948_vm13, %v1950_v9, %v1946_v53  ;;  %4028 = vpow2.f32 %v3707_v29  ;;  %v4027_v46 = vpop.eup %4026 }
 0x41d   :  { %v1969_v43 = vmul.f32 %v1951_v57, %v5189_v2  ;;  %v1954_v1 = vmul.f32 %v4027_v46, %v1922_v50  ;;  %vm1959_vm14 = vweird.f32 %v4027_v46  ;;  %v1962_v2 = vand.u32 2147483647, %v1922_v50 }
 0x41e   :  { %vm1960_vm0 = vmor %vm1958_vm15, %vm1959_vm14 }
 0x41f   :  { %v1985_v58 = vpop.f32.mrf.mxu0  ;;  %v5323_v15 = vadd.f32 %v1970_v5, %v1969_v43  ;;  %v1955_v48 = vsub.f32 1.0, %v1954_v1  ;;  %vm1963_vm1 = vcmp.eq.f32.partialorder %v1962_v2, 8.507059e+37  ;;  %v2060_v5 = vmul.f32 %v5319_v11, %v2059_v20 }
 0x420   :  { %v2009_v36 = vpop.f32.mrf.mxu2  ;;  %v6402_v58 = vld [vmem:[#allocation75_spill] sm:$0xff] }
 0x421   :  { %v2028_v0 = vadd.f32 %v2009_v36, %v6401_v10  ;;  %4030 = vtanh.f32 %v5323_v15  ;;  %v1956_v29 = vmul.f32 %v4027_v46, %v1955_v48  ;;  %v2029_v8 = vadd.f32 %v5305_v39, %v6402_v58 }
 0x422   :  { %v4029_v53 = vpop.eup %4028  ;;  %v2061_v50 = vadd.f32 %v5319_v11, %v2060_v5 }
 0x423   :  { %v3709_v21 = vmul.f32 -1.442695, %v2028_v0  ;;  %v2039_v52 = vadd.f32 1.0, %v4029_v53  ;;  %v1957_v24 = vadd.f32 %v4027_v46, %v1956_v29 }
 0x424   :  { %v2065_v29 = vsel %vm5338_vm4, %v5319_v11, %v2061_v50 }
 0x425   :  { %4032 = vpow2.f32 %v3709_v21  ;;  %v1961_v9 = vsel %vm1960_vm0, %v4027_v46, %v1957_v24  ;;  %v2068_v46 = vand.u32 2147483648, %v5309_v40  ;;  %v2066_v21 = vand.u32 2147483647, %v5309_v40 }
 0x426   :  { %4034 = vrcp.f32 %v2039_v52  ;;  %v1966_v57 = vsel %vm1963_vm1, %v1965_v54, %v1961_v9  ;;  %v2053_v53 = vand.u32 2147483648, %v2039_v52  ;;  %v2051_v20 = vand.u32 2147483647, %v2039_v52 }
 0x427   :  { %v4031_v45 = vpop.eup %4030  ;;  %vm2067_vm6 = vcmp.eq.f32.partialorder %v2066_v21, 8.507059e+37  ;;  %vm2047_vm7 = vweird.f32 %v2039_v52 }
 0x428   :  { %v2011_v42 = vpop.f32.mrf.mxu2  ;;  %v1973_v36 = vmul.f32 %v4031_v45, %v1966_v57  ;;  %v2054_v45 = vor.u32 1.1754944e-38, %v2053_v53  ;;  %vm2052_vm9 = vcmp.eq.f32.partialorder %v2051_v20, 8.507059e+37  ;;  %v6409_v20 = vld [vmem:[#allocation34_spill] sm:$0xff] }
 0x429   :  { %v2069_v42 = vor.u32 1.1754944e-38, %v2068_v46 }
 0x42a   :  { %v2094_v10 = vpack.c.bf16 %v1973_v36, %v1973_v36 }
 0x42b   :  { %v4033_v43 = vpop.eup %4032  ;;  %v2070_v9 = vsel %vm2067_vm6, %v2069_v42, %v2065_v29  ;;  %v6407_v29 = vld [vmem:[#allocation45_spill] sm:$0xff] }
 0x42c   :  { %v2041_v1 = vadd.f32 1.0, %v4033_v43  ;;  %v4035_v0 = vpop.eup %4034  ;;  %2116 = vmatmul.bf16.vlgmr.msra.gmra.mxu1 %v2094_v10  ;;  %2142 = vmatmul.bf16.vlgmr.msra.gmra.mxu3 %v2094_v10  ;;  %v2088_v36 = vmul.f32 %v2070_v9, %v5209_v61  ;;  %v6411_v42 = vld [vmem:[#allocation49_spill] sm:$0xff]  ;;  %v6414_v9 = vld [vmem:[#allocation62_spill] sm:$0xff] }
 0x42d   :  { %v2043_v48 = vmul.f32 %v4035_v0, %v2039_v52  ;;  %2275 = vmatpush.bf16.msra.mxu1 %v6182_v25  ;;  %2301 = vmatpush.bf16.msra.mxu3 %v6183_v47  ;;  %vm2048_vm5 = vweird.f32 %v4035_v0 }
 0x42e   :  { %4036 = vrcp.f32 %v2041_v1  ;;  %vm2049_vm8 = vmor %vm2047_vm7, %vm2048_vm5  ;;  %vm2077_vm11 = vweird.f32 %v2041_v1 }
 0x42f   :  { %v2044_v17 = vsub.f32 1.0, %v2043_v48  ;;  %4038 = vtanh.f32 %v2029_v8  ;;  %v2081_v48 = vand.u32 2147483647, %v2041_v1 }
 0x431   :  { %v2045_v2 = vmul.f32 %v4035_v0, %v2044_v17  ;;  %2276 = vmatpush.bf16.msra.mxu1 %v6186_v33  ;;  %2302 = vmatpush.bf16.msra.mxu3 %v6257_v41  ;;  %vm2082_vm13 = vcmp.eq.f32.partialorder %v2081_v48, 8.507059e+37  ;;  %v6425_v48 = vld [vmem:[#allocation77_spill] sm:$0xff] }
 0x433   :  { %v2046_v40 = vadd.f32 %v4035_v0, %v2045_v2  ;;  %v6408_v2 = vld [vmem:[#allocation31_spill] sm:$0xff] }
 0x434   :  { %v4037_v24 = vpop.eup %4036 }
 0x435   :  { %v2073_v54 = vmul.f32 %v4037_v24, %v2041_v1  ;;  %v2050_v57 = vsel %vm2049_vm8, %v4035_v0, %v2046_v40  ;;  %v4039_v11 = vpop.eup %4038  ;;  %2277 = vmatpush.bf16.msra.mxu1 %v6188_v23  ;;  %2303 = vmatpush.bf16.msra.mxu3 %v6189_v22  ;;  %vm2078_vm10 = vweird.f32 %v4037_v24  ;;  %v2083_v0 = vand.u32 2147483648, %v2041_v1  ;;  %v6405_v1 = vld [vmem:[#allocation29_spill] sm:$0xff] }
 0x436   :  { %v2055_v5 = vsel %vm2052_vm9, %v2054_v45, %v2050_v57  ;;  %vm2079_vm12 = vmor %vm2077_vm11, %vm2078_vm10  ;;  %v6412_v40 = vld [vmem:[#allocation33_spill] sm:$0xff]  ;;  %v6415_v45 = vld [vmem:[#allocation51_spill] sm:$0xff] }
 0x437   :  { %v2074_v43 = vsub.f32 1.0, %v2073_v54  ;;  %v2089_v58 = vmul.f32 %v4039_v11, %v2055_v5  ;;  %v2084_v61 = vor.u32 1.1754944e-38, %v2083_v0  ;;  %v6413_v54 = vld [vmem:[#allocation35_spill] sm:$0xff]  ;;  %v6418_v11 = vld [vmem:[#allocation68_spill] sm:$0xff]  ;;  %v6424_v0 = vld [vmem:[#allocation74_spill] sm:$0xff] }
 0x438   :  { %v6416_v57 = vld [vmem:[#allocation63_spill] sm:$0xff]  ;;  %v6419_v5 = vld [vmem:[#allocation56_spill] sm:$0xff] }
 0x439   :  { %v2075_v8 = vmul.f32 %v4037_v24, %v2074_v43  ;;  %v5350_v50 = vadd.f32 %v2089_v58, %v2088_v36  ;;  %2278 = vmatpush.bf16.msra.mxu1 %v6190_v51  ;;  %2304 = vmatpush.bf16.msra.mxu3 %v6191_v14  ;;  %v6417_v43 = vld [vmem:[#allocation54_spill] sm:$0xff]  ;;  %v6420_v36 = vld [vmem:[#allocation69_spill] sm:$0xff] }
 0x43a   :  { %v6421_v58 = vld [vmem:[#allocation57_spill] sm:$0xff] }
 0x43b   :  { %v2076_v52 = vadd.f32 %v4037_v24, %v2075_v8  ;;  %4040 = vtanh.f32 %v5350_v50  ;;  %v6422_v8 = vld [vmem:[#allocation58_spill] sm:$0xff] }
 0x43c   :  { %2168 = vmatmul.bf16.vlgmr.msrb.gmra.mxu1 %v2094_v10  ;;  %2194 = vmatmul.bf16.vlgmr.msrb.gmra.mxu3 %v2094_v10  ;;  %v6406_v10 = vld [vmem:[#allocation43_spill] sm:$0xff] }
 0x43d   :  { %v2080_v46 = vsel %vm2079_vm12, %v4037_v24, %v2076_v52  ;;  %2279 = vmatpush.bf16.msra.mxu1 %v4380_v4  ;;  %2305 = vmatpush.bf16.msra.mxu3 %v6192_v60  ;;  %v6410_v24 = vld [vmem:[#allocation48_spill] sm:$0xff]  ;;  %v6423_v52 = vld [vmem:[#allocation59_spill] sm:$0xff] }
 0x43e   :  { %v2085_v17 = vsel %vm2082_vm13, %v2084_v61, %v2080_v46  ;;  %v6426_v46 = vld [vmem:[#allocation64_spill] sm:$0xff]  ;;  %v6427_v61 = vld [vmem:[#allocation66_spill] sm:$0xff] }
 0x441   :  { %v4041_v21 = vpop.eup %4040  ;;  %2280 = vmatpush.bf16.msra.mxu1 %v6193_v30  ;;  %2306 = vmatpush.bf16.msra.mxu3 %v6194_v62 }
 0x442   :  { %v2092_v39 = vmul.f32 %v4041_v21, %v2085_v17  ;;  %v6428_v21 = vld [vmem:[#allocation81_spill] sm:$0xff]  ;;  %v6429_v17 = vld [vmem:[#allocation82_spill] sm:$0xff] }
 0x444   :  { %v2093_v53 = vpack.c.bf16 %v2092_v39, %v2092_v39  ;;  %v6430_v39 = vld [vmem:[#allocation70_spill] sm:$0xff] }
 0x445   :  { %2281 = vmatpush.bf16.msra.mxu1 %v6195_v16  ;;  %2307 = vmatpush.bf16.msra.mxu3 %v6196_v44 }
 0x446   :  { %2103 = vmatmul.bf16.vlgmr.msra.gmra.mxu0 %v2093_v53  ;;  %2129 = vmatmul.bf16.vlgmr.msrb.gmra.mxu2 %v2093_v53 }
 0x447   :  { %2262 = vmatpush.bf16.msra.mxu0 %v4327_v27  ;;  %2288 = vmatpush.bf16.msrb.mxu2 %v4325_v26 }
 0x449   :  { %2282 = vmatpush.bf16.msra.mxu1 %v4432_v56  ;;  %2308 = vmatpush.bf16.msra.mxu3 %v4438_v59 }
 0x44b   :  { %2263 = vmatpush.bf16.msra.mxu0 %v4344_v37  ;;  %2289 = vmatpush.bf16.msrb.mxu2 %v4346_v38 }
 0x44c   :  { %2283 = vmatmul.bf16.vlgmr.msra.gmra.mxu1 %v2093_v53  ;;  %2309 = vmatmul.bf16.vlgmr.msra.gmra.mxu3 %v2093_v53 }
 0x44d   :  { %2396 = vmatpush.bf16.msrb.mxu1 %v4461_v13  ;;  %2422 = vmatpush.bf16.msrb.mxu3 %v4470_v19 }
 0x44f   :  { %2264 = vmatpush.bf16.msra.mxu0 %v6138_v12  ;;  %2290 = vmatpush.bf16.msrb.mxu2 %v6139_v34 }
 0x451   :  { %2397 = vmatpush.bf16.msrb.mxu1 %v4479_v31  ;;  %2423 = vmatpush.bf16.msrb.mxu3 %v4481_v35 }
 0x453   :  { %2265 = vmatpush.bf16.msra.mxu0 %v6142_v28  ;;  %2291 = vmatpush.bf16.msrb.mxu2 %v6143_v7 }
 0x455   :  { %2398 = vmatpush.bf16.msrb.mxu1 %v4490_v49  ;;  %2424 = vmatpush.bf16.msrb.mxu3 %v4494_v55 }
 0x456   :  { %2155 = vmatmul.bf16.vlgmr.msrb.gmra.mxu0 %v2093_v53  ;;  %2181 = vmatmul.bf16.vlgmr.msra.gmra.mxu2 %v2093_v53 }
 0x457   :  { %2266 = vmatpush.bf16.msra.mxu0 %v6146_v18  ;;  %2292 = vmatpush.bf16.msrb.mxu2 %v6147_v32 }
 0x459   :  { %2399 = vmatpush.bf16.msrb.mxu1 %v4500_v3  ;;  %2425 = vmatpush.bf16.msrb.mxu3 %v4502_v6 }
 0x45b   :  { %2267 = vmatpush.bf16.msra.mxu0 %v6331_v63  ;;  %2293 = vmatpush.bf16.msrb.mxu2 %v6405_v1  ;;  %v6477_v1 = vld [vmem:[#allocation107_spill] sm:$0xff] }
 0x45d   :  { %2400 = vmatpush.bf16.msrb.mxu1 %v6406_v10  ;;  %2426 = vmatpush.bf16.msrb.mxu3 %v6407_v29 }
 0x45f   :  { %2268 = vmatpush.bf16.msra.mxu0 %v6408_v2  ;;  %2294 = vmatpush.bf16.msrb.mxu2 %v6409_v20 }
 0x461   :  { %2401 = vmatpush.bf16.msrb.mxu1 %v6410_v24  ;;  %2427 = vmatpush.bf16.msrb.mxu3 %v6411_v42 }
 0x463   :  { %2269 = vmatpush.bf16.msra.mxu0 %v6412_v40  ;;  %2295 = vmatpush.bf16.msrb.mxu2 %v6413_v54  ;;  %v6469_v40 = vld [vmem:[#allocation79_spill] sm:$0xff] }
 0x465   :  { %2402 = vmatpush.bf16.msrb.mxu1 %v6415_v45  ;;  %2428 = vmatpush.bf16.msrb.mxu3 %v6417_v43  ;;  %v6466_v43 = vld [vmem:[#allocation16_spill] sm:$0xff] }
 0x466   :  { %2270 = vmatmul.bf16.vlgmr.msra.gmra.mxu0 %v2093_v53  ;;  %2296 = vmatmul.bf16.vlgmr.msrb.gmra.mxu2 %v2093_v53  ;;  %v6431_v53 = vld [vmem:[#allocation72_spill] sm:$0xff] }
 0x467   :  { %2383 = vmatpush.bf16.msrb.mxu0 %v6414_v9  ;;  %2409 = vmatpush.bf16.msra.mxu2 %v6416_v57 }
 0x469   :  { %2403 = vmatpush.bf16.msrb.mxu1 %v6419_v5  ;;  %2429 = vmatpush.bf16.msrb.mxu3 %v6421_v58  ;;  %v6432_v58 = vld [vmem:[#allocation87_spill] sm:$0xff] }
 0x46b   :  { %2384 = vmatpush.bf16.msrb.mxu0 %v6418_v11  ;;  %2410 = vmatpush.bf16.msra.mxu2 %v6420_v36 }
 0x46d   :  { %2448 = vmatpush.bf16.msra.mxu1 %v6422_v8  ;;  %2474 = vmatpush.bf16.msra.mxu3 %v6423_v52  ;;  %v6433_v8 = vld [vmem:[#allocation88_spill] sm:$0xff]  ;;  %v6434_v52 = vld [vmem:[#allocation78_spill] sm:$0xff] }
 0x46f   :  { %2385 = vmatpush.bf16.msrb.mxu0 %v6424_v0  ;;  %2411 = vmatpush.bf16.msra.mxu2 %v6425_v48  ;;  %v6435_v0 = vld [vmem:[#allocation80_spill] sm:$0xff] }
 0x470   :  { %v6436_v48 = vld [vmem:[#allocation92_spill] sm:$0xff] }
 0x471   :  { %2449 = vmatpush.bf16.msra.mxu1 %v6426_v46  ;;  %2475 = vmatpush.bf16.msra.mxu3 %v6427_v61  ;;  %v6437_v46 = vld [vmem:[#allocation93_spill] sm:$0xff]  ;;  %v6438_v61 = vld [vmem:[#allocation83_spill] sm:$0xff] }
 0x473   :  { %2386 = vmatpush.bf16.msrb.mxu0 %v6428_v21  ;;  %2412 = vmatpush.bf16.msra.mxu2 %v6429_v17  ;;  %v6439_v21 = vld [vmem:[#allocation84_spill] sm:$0xff]  ;;  %v6440_v17 = vld [vmem:[#allocation97_spill] sm:$0xff] }
 0x475   :  { %2450 = vmatpush.bf16.msra.mxu1 %v6430_v39  ;;  %2476 = vmatpush.bf16.msra.mxu3 %v6431_v53  ;;  %v6441_v39 = vld [vmem:[#allocation99_spill] sm:$0xff]  ;;  %v6442_v53 = vld [vmem:[#allocation89_spill] sm:$0xff] }
 0x477   :  { %2387 = vmatpush.bf16.msrb.mxu0 %v6432_v58  ;;  %2413 = vmatpush.bf16.msra.mxu2 %v6433_v8  ;;  %v6443_v58 = vld [vmem:[#allocation90_spill] sm:$0xff]  ;;  %v6444_v8 = vld [vmem:[#allocation103_spill] sm:$0xff] }
 0x479   :  { %2451 = vmatpush.bf16.msra.mxu1 %v6434_v52  ;;  %2477 = vmatpush.bf16.msra.mxu3 %v6435_v0  ;;  %v6445_v52 = vld [vmem:[#allocation104_spill] sm:$0xff]  ;;  %v6446_v0 = vld [vmem:[#allocation105_spill] sm:$0xff] }
 0x47b   :  { %2388 = vmatpush.bf16.msrb.mxu0 %v6436_v48  ;;  %2414 = vmatpush.bf16.msra.mxu2 %v6437_v46  ;;  %v6447_v48 = vld [vmem:[#allocation94_spill] sm:$0xff] }
 0x47c   :  { %v6448_v46 = vld [vmem:[#allocation106_spill] sm:$0xff] }
 0x47d   :  { %2452 = vmatpush.bf16.msra.mxu1 %v6438_v61  ;;  %2478 = vmatpush.bf16.msra.mxu3 %v6439_v21  ;;  %v6449_v61 = vld [vmem:[#allocation95_spill] sm:$0xff]  ;;  %v6450_v21 = vld [vmem:[#allocation109_spill] sm:$0xff] }
 0x47f   :  { %2389 = vmatpush.bf16.msrb.mxu0 %v6440_v17  ;;  %2415 = vmatpush.bf16.msra.mxu2 %v6441_v39  ;;  %v6451_v17 = vld [vmem:[#allocation100_spill] sm:$0xff]  ;;  %v6452_v39 = vld [vmem:[#allocation110_spill] sm:$0xff] }
 0x481   :  { %2453 = vmatpush.bf16.msra.mxu1 %v6442_v53  ;;  %2479 = vmatpush.bf16.msra.mxu3 %v6443_v58  ;;  %v6453_v53 = vld [vmem:[#allocation102_spill] sm:$0xff]  ;;  %v6454_v58 = vld [vmem:[#allocation111_spill] sm:$0xff] }
 0x483   :  { %2390 = vmatpush.bf16.msrb.mxu0 %v6444_v8  ;;  %2416 = vmatpush.bf16.msra.mxu2 %v6445_v52  ;;  %v6455_v8 = vld [vmem:[#allocation112_spill] sm:$0xff]  ;;  %v6456_v52 = vld [vmem:[#allocation114_spill] sm:$0xff] }
 0x485   :  { %2454 = vmatpush.bf16.msra.mxu1 %v6447_v48  ;;  %2480 = vmatpush.bf16.msra.mxu3 %v6449_v61  ;;  %v6458_v48 = vld [vmem:[#allocation116_spill] sm:$0xff]  ;;  %v6460_v61 = vld [vmem:[#allocation119_spill] sm:$0xff] }
 0x487   :  { %2435 = vmatpush.bf16.msra.mxu0 %v6446_v0  ;;  %2461 = vmatpush.bf16.msrb.mxu2 %v6448_v46  ;;  %v6457_v0 = vld [vmem:[#allocation115_spill] sm:$0xff]  ;;  %v6459_v46 = vld [vmem:[#allocation117_spill] sm:$0xff] }
 0x489   :  { %2455 = vmatpush.bf16.msra.mxu1 %v6451_v17  ;;  %2481 = vmatpush.bf16.msra.mxu3 %v6453_v53  ;;  %v6462_v17 = vld [vmem:[#allocation121_spill] sm:$0xff]  ;;  %v6464_v53 = vld [vmem:[#allocation123_spill] sm:$0xff] }
 0x48b   :  { %2436 = vmatpush.bf16.msra.mxu0 %v6450_v21  ;;  %2462 = vmatpush.bf16.msrb.mxu2 %v6452_v39  ;;  %v6461_v21 = vld [vmem:[#allocation120_spill] sm:$0xff]  ;;  %v6463_v39 = vld [vmem:[#allocation122_spill] sm:$0xff] }
 0x48f   :  { %2437 = vmatpush.bf16.msra.mxu0 %v6454_v58  ;;  %2463 = vmatpush.bf16.msrb.mxu2 %v6455_v8  ;;  %v6465_v58 = vld [vmem:[#allocation124_spill] sm:$0xff] }
 0x493   :  { %2438 = vmatpush.bf16.msra.mxu0 %v6456_v52  ;;  %2464 = vmatpush.bf16.msrb.mxu2 %v6457_v0 }
 0x497   :  { %2439 = vmatpush.bf16.msra.mxu0 %v6458_v48  ;;  %2465 = vmatpush.bf16.msrb.mxu2 %v6459_v46 }
 0x49b   :  { %2440 = vmatpush.bf16.msra.mxu0 %v6460_v61  ;;  %2466 = vmatpush.bf16.msrb.mxu2 %v6461_v21 }
 0x49f   :  { %2441 = vmatpush.bf16.msra.mxu0 %v6462_v17  ;;  %2467 = vmatpush.bf16.msrb.mxu2 %v6463_v39  ;;  %v6467_v39 = vld [vmem:[#allocation17_spill] sm:$0xff] }
 0x4a3   :  { %2442 = vmatpush.bf16.msra.mxu0 %v6464_v53  ;;  %2468 = vmatpush.bf16.msrb.mxu2 %v6465_v58  ;;  %v6468_v58 = vld [vmem:[#allocation44_spill] sm:$0xff] }
 0x4a4   :  { %v171_v42 = vadd.f32 %v6469_v40, %v6468_v58 }
 0x4a9   :  { %v2117_v8 = vpop.f32.mrf.mxu1 }
 0x4af   :  { %v2143_v52 = vpop.f32.mrf.mxu3 }
 0x4b1   :  { %v2119_v36 = vpop.f32.mrf.mxu1 }
 0x4b7   :  { %v2145_v0 = vpop.f32.mrf.mxu3 }
 0x4b9   :  { %v2169_v5 = vpop.f32.mrf.mxu1 }
 0x4bf   :  { %v2195_v48 = vpop.f32.mrf.mxu3 }
 0x4c1   :  { %v2171_v11 = vpop.f32.mrf.mxu1 }
 0x4c3   :  { %v2104_v46 = vpop.f32.mrf.mxu0 }
 0x4c4   :  { %v2105_v61 = vadd.f32 %v2104_v46, %v6466_v43 }
 0x4c6   :  { %v2118_v57 = vadd.f32 %v2117_v8, %v2105_v61  ;;  %v6470_v61 = vld [vmem:[#allocation20_spill] sm:$0xff] }
 0x4c7   :  { %v2197_v45 = vpop.f32.mrf.mxu3 }
 0x4c8   :  { %v3710_v21 = vmul.f32 -1.442695, %v2118_v57 }
 0x4c9   :  { %v2130_v17 = vpop.f32.mrf.mxu2  ;;  %v2284_v54 = vpop.f32.mrf.mxu1 }
 0x4ca   :  { %4042 = vpow2.f32 %v3710_v21  ;;  %v2131_v9 = vadd.f32 %v2130_v17, %v6467_v39  ;;  %v2315_v24 = vadd.f32 %v2284_v54, %v171_v42 }
 0x4cb   :  { %v2106_v53 = vpop.f32.mrf.mxu0 }
 0x4cc   :  { %v2144_v36 = vadd.f32 %v2143_v52, %v2131_v9  ;;  %v3714_v46 = vmul.f32 -1.442695, %v2315_v24 }
 0x4ce   :  { %v3711_v0 = vmul.f32 -1.442695, %v2144_v36 }
 0x4cf   :  { %v5447_v8 = vpop.f32.mrf.mxu3 }
 0x4d0   :  { %v4043_v20 = vpop.eup %4042  ;;  %4044 = vpow2.f32 %v3711_v0 }
 0x4d1   :  { %v2208_v11 = vadd.f32 1.0, %v4043_v20  ;;  %v2132_v2 = vpop.f32.mrf.mxu2  ;;  %v2286_v57 = vpop.f32.mrf.mxu1 }
 0x4d2   :  { %v6471_v2 = vld [vmem:[#allocation21_spill] sm:$0xff] }
 0x4d3   :  { %4046 = vrcp.f32 %v2208_v11  ;;  %v2156_v45 = vpop.f32.mrf.mxu0  ;;  %vm2216_vm15 = vweird.f32 %v2208_v11 }
 0x4d4   :  { %v2157_v21 = vadd.f32 %v2156_v45, %v6470_v61  ;;  %4048 = vpow2.f32 %v3714_v46 }
 0x4d6   :  { %v4045_v17 = vpop.eup %4044  ;;  %v2170_v53 = vadd.f32 %v2169_v5, %v2157_v21 }
 0x4d7   :  { %v2209_v39 = vadd.f32 1.0, %v4045_v17  ;;  %v2312_v52 = vpop.f32.mrf.mxu3  ;;  %v2222_v17 = vand.u32 2147483648, %v2208_v11 }
 0x4d8   :  { %v3712_v40 = vmul.f32 -1.442695, %v2170_v53 }
 0x4d9   :  { %v4047_v9 = vpop.eup %4046  ;;  %4050 = vrcp.f32 %v2209_v39  ;;  %v2182_v42 = vpop.f32.mrf.mxu2  ;;  %vm2231_vm2 = vweird.f32 %v2209_v39 }
 0x4da   :  { %v2212_v54 = vmul.f32 %v4047_v9, %v2208_v11  ;;  %4052 = vpow2.f32 %v3712_v40  ;;  %v2183_v20 = vadd.f32 %v2182_v42, %v6471_v2  ;;  %v4049_v36 = vpop.eup %4048  ;;  %vm2217_vm14 = vweird.f32 %v4047_v9  ;;  %v6472_v42 = vld [vmem:[#allocation36_spill] sm:$0xff] }
 0x4db   :  { %v2158_v24 = vpop.f32.mrf.mxu0  ;;  %v5451_v45 = vadd.f32 1.0, %v4049_v36  ;;  %v2220_v40 = vand.u32 2147483647, %v2208_v11  ;;  %vm5456_vm0 = vmor %vm2216_vm15, %vm2217_vm14 }
 0x4dc   :  { %v2213_v0 = vsub.f32 1.0, %v2212_v54  ;;  %v2196_v58 = vadd.f32 %v2195_v48, %v2183_v20  ;;  %v6473_v24 = vld [vmem:[#allocation76_spill] sm:$0xff]  ;;  %v2237_v54 = vand.u32 2147483648, %v2209_v39  ;;  %v2235_v20 = vand.u32 2147483647, %v2209_v39 }
 0x4dd   :  { %v142_v2 = vadd.f32 %v6473_v24, %v6472_v42  ;;  %vm2221_vm3 = vcmp.eq.f32.partialorder %v2220_v40, 8.507059e+37  ;;  %vm2350_vm11 = vweird.f32 %v5451_v45 }
 0x4de   :  { %v2214_v57 = vmul.f32 %v4047_v9, %v2213_v0  ;;  %4054 = vtanh.f32 %v2196_v58  ;;  %vm2236_vm5 = vcmp.eq.f32.partialorder %v2235_v20, 8.507059e+37 }
 0x4df   :  { %v4051_v43 = vpop.eup %4050  ;;  %4056 = vrcp.f32 %v5451_v45 }
 0x4e0   :  { %v2227_v46 = vmul.f32 %v4051_v43, %v2209_v39  ;;  %v2215_v5 = vadd.f32 %v4047_v9, %v2214_v57  ;;  %v4053_v21 = vpop.eup %4052  ;;  %vm2232_vm1 = vweird.f32 %v4051_v43  ;;  %v2223_v57 = vor.u32 1.1754944e-38, %v2222_v17 }
 0x4e1   :  { %v2184_v53 = vpop.f32.mrf.mxu2  ;;  %v2210_v52 = vadd.f32 1.0, %v4053_v21  ;;  %vm2233_vm4 = vmor %vm2231_vm2, %vm2232_vm1 }
 0x4e2   :  { %v2228_v61 = vsub.f32 1.0, %v2227_v46  ;;  %v2219_v58 = vsel %vm5456_vm0, %v4047_v9, %v2215_v5  ;;  %v2238_v53 = vor.u32 1.1754944e-38, %v2237_v54 }
 0x4e3   :  { %v2271_v36 = vpop.f32.mrf.mxu0  ;;  %4058 = vrcp.f32 %v2210_v52  ;;  %v2224_v24 = vsel %vm2221_vm3, %v2223_v57, %v2219_v58  ;;  %vm2246_vm7 = vweird.f32 %v2210_v52 }
 0x4e4   :  { %v2229_v0 = vmul.f32 %v4051_v43, %v2228_v61  ;;  %v2314_v11 = vadd.f32 %v2271_v36, %v142_v2  ;;  %v4055_v21 = vpop.eup %4054  ;;  %v6476_v61 = vld [vmem:[#allocation71_spill] sm:$0xff] }
 0x4e5   :  { %v5462_v10 = vpop.eup %4056  ;;  %v200_v63 = vadd.f32 %v6477_v1, %v6476_v61  ;;  %v2258_v39 = vmul.f32 %v4055_v21, %v2224_v24  ;;  %v6510_v61 = vld [vmem:[#allocation72_spill] sm:$0xff] }
 0x4e6   :  { %v2230_v46 = vadd.f32 %v4051_v43, %v2229_v0  ;;  %v3713_v42 = vmul.f32 -1.442695, %v2314_v11  ;;  %v2252_v0 = vand.u32 2147483648, %v2210_v52  ;;  %vm2351_vm10 = vweird.f32 %v5462_v10 }
 0x4e7   :  { %vm5483_vm12 = vmor %vm2350_vm11, %vm2351_vm10 }
 0x4e8   :  { %v2234_v29 = vsel %vm2233_vm4, %v4051_v43, %v2230_v46  ;;  %4060 = vpow2.f32 %v3713_v42  ;;  %v2346_v43 = vmul.f32 %v5462_v10, %v5451_v45  ;;  %v2253_v57 = vor.u32 1.1754944e-38, %v2252_v0 }
 0x4e9   :  { %v2239_v6 = vsel %vm2236_vm5, %v2238_v53, %v2234_v29  ;;  %v4059_v9 = vpop.eup %4058  ;;  %v2297_v5 = vpop.f32.mrf.mxu2  ;;  %v2354_v0 = vand.u32 2147483647, %v5451_v45 }
 0x4ea   :  { %v2257_v2 = vmul.f32 %v2239_v6, %v5323_v15  ;;  %v2242_v17 = vmul.f32 %v4059_v9, %v2210_v52  ;;  %v2316_v40 = vadd.f32 %v2297_v5, %v200_v63  ;;  %vm2247_vm6 = vweird.f32 %v4059_v9  ;;  %v6479_v5 = vld [vmem:[#allocation86_spill] sm:$0xff] }
 0x4eb   :  { %v2273_v48 = vpop.f32.mrf.mxu0  ;;  %v2250_v6 = vand.u32 2147483647, %v2210_v52  ;;  %v2347_v42 = vsub.f32 1.0, %v2346_v43  ;;  %vm2248_vm8 = vmor %vm2246_vm7, %vm2247_vm6  ;;  %vm2355_vm14 = vcmp.eq.f32.partialorder %v2354_v0, 8.507059e+37 }
 0x4ec   :  { %v5467_v54 = vadd.f32 %v2258_v39, %v2257_v2  ;;  %v2243_v20 = vsub.f32 1.0, %v2242_v17  ;;  %v3715_v36 = vmul.f32 -1.442695, %v2316_v40  ;;  %v6478_v39 = vld [vmem:[#allocation50_spill] sm:$0xff] }
 0x4ed   :  { %vm2251_vm9 = vcmp.eq.f32.partialorder %v2250_v6, 8.507059e+37  ;;  %v2348_v24 = vmul.f32 %v5462_v10, %v2347_v42  ;;  %v229_v17 = vadd.f32 %v6479_v5, %v6478_v39  ;;  %v6509_v39 = vld [vmem:[#allocation70_spill] sm:$0xff] }
 0x4ee   :  { %4062 = vtanh.f32 %v5467_v54  ;;  %v4061_v1 = vpop.eup %4060  ;;  %v2244_v29 = vmul.f32 %v4059_v9, %v2243_v20 }
 0x4ef   :  { %4064 = vpow2.f32 %v3715_v36  ;;  %v2327_v15 = vadd.f32 1.0, %v4061_v1  ;;  %v2317_v52 = vadd.f32 %v5447_v8, %v229_v17  ;;  %v2349_v20 = vadd.f32 %v5462_v10, %v2348_v24 }
 0x4f0   :  { %v2245_v63 = vadd.f32 %v4059_v9, %v2244_v29  ;;  %v2356_v36 = vand.u32 2147483648, %v5451_v45 }
 0x4f1   :  { %4066 = vrcp.f32 %v2327_v15  ;;  %v2299_v58 = vpop.f32.mrf.mxu2  ;;  %v2341_v29 = vand.u32 2147483648, %v2327_v15  ;;  %v2353_v6 = vsel %vm5483_vm12, %v5462_v10, %v2349_v20  ;;  %vm2335_vm15 = vweird.f32 %v2327_v15 }
 0x4f2   :  { %v2249_v11 = vsel %vm2248_vm8, %v4059_v9, %v2245_v63  ;;  %v2339_v63 = vand.u32 2147483647, %v2327_v15 }
 0x4f3   :  { %v2254_v21 = vsel %vm2251_vm9, %v2253_v57, %v2249_v11  ;;  %v2357_v57 = vor.u32 1.1754944e-38, %v2356_v36 }
 0x4f4   :  { %v4063_v46 = vpop.eup %4062  ;;  %vm2340_vm1 = vcmp.eq.f32.partialorder %v2339_v63, 8.507059e+37  ;;  %v6486_v63 = vld [vmem:[#allocation45_spill] sm:$0xff] }
 0x4f5   :  { %v4065_v53 = vpop.eup %4064  ;;  %v2261_v2 = vmul.f32 %v4063_v46, %v2254_v21  ;;  %v2358_v46 = vsel %vm2355_vm14, %v2357_v57, %v2353_v6  ;;  %v2342_v21 = vor.u32 1.1754944e-38, %v2341_v29  ;;  %v6484_v6 = vld [vmem:[#allocation29_spill] sm:$0xff]  ;;  %v6488_v57 = vld [vmem:[#allocation34_spill] sm:$0xff] }
 0x4f6   :  { %v2329_v40 = vadd.f32 1.0, %v4065_v53  ;;  %v2376_v5 = vmul.f32 %v2358_v46, %v5350_v50  ;;  %v6491_v46 = vld [vmem:[#allocation33_spill] sm:$0xff] }
 0x4f7   :  { %v2382_v48 = vpack.c.bf16 %v2261_v2, %v2261_v2  ;;  %v4067_v43 = vpop.eup %4066 }
 0x4f8   :  { %4068 = vrcp.f32 %v2329_v40  ;;  %v2331_v9 = vmul.f32 %v4067_v43, %v2327_v15  ;;  %vm2336_vm13 = vweird.f32 %v4067_v43  ;;  %vm2365_vm3 = vweird.f32 %v2329_v40 }
 0x4f9   :  { %2404 = vmatmul.bf16.vlgmr.msrb.gmra.mxu1 %v2382_v48  ;;  %2430 = vmatmul.bf16.vlgmr.msrb.gmra.mxu3 %v2382_v48  ;;  %4070 = vtanh.f32 %v2317_v52  ;;  %vm2337_vm0 = vmor %vm2335_vm15, %vm2336_vm13 }
 0x4fa   :  { %2563 = vmatpush.bf16.msrb.mxu1 %v6182_v25  ;;  %2589 = vmatpush.bf16.msrb.mxu3 %v6183_v47  ;;  %v2332_v1 = vsub.f32 1.0, %v2331_v9  ;;  %v2369_v9 = vand.u32 2147483647, %v2329_v40 }
 0x4fc   :  { %v2333_v42 = vmul.f32 %v4067_v43, %v2332_v1  ;;  %vm2370_vm5 = vcmp.eq.f32.partialorder %v2369_v9, 8.507059e+37  ;;  %v6502_v9 = vld [vmem:[#allocation59_spill] sm:$0xff] }
 0x4fe   :  { %v4069_v58 = vpop.eup %4068  ;;  %2564 = vmatpush.bf16.msrb.mxu1 %v6186_v33  ;;  %2590 = vmatpush.bf16.msrb.mxu3 %v6257_v41  ;;  %v2334_v45 = vadd.f32 %v4067_v43, %v2333_v42  ;;  %v6485_v42 = vld [vmem:[#allocation43_spill] sm:$0xff] }
 0x4ff   :  { %v2361_v11 = vmul.f32 %v4069_v58, %v2329_v40  ;;  %v4071_v10 = vpop.eup %4070  ;;  %vm2366_vm2 = vweird.f32 %v4069_v58 }
 0x500   :  { %v2338_v53 = vsel %vm2337_vm0, %v4067_v43, %v2334_v45  ;;  %v2371_v43 = vand.u32 2147483648, %v2329_v40  ;;  %vm2367_vm4 = vmor %vm2365_vm3, %vm2366_vm2  ;;  %v6482_v40 = vld [vmem:[#allocation40_spill] sm:$0xff] }
 0x501   :  { %v2362_v24 = vsub.f32 1.0, %v2361_v11  ;;  %v2343_v2 = vsel %vm2340_vm1, %v2342_v21, %v2338_v53  ;;  %v6489_v45 = vld [vmem:[#allocation48_spill] sm:$0xff]  ;;  %v6490_v11 = vld [vmem:[#allocation49_spill] sm:$0xff]  ;;  %v6492_v21 = vld [vmem:[#allocation35_spill] sm:$0xff] }
 0x502   :  { %2565 = vmatpush.bf16.msrb.mxu1 %v6188_v23  ;;  %2591 = vmatpush.bf16.msrb.mxu3 %v6189_v22  ;;  %v2377_v17 = vmul.f32 %v4071_v10, %v2343_v2  ;;  %v2372_v50 = vor.u32 1.1754944e-38, %v2371_v43  ;;  %v6493_v53 = vld [vmem:[#allocation62_spill] sm:$0xff]  ;;  %v6495_v10 = vld [vmem:[#allocation63_spill] sm:$0xff] }
 0x503   :  { %v2363_v52 = vmul.f32 %v4069_v58, %v2362_v24  ;;  %v6494_v24 = vld [vmem:[#allocation51_spill] sm:$0xff]  ;;  %v6496_v2 = vld [vmem:[#allocation54_spill] sm:$0xff] }
 0x504   :  { %v5495_v20 = vadd.f32 %v2377_v17, %v2376_v5  ;;  %v6497_v5 = vld [vmem:[#allocation68_spill] sm:$0xff]  ;;  %v6501_v43 = vld [vmem:[#allocation58_spill] sm:$0xff] }
 0x505   :  { %v2364_v15 = vadd.f32 %v4069_v58, %v2363_v52  ;;  %v6498_v17 = vld [vmem:[#allocation56_spill] sm:$0xff]  ;;  %v6499_v52 = vld [vmem:[#allocation69_spill] sm:$0xff] }
 0x506   :  { %2566 = vmatpush.bf16.msrb.mxu1 %v6190_v51  ;;  %2592 = vmatpush.bf16.msrb.mxu3 %v6191_v14  ;;  %4072 = vtanh.f32 %v5495_v20 }
 0x507   :  { %v2368_v36 = vsel %vm2367_vm4, %v4069_v58, %v2364_v15  ;;  %v6487_v58 = vld [vmem:[#allocation31_spill] sm:$0xff]  ;;  %v6500_v15 = vld [vmem:[#allocation57_spill] sm:$0xff] }
 0x508   :  { %v2373_v1 = vsel %vm2370_vm5, %v2372_v50, %v2368_v36  ;;  %v6503_v36 = vld [vmem:[#allocation74_spill] sm:$0xff]  ;;  %v6504_v50 = vld [vmem:[#allocation77_spill] sm:$0xff] }
 0x509   :  { %2456 = vmatmul.bf16.vlgmr.msra.gmra.mxu1 %v2382_v48  ;;  %2482 = vmatmul.bf16.vlgmr.msra.gmra.mxu3 %v2382_v48  ;;  %v6483_v48 = vld [vmem:[#allocation25_spill] sm:$0xff] }
 0x50a   :  { %2567 = vmatpush.bf16.msrb.mxu1 %v4380_v4  ;;  %2593 = vmatpush.bf16.msrb.mxu3 %v6192_v60 }
 0x50c   :  { %v4073_v0 = vpop.eup %4072 }
 0x50d   :  { %v2380_v8 = vmul.f32 %v4073_v0, %v2373_v1  ;;  %v6505_v0 = vld [vmem:[#allocation64_spill] sm:$0xff]  ;;  %v6506_v1 = vld [vmem:[#allocation66_spill] sm:$0xff] }
 0x50e   :  { %2568 = vmatpush.bf16.msrb.mxu1 %v6193_v30  ;;  %2594 = vmatpush.bf16.msrb.mxu3 %v6194_v62 }
 0x50f   :  { %v2381_v29 = vpack.c.bf16 %v2380_v8, %v2380_v8  ;;  %v6507_v8 = vld [vmem:[#allocation81_spill] sm:$0xff] }
 0x511   :  { %2391 = vmatmul.bf16.vlgmr.msrb.gmra.mxu0 %v2381_v29  ;;  %2417 = vmatmul.bf16.vlgmr.msra.gmra.mxu2 %v2381_v29 }
 0x512   :  { %2550 = vmatpush.bf16.msrb.mxu0 %v4327_v27  ;;  %2569 = vmatpush.bf16.msrb.mxu1 %v6195_v16 }
 0x513   :  { %2576 = vmatpush.bf16.msra.mxu2 %v4325_v26  ;;  %2595 = vmatpush.bf16.msrb.mxu3 %v6196_v44 }
 0x516   :  { %2551 = vmatpush.bf16.msrb.mxu0 %v4344_v37  ;;  %2570 = vmatpush.bf16.msrb.mxu1 %v4432_v56 }
 0x517   :  { %2577 = vmatpush.bf16.msra.mxu2 %v4346_v38  ;;  %2596 = vmatpush.bf16.msrb.mxu3 %v4438_v59 }
 0x519   :  { %2571 = vmatmul.bf16.vlgmr.msrb.gmra.mxu1 %v2381_v29 }
 0x51a   :  { %2684 = vmatpush.bf16.msra.mxu1 %v4461_v13  ;;  %2597 = vmatmul.bf16.vlgmr.msrb.gmra.mxu3 %v2381_v29 }
 0x51b   :  { %2710 = vmatpush.bf16.msra.mxu3 %v4470_v19  ;;  %2552 = vmatpush.bf16.msrb.mxu0 %v6138_v12 }
 0x51c   :  { %2578 = vmatpush.bf16.msra.mxu2 %v6139_v34 }
 0x51e   :  { %2685 = vmatpush.bf16.msra.mxu1 %v4479_v31 }
 0x51f   :  { %2711 = vmatpush.bf16.msra.mxu3 %v4481_v35  ;;  %2553 = vmatpush.bf16.msrb.mxu0 %v6142_v28 }
 0x520   :  { %2579 = vmatpush.bf16.msra.mxu2 %v6143_v7 }
 0x521   :  { %2443 = vmatmul.bf16.vlgmr.msra.gmra.mxu0 %v2381_v29  ;;  %2469 = vmatmul.bf16.vlgmr.msrb.gmra.mxu2 %v2381_v29 }
 0x522   :  { %2686 = vmatpush.bf16.msra.mxu1 %v4490_v49 }
 0x523   :  { %2712 = vmatpush.bf16.msra.mxu3 %v4494_v55  ;;  %2554 = vmatpush.bf16.msrb.mxu0 %v6146_v18 }
 0x524   :  { %2580 = vmatpush.bf16.msra.mxu2 %v6147_v32 }
 0x526   :  { %2687 = vmatpush.bf16.msra.mxu1 %v4500_v3 }
 0x527   :  { %2713 = vmatpush.bf16.msra.mxu3 %v6482_v40  ;;  %2555 = vmatpush.bf16.msrb.mxu0 %v6483_v48 }
 0x528   :  { %2581 = vmatpush.bf16.msra.mxu2 %v6484_v6 }
 0x52a   :  { %2688 = vmatpush.bf16.msra.mxu1 %v6485_v42 }
 0x52b   :  { %2714 = vmatpush.bf16.msra.mxu3 %v6486_v63  ;;  %2556 = vmatpush.bf16.msrb.mxu0 %v6487_v58 }
 0x52c   :  { %2582 = vmatpush.bf16.msra.mxu2 %v6488_v57 }
 0x52e   :  { %2689 = vmatpush.bf16.msra.mxu1 %v6489_v45 }
 0x52f   :  { %2715 = vmatpush.bf16.msra.mxu3 %v6490_v11  ;;  %2557 = vmatpush.bf16.msrb.mxu0 %v6491_v46  ;;  %v6547_v11 = vld [vmem:[#allocation91_spill] sm:$0xff] }
 0x530   :  { %2583 = vmatpush.bf16.msra.mxu2 %v6492_v21 }
 0x532   :  { %2690 = vmatpush.bf16.msra.mxu1 %v6494_v24  ;;  %2558 = vmatmul.bf16.vlgmr.msrb.gmra.mxu0 %v2381_v29 }
 0x533   :  { %2671 = vmatpush.bf16.msra.mxu0 %v6493_v53  ;;  %2716 = vmatpush.bf16.msra.mxu3 %v6496_v2  ;;  %v6545_v2 = vld [vmem:[#allocation16_spill] sm:$0xff] }
 0x534   :  { %2697 = vmatpush.bf16.msrb.mxu2 %v6495_v10 }
 0x535   :  { %2584 = vmatmul.bf16.vlgmr.msra.gmra.mxu2 %v2381_v29  ;;  %v6508_v29 = vld [vmem:[#allocation82_spill] sm:$0xff] }
 0x536   :  { %2691 = vmatpush.bf16.msra.mxu1 %v6498_v17 }
 0x537   :  { %2672 = vmatpush.bf16.msra.mxu0 %v6497_v5  ;;  %2717 = vmatpush.bf16.msra.mxu3 %v6500_v15  ;;  %v6511_v15 = vld [vmem:[#allocation87_spill] sm:$0xff] }
 0x538   :  { %2698 = vmatpush.bf16.msrb.mxu2 %v6499_v52 }
 0x53a   :  { %2736 = vmatpush.bf16.msrb.mxu1 %v6501_v43  ;;  %v6512_v43 = vld [vmem:[#allocation88_spill] sm:$0xff] }
 0x53b   :  { %2762 = vmatpush.bf16.msrb.mxu3 %v6502_v9  ;;  %2673 = vmatpush.bf16.msra.mxu0 %v6503_v36  ;;  %v6513_v9 = vld [vmem:[#allocation78_spill] sm:$0xff]  ;;  %v6514_v36 = vld [vmem:[#allocation80_spill] sm:$0xff] }
 0x53c   :  { %2699 = vmatpush.bf16.msrb.mxu2 %v6504_v50  ;;  %v6515_v50 = vld [vmem:[#allocation92_spill] sm:$0xff] }
 0x53e   :  { %2737 = vmatpush.bf16.msrb.mxu1 %v6505_v0  ;;  %v6516_v0 = vld [vmem:[#allocation93_spill] sm:$0xff] }
 0x53f   :  { %2763 = vmatpush.bf16.msrb.mxu3 %v6506_v1  ;;  %2674 = vmatpush.bf16.msra.mxu0 %v6507_v8  ;;  %v6517_v1 = vld [vmem:[#allocation83_spill] sm:$0xff]  ;;  %v6518_v8 = vld [vmem:[#allocation84_spill] sm:$0xff] }
 0x540   :  { %2700 = vmatpush.bf16.msrb.mxu2 %v6508_v29  ;;  %v6519_v29 = vld [vmem:[#allocation97_spill] sm:$0xff] }
 0x542   :  { %2738 = vmatpush.bf16.msrb.mxu1 %v6509_v39  ;;  %v6520_v39 = vld [vmem:[#allocation99_spill] sm:$0xff] }
 0x543   :  { %2764 = vmatpush.bf16.msrb.mxu3 %v6510_v61  ;;  %2675 = vmatpush.bf16.msra.mxu0 %v6511_v15  ;;  %v6521_v61 = vld [vmem:[#allocation89_spill] sm:$0xff]  ;;  %v6522_v15 = vld [vmem:[#allocation90_spill] sm:$0xff] }
 0x544   :  { %2701 = vmatpush.bf16.msrb.mxu2 %v6512_v43  ;;  %v6523_v43 = vld [vmem:[#allocation103_spill] sm:$0xff] }
 0x546   :  { %2739 = vmatpush.bf16.msrb.mxu1 %v6513_v9  ;;  %v6524_v9 = vld [vmem:[#allocation104_spill] sm:$0xff] }
 0x547   :  { %2765 = vmatpush.bf16.msrb.mxu3 %v6514_v36  ;;  %2676 = vmatpush.bf16.msra.mxu0 %v6515_v50  ;;  %v6525_v36 = vld [vmem:[#allocation105_spill] sm:$0xff]  ;;  %v6526_v50 = vld [vmem:[#allocation94_spill] sm:$0xff] }
 0x548   :  { %2702 = vmatpush.bf16.msrb.mxu2 %v6516_v0  ;;  %v6527_v0 = vld [vmem:[#allocation106_spill] sm:$0xff] }
 0x54a   :  { %2740 = vmatpush.bf16.msrb.mxu1 %v6517_v1  ;;  %v6528_v1 = vld [vmem:[#allocation95_spill] sm:$0xff] }
 0x54b   :  { %2766 = vmatpush.bf16.msrb.mxu3 %v6518_v8  ;;  %2677 = vmatpush.bf16.msra.mxu0 %v6519_v29  ;;  %v6529_v8 = vld [vmem:[#allocation109_spill] sm:$0xff]  ;;  %v6530_v29 = vld [vmem:[#allocation100_spill] sm:$0xff] }
 0x54c   :  { %2703 = vmatpush.bf16.msrb.mxu2 %v6520_v39  ;;  %v6531_v39 = vld [vmem:[#allocation110_spill] sm:$0xff] }
 0x54e   :  { %2741 = vmatpush.bf16.msrb.mxu1 %v6521_v61  ;;  %v6532_v61 = vld [vmem:[#allocation102_spill] sm:$0xff] }
 0x54f   :  { %2767 = vmatpush.bf16.msrb.mxu3 %v6522_v15  ;;  %2678 = vmatpush.bf16.msra.mxu0 %v6523_v43  ;;  %v6533_v15 = vld [vmem:[#allocation111_spill] sm:$0xff]  ;;  %v6534_v43 = vld [vmem:[#allocation112_spill] sm:$0xff] }
 0x550   :  { %2704 = vmatpush.bf16.msrb.mxu2 %v6524_v9  ;;  %v6535_v9 = vld [vmem:[#allocation114_spill] sm:$0xff] }
 0x552   :  { %2742 = vmatpush.bf16.msrb.mxu1 %v6526_v50  ;;  %v6537_v50 = vld [vmem:[#allocation116_spill] sm:$0xff] }
 0x553   :  { %2723 = vmatpush.bf16.msrb.mxu0 %v6525_v36  ;;  %2768 = vmatpush.bf16.msrb.mxu3 %v6528_v1  ;;  %v6536_v36 = vld [vmem:[#allocation115_spill] sm:$0xff] }
 0x554   :  { %2749 = vmatpush.bf16.msra.mxu2 %v6527_v0  ;;  %v6538_v0 = vld [vmem:[#allocation117_spill] sm:$0xff]  ;;  %v6539_v1 = vld [vmem:[#allocation119_spill] sm:$0xff] }
 0x556   :  { %2743 = vmatpush.bf16.msrb.mxu1 %v6530_v29  ;;  %v6541_v29 = vld [vmem:[#allocation121_spill] sm:$0xff] }
 0x557   :  { %2724 = vmatpush.bf16.msrb.mxu0 %v6529_v8  ;;  %2769 = vmatpush.bf16.msrb.mxu3 %v6532_v61  ;;  %v6540_v8 = vld [vmem:[#allocation120_spill] sm:$0xff]  ;;  %v6543_v61 = vld [vmem:[#allocation123_spill] sm:$0xff] }
 0x558   :  { %2750 = vmatpush.bf16.msra.mxu2 %v6531_v39  ;;  %v6542_v39 = vld [vmem:[#allocation122_spill] sm:$0xff] }
 0x55b   :  { %2725 = vmatpush.bf16.msrb.mxu0 %v6533_v15  ;;  %v6544_v15 = vld [vmem:[#allocation124_spill] sm:$0xff] }
 0x55c   :  { %2751 = vmatpush.bf16.msra.mxu2 %v6534_v43 }
 0x55f   :  { %2726 = vmatpush.bf16.msrb.mxu0 %v6535_v9 }
 0x560   :  { %2752 = vmatpush.bf16.msra.mxu2 %v6536_v36 }
 0x563   :  { %2727 = vmatpush.bf16.msrb.mxu0 %v6537_v50 }
 0x564   :  { %2753 = vmatpush.bf16.msra.mxu2 %v6538_v0 }
 0x567   :  { %2728 = vmatpush.bf16.msrb.mxu0 %v6539_v1 }
 0x568   :  { %2754 = vmatpush.bf16.msra.mxu2 %v6540_v8 }
 0x56b   :  { %2729 = vmatpush.bf16.msrb.mxu0 %v6541_v29 }
 0x56c   :  { %2755 = vmatpush.bf16.msra.mxu2 %v6542_v39  ;;  %v6546_v39 = vld [vmem:[#allocation17_spill] sm:$0xff] }
 0x56f   :  { %2730 = vmatpush.bf16.msrb.mxu0 %v6543_v61 }
 0x570   :  { %2756 = vmatpush.bf16.msra.mxu2 %v6544_v15 }
 0x576   :  { %v2405_v43 = vpop.f32.mrf.mxu1 }
 0x57c   :  { %v2431_v9 = vpop.f32.mrf.mxu3 }
 0x57e   :  { %v2407_v52 = vpop.f32.mrf.mxu1 }
 0x584   :  { %v2433_v36 = vpop.f32.mrf.mxu3 }
 0x586   :  { %v2457_v17 = vpop.f32.mrf.mxu1 }
 0x58c   :  { %v2483_v50 = vpop.f32.mrf.mxu3 }
 0x58e   :  { %v2459_v5 = vpop.f32.mrf.mxu1  ;;  %v2392_v0 = vpop.f32.mrf.mxu0 }
 0x58f   :  { %v2393_v1 = vadd.f32 %v2392_v0, %v6545_v2 }
 0x591   :  { %v2406_v10 = vadd.f32 %v2405_v43, %v2393_v1  ;;  %v6548_v43 = vld [vmem:[#allocation20_spill] sm:$0xff] }
 0x593   :  { %v3716_v8 = vmul.f32 -1.442695, %v2406_v10 }
 0x594   :  { %v2485_v24 = vpop.f32.mrf.mxu3  ;;  %v2418_v29 = vpop.f32.mrf.mxu2 }
 0x595   :  { %4074 = vpow2.f32 %v3716_v8  ;;  %v2419_v53 = vadd.f32 %v2418_v29, %v6546_v39 }
 0x596   :  { %v2394_v61 = vpop.f32.mrf.mxu0  ;;  %v2572_v21 = vpop.f32.mrf.mxu1 }
 0x597   :  { %v2432_v15 = vadd.f32 %v2431_v9, %v2419_v53  ;;  %v2603_v52 = vadd.f32 %v2572_v21, %v6547_v11  ;;  %v6549_v9 = vld [vmem:[#allocation21_spill] sm:$0xff] }
 0x599   :  { %v3717_v46 = vmul.f32 -1.442695, %v2432_v15  ;;  %v3720_v57 = vmul.f32 -1.442695, %v2603_v52 }
 0x59b   :  { %v4075_v36 = vpop.eup %4074  ;;  %4076 = vpow2.f32 %v3717_v46 }
 0x59c   :  { %v2496_v45 = vadd.f32 1.0, %v4075_v36  ;;  %v2420_v5 = vpop.f32.mrf.mxu2 }
 0x59d   :  { %v5591_v58 = vpop.f32.mrf.mxu3 }
 0x59e   :  { %4078 = vrcp.f32 %v2496_v45  ;;  %v2444_v10 = vpop.f32.mrf.mxu0  ;;  %v2574_v24 = vpop.f32.mrf.mxu1  ;;  %vm2504_vm7 = vweird.f32 %v2496_v45 }
 0x59f   :  { %v2445_v0 = vadd.f32 %v2444_v10, %v6548_v43  ;;  %4080 = vpow2.f32 %v3720_v57 }
 0x5a1   :  { %v4077_v1 = vpop.eup %4076  ;;  %v2458_v61 = vadd.f32 %v2457_v17, %v2445_v0 }
 0x5a2   :  { %v2497_v8 = vadd.f32 1.0, %v4077_v1  ;;  %v2510_v1 = vand.u32 2147483648, %v2496_v45 }
 0x5a3   :  { %v3718_v53 = vmul.f32 -1.442695, %v2458_v61 }
 0x5a4   :  { %v4079_v15 = vpop.eup %4078  ;;  %4082 = vrcp.f32 %v2497_v8  ;;  %v2470_v11 = vpop.f32.mrf.mxu2  ;;  %vm2519_vm10 = vweird.f32 %v2497_v8 }
 0x5a5   :  { %v2500_v21 = vmul.f32 %v4079_v15, %v2496_v45  ;;  %v2600_v46 = vpop.f32.mrf.mxu3  ;;  %4084 = vpow2.f32 %v3718_v53  ;;  %v2471_v29 = vadd.f32 %v2470_v11, %v6549_v9  ;;  %v4081_v36 = vpop.eup %4080  ;;  %vm2505_vm6 = vweird.f32 %v4079_v15 }
 0x5a6   :  { %v2446_v52 = vpop.f32.mrf.mxu0  ;;  %v5595_v10 = vadd.f32 1.0, %v4081_v36  ;;  %v2508_v53 = vand.u32 2147483647, %v2496_v45  ;;  %v2525_v11 = vand.u32 2147483648, %v2497_v8  ;;  %vm5598_vm8 = vmor %vm2504_vm7, %vm2505_vm6  ;;  %v2511_v36 = vor.u32 1.1754944e-38, %v2510_v1 }
 0x5a7   :  { %v2501_v5 = vsub.f32 1.0, %v2500_v21  ;;  %v2484_v39 = vadd.f32 %v2483_v50, %v2471_v29  ;;  %v2523_v21 = vand.u32 2147483647, %v2497_v8 }
 0x5a8   :  { %vm2509_vm11 = vcmp.eq.f32.partialorder %v2508_v53, 8.507059e+37  ;;  %vm2638_vm3 = vweird.f32 %v5595_v10 }
 0x5a9   :  { %v2502_v24 = vmul.f32 %v4079_v15, %v2501_v5  ;;  %4086 = vtanh.f32 %v2484_v39  ;;  %v6552_v5 = vld [vmem:[#allocation37_spill] sm:$0xff]  ;;  %vm2524_vm13 = vcmp.eq.f32.partialorder %v2523_v21, 8.507059e+37 }
 0x5aa   :  { %v4083_v2 = vpop.eup %4082  ;;  %4088 = vrcp.f32 %v5595_v10 }
 0x5ab   :  { %v2515_v57 = vmul.f32 %v4083_v2, %v2497_v8  ;;  %v2503_v17 = vadd.f32 %v4079_v15, %v2502_v24  ;;  %v4085_v0 = vpop.eup %4084  ;;  %vm2520_vm9 = vweird.f32 %v4083_v2  ;;  %v6553_v8 = vld [vmem:[#allocation113_spill] sm:$0xff] }
 0x5ac   :  { %v2472_v61 = vpop.f32.mrf.mxu2  ;;  %v2498_v46 = vadd.f32 1.0, %v4085_v0  ;;  %vm2521_vm12 = vmor %vm2519_vm10, %vm2520_vm9  ;;  %v2526_v0 = vor.u32 1.1754944e-38, %v2525_v11 }
 0x5ad   :  { %v2516_v43 = vsub.f32 1.0, %v2515_v57  ;;  %v2507_v39 = vsel %vm5598_vm8, %v4079_v15, %v2503_v17 }
 0x5ae   :  { %4090 = vrcp.f32 %v2498_v46  ;;  %v2512_v61 = vsel %vm2509_vm11, %v2511_v36, %v2507_v39  ;;  %v2540_v39 = vand.u32 2147483648, %v2498_v46  ;;  %vm2534_vm15 = vweird.f32 %v2498_v46 }
 0x5af   :  { %v2559_v29 = vpop.f32.mrf.mxu0  ;;  %v2517_v52 = vmul.f32 %v4083_v2, %v2516_v43  ;;  %v4087_v57 = vpop.eup %4086 }
 0x5b0   :  { %v2602_v24 = vadd.f32 %v2559_v29, %v6552_v5  ;;  %v5605_v42 = vpop.eup %4088  ;;  %v2546_v17 = vmul.f32 %v4087_v57, %v2512_v61  ;;  %v2541_v57 = vor.u32 1.1754944e-38, %v2540_v39 }
 0x5b1   :  { %v2518_v45 = vadd.f32 %v4083_v2, %v2517_v52  ;;  %v2634_v11 = vmul.f32 %v5605_v42, %v5595_v10  ;;  %vm2639_vm2 = vweird.f32 %v5605_v42 }
 0x5b2   :  { %v3719_v9 = vmul.f32 -1.442695, %v2602_v24  ;;  %vm5624_vm4 = vmor %vm2638_vm3, %vm2639_vm2 }
 0x5b3   :  { %v2522_v63 = vsel %vm2521_vm12, %v4083_v2, %v2518_v45  ;;  %v2635_v5 = vsub.f32 1.0, %v2634_v11 }
 0x5b4   :  { %v2527_v43 = vsel %vm2524_vm13, %v2526_v0, %v2522_v63  ;;  %4092 = vpow2.f32 %v3719_v9  ;;  %v4091_v6 = vpop.eup %4090 }
 0x5b5   :  { %v2545_v15 = vmul.f32 %v2527_v43, %v5467_v54  ;;  %v2530_v50 = vmul.f32 %v4091_v6, %v2498_v46  ;;  %vm2535_vm14 = vweird.f32 %v4091_v6  ;;  %v2538_v54 = vand.u32 2147483647, %v2498_v46 }
 0x5b6   :  { %vm2536_vm0 = vmor %vm2534_vm15, %vm2535_vm14 }
 0x5b7   :  { %v2561_v29 = vpop.f32.mrf.mxu0  ;;  %v5609_v52 = vadd.f32 %v2546_v17, %v2545_v15  ;;  %v2531_v2 = vsub.f32 1.0, %v2530_v50  ;;  %vm2539_vm1 = vcmp.eq.f32.partialorder %v2538_v54, 8.507059e+37  ;;  %v2636_v17 = vmul.f32 %v5605_v42, %v2635_v5 }
 0x5b8   :  { %v2585_v1 = vpop.f32.mrf.mxu2  ;;  %v6554_v29 = vld [vmem:[#allocation98_spill] sm:$0xff] }
 0x5b9   :  { %v2604_v53 = vadd.f32 %v2585_v1, %v6553_v8  ;;  %4094 = vtanh.f32 %v5609_v52  ;;  %v2532_v9 = vmul.f32 %v4091_v6, %v2531_v2  ;;  %v2605_v11 = vadd.f32 %v5591_v58, %v6554_v29  ;;  %v6592_v58 = vld [vmem:[#allocation97_spill] sm:$0xff] }
 0x5ba   :  { %v4093_v63 = vpop.eup %4092  ;;  %v2637_v46 = vadd.f32 %v5605_v42, %v2636_v17 }
 0x5bb   :  { %v3721_v21 = vmul.f32 -1.442695, %v2604_v53  ;;  %v2615_v36 = vadd.f32 1.0, %v4093_v63  ;;  %v2533_v24 = vadd.f32 %v4091_v6, %v2532_v9 }
 0x5bc   :  { %v2641_v9 = vsel %vm5624_vm4, %v5605_v42, %v2637_v46  ;;  %v6587_v46 = vld [vmem:[#allocation80_spill] sm:$0xff] }
 0x5bd   :  { %4096 = vpow2.f32 %v3721_v21  ;;  %v2537_v0 = vsel %vm2536_vm0, %v4091_v6, %v2533_v24  ;;  %v2644_v6 = vand.u32 2147483648, %v5595_v10  ;;  %v2642_v21 = vand.u32 2147483647, %v5595_v10 }
 0x5be   :  { %4098 = vrcp.f32 %v2615_v36  ;;  %v2542_v43 = vsel %vm2539_vm1, %v2541_v57, %v2537_v0  ;;  %v2629_v63 = vand.u32 2147483648, %v2615_v36  ;;  %vm2623_vm7 = vweird.f32 %v2615_v36 }
 0x5bf   :  { %v4095_v61 = vpop.eup %4094  ;;  %vm2643_vm6 = vcmp.eq.f32.partialorder %v2642_v21, 8.507059e+37  ;;  %v6590_v21 = vld [vmem:[#allocation83_spill] sm:$0xff] }
 0x5c0   :  { %v2587_v45 = vpop.f32.mrf.mxu2  ;;  %v2549_v1 = vmul.f32 %v4095_v61, %v2542_v43  ;;  %v2630_v57 = vor.u32 1.1754944e-38, %v2629_v63  ;;  %v6593_v63 = vld [vmem:[#allocation99_spill] sm:$0xff] }
 0x5c2   :  { %v2670_v8 = vpack.c.bf16 %v2549_v1, %v2549_v1 }
 0x5c3   :  { %v4097_v15 = vpop.eup %4096 }
 0x5c4   :  { %v2617_v50 = vadd.f32 1.0, %v4097_v15  ;;  %v4099_v53 = vpop.eup %4098  ;;  %2692 = vmatmul.bf16.vlgmr.msra.gmra.mxu1 %v2670_v8  ;;  %2718 = vmatmul.bf16.vlgmr.msra.gmra.mxu3 %v2670_v8 }
 0x5c5   :  { %v2619_v2 = vmul.f32 %v4099_v53, %v2615_v36  ;;  %2851 = vmatpush.bf16.msra.mxu1 %v6182_v25  ;;  %2877 = vmatpush.bf16.msra.mxu3 %v6183_v47  ;;  %vm2624_vm5 = vweird.f32 %v4099_v53  ;;  %v2627_v25 = vand.u32 2147483647, %v2615_v36  ;;  %v2645_v47 = vor.u32 1.1754944e-38, %v2644_v6  ;;  %v6589_v6 = vld [vmem:[#allocation93_spill] sm:$0xff] }
 0x5c6   :  { %4100 = vrcp.f32 %v2617_v50  ;;  %vm2625_vm8 = vmor %vm2623_vm7, %vm2624_vm5  ;;  %v2659_v1 = vand.u32 2147483648, %v2617_v50  ;;  %vm2653_vm11 = vweird.f32 %v2617_v50 }
 0x5c7   :  { %v2620_v39 = vsub.f32 1.0, %v2619_v2  ;;  %4102 = vtanh.f32 %v2605_v11  ;;  %v2646_v45 = vsel %vm2643_vm6, %v2645_v47, %v2641_v9  ;;  %vm2628_vm9 = vcmp.eq.f32.partialorder %v2627_v25, 8.507059e+37  ;;  %v6586_v11 = vld [vmem:[#allocation78_spill] sm:$0xff]  ;;  %v6588_v2 = vld [vmem:[#allocation92_spill] sm:$0xff]  ;;  %v6594_v9 = vld [vmem:[#allocation89_spill] sm:$0xff] }
 0x5c8   :  { %v6596_v25 = vld [vmem:[#allocation103_spill] sm:$0xff]  ;;  %v6598_v47 = vld [vmem:[#allocation105_spill] sm:$0xff] }
 0x5c9   :  { %v2621_v54 = vmul.f32 %v4099_v53, %v2620_v39  ;;  %2852 = vmatpush.bf16.msra.mxu1 %v6186_v33  ;;  %2878 = vmatpush.bf16.msra.mxu3 %v6257_v41  ;;  %v2664_v33 = vmul.f32 %v2646_v45, %v5495_v20  ;;  %v6591_v39 = vld [vmem:[#allocation84_spill] sm:$0xff]  ;;  %v6601_v45 = vld [vmem:[#allocation95_spill] sm:$0xff] }
 0x5cb   :  { %v2622_v10 = vadd.f32 %v4099_v53, %v2621_v54  ;;  %v6595_v54 = vld [vmem:[#allocation90_spill] sm:$0xff] }
 0x5cc   :  { %v4101_v5 = vpop.eup %4100 }
 0x5cd   :  { %v2649_v24 = vmul.f32 %v4101_v5, %v2617_v50  ;;  %v2626_v0 = vsel %vm2625_vm8, %v4099_v53, %v2622_v10  ;;  %v4103_v42 = vpop.eup %4102  ;;  %2853 = vmatpush.bf16.msra.mxu1 %v6188_v23  ;;  %2879 = vmatpush.bf16.msra.mxu3 %v6189_v22  ;;  %vm2654_vm10 = vweird.f32 %v4101_v5  ;;  %v2657_v53 = vand.u32 2147483647, %v2617_v50  ;;  %v6584_v50 = vld [vmem:[#allocation87_spill] sm:$0xff]  ;;  %v6599_v10 = vld [vmem:[#allocation94_spill] sm:$0xff] }
 0x5ce   :  { %v2631_v43 = vsel %vm2628_vm9, %v2630_v57, %v2626_v0  ;;  %vm2655_vm12 = vmor %vm2653_vm11, %vm2654_vm10  ;;  %v2660_v23 = vor.u32 1.1754944e-38, %v2659_v1  ;;  %v6602_v57 = vld [vmem:[#allocation109_spill] sm:$0xff]  ;;  %v6603_v0 = vld [vmem:[#allocation100_spill] sm:$0xff] }
 0x5cf   :  { %v2650_v61 = vsub.f32 1.0, %v2649_v24  ;;  %v2665_v15 = vmul.f32 %v4103_v42, %v2631_v43  ;;  %vm2658_vm13 = vcmp.eq.f32.partialorder %v2657_v53, 8.507059e+37  ;;  %v6600_v24 = vld [vmem:[#allocation106_spill] sm:$0xff]  ;;  %v6606_v43 = vld [vmem:[#allocation111_spill] sm:$0xff]  ;;  %v6611_v1 = vld [vmem:[#allocation117_spill] sm:$0xff] }
 0x5d0   :  { %v6605_v42 = vld [vmem:[#allocation102_spill] sm:$0xff]  ;;  %v6612_v53 = vld [vmem:[#allocation119_spill] sm:$0xff] }
 0x5d1   :  { %v2651_v41 = vmul.f32 %v4101_v5, %v2650_v61  ;;  %v5636_v17 = vadd.f32 %v2665_v15, %v2664_v33  ;;  %2854 = vmatpush.bf16.msra.mxu1 %v6190_v51  ;;  %2880 = vmatpush.bf16.msra.mxu3 %v6191_v14  ;;  %v6604_v61 = vld [vmem:[#allocation110_spill] sm:$0xff]  ;;  %v6607_v33 = vld [vmem:[#allocation112_spill] sm:$0xff] }
 0x5d2   :  { %v6608_v15 = vld [vmem:[#allocation114_spill] sm:$0xff] }
 0x5d3   :  { %v2652_v36 = vadd.f32 %v4101_v5, %v2651_v41  ;;  %4104 = vtanh.f32 %v5636_v17  ;;  %v6609_v41 = vld [vmem:[#allocation115_spill] sm:$0xff] }
 0x5d4   :  { %2744 = vmatmul.bf16.vlgmr.msrb.gmra.mxu1 %v2670_v8  ;;  %2770 = vmatmul.bf16.vlgmr.msrb.gmra.mxu3 %v2670_v8  ;;  %v6585_v8 = vld [vmem:[#allocation88_spill] sm:$0xff] }
 0x5d5   :  { %v2656_v22 = vsel %vm2655_vm12, %v4101_v5, %v2652_v36  ;;  %2855 = vmatpush.bf16.msra.mxu1 %v4380_v4  ;;  %2881 = vmatpush.bf16.msra.mxu3 %v6192_v60  ;;  %v6561_v4 = vld [vmem:[#allocation34_spill] sm:$0xff]  ;;  %v6577_v60 = vld [vmem:[#allocation77_spill] sm:$0xff]  ;;  %v6597_v5 = vld [vmem:[#allocation104_spill] sm:$0xff] }
 0x5d6   :  { %v2661_v29 = vsel %vm2658_vm13, %v2660_v23, %v2656_v22  ;;  %v6610_v36 = vld [vmem:[#allocation116_spill] sm:$0xff]  ;;  %v6614_v23 = vld [vmem:[#allocation121_spill] sm:$0xff] }
 0x5d7   :  { %v6613_v22 = vld [vmem:[#allocation120_spill] sm:$0xff] }
 0x5d9   :  { %v4105_v20 = vpop.eup %4104  ;;  %2856 = vmatpush.bf16.msra.mxu1 %v6193_v30  ;;  %2882 = vmatpush.bf16.msra.mxu3 %v6194_v62  ;;  %v6578_v30 = vld [vmem:[#allocation64_spill] sm:$0xff]  ;;  %v6579_v62 = vld [vmem:[#allocation66_spill] sm:$0xff] }
 0x5da   :  { %v2668_v51 = vmul.f32 %v4105_v20, %v2661_v29  ;;  %v6615_v20 = vld [vmem:[#allocation122_spill] sm:$0xff]  ;;  %v6616_v29 = vld [vmem:[#allocation123_spill] sm:$0xff] }
 0x5dc   :  { %v2669_v14 = vpack.c.bf16 %v2668_v51, %v2668_v51  ;;  %v6617_v51 = vld [vmem:[#allocation124_spill] sm:$0xff] }
 0x5dd   :  { %2857 = vmatpush.bf16.msra.mxu1 %v6195_v16  ;;  %2883 = vmatpush.bf16.msra.mxu3 %v6196_v44  ;;  %v6580_v16 = vld [vmem:[#allocation81_spill] sm:$0xff]  ;;  %v6581_v44 = vld [vmem:[#allocation82_spill] sm:$0xff] }
 0x5de   :  { %2679 = vmatmul.bf16.vlgmr.msra.gmra.mxu0 %v2669_v14  ;;  %2705 = vmatmul.bf16.vlgmr.msrb.gmra.mxu2 %v2669_v14 }
 0x5df   :  { %2838 = vmatpush.bf16.msra.mxu0 %v4327_v27  ;;  %2864 = vmatpush.bf16.msrb.mxu2 %v4325_v26  ;;  %v6557_v26 = vld [vmem:[#allocation29_spill] sm:$0xff]  ;;  %v6558_v27 = vld [vmem:[#allocation43_spill] sm:$0xff] }
 0x5e1   :  { %2858 = vmatpush.bf16.msra.mxu1 %v4432_v56  ;;  %2884 = vmatpush.bf16.msra.mxu3 %v4438_v59  ;;  %v6562_v56 = vld [vmem:[#allocation48_spill] sm:$0xff]  ;;  %v6563_v59 = vld [vmem:[#allocation49_spill] sm:$0xff] }
 0x5e3   :  { %2839 = vmatpush.bf16.msra.mxu0 %v4344_v37  ;;  %2865 = vmatpush.bf16.msrb.mxu2 %v4346_v38  ;;  %v6559_v37 = vld [vmem:[#allocation45_spill] sm:$0xff]  ;;  %v6560_v38 = vld [vmem:[#allocation31_spill] sm:$0xff] }
 0x5e4   :  { %2859 = vmatmul.bf16.vlgmr.msra.gmra.mxu1 %v2669_v14  ;;  %2885 = vmatmul.bf16.vlgmr.msra.gmra.mxu3 %v2669_v14 }
 0x5e5   :  { %2972 = vmatpush.bf16.msrb.mxu1 %v4461_v13  ;;  %2998 = vmatpush.bf16.msrb.mxu3 %v4470_v19  ;;  %v6564_v13 = vld [vmem:[#allocation33_spill] sm:$0xff]  ;;  %v6565_v19 = vld [vmem:[#allocation35_spill] sm:$0xff] }
 0x5e7   :  { %2840 = vmatpush.bf16.msra.mxu0 %v6138_v12  ;;  %2866 = vmatpush.bf16.msrb.mxu2 %v6139_v34  ;;  %v6571_v12 = vld [vmem:[#allocation56_spill] sm:$0xff]  ;;  %v6572_v34 = vld [vmem:[#allocation69_spill] sm:$0xff] }
 0x5e9   :  { %2973 = vmatpush.bf16.msrb.mxu1 %v4479_v31  ;;  %2999 = vmatpush.bf16.msrb.mxu3 %v4481_v35  ;;  %v6566_v31 = vld [vmem:[#allocation62_spill] sm:$0xff]  ;;  %v6567_v35 = vld [vmem:[#allocation51_spill] sm:$0xff] }
 0x5eb   :  { %2841 = vmatpush.bf16.msra.mxu0 %v6142_v28  ;;  %2867 = vmatpush.bf16.msrb.mxu2 %v6143_v7  ;;  %v6573_v28 = vld [vmem:[#allocation57_spill] sm:$0xff]  ;;  %v6574_v7 = vld [vmem:[#allocation58_spill] sm:$0xff] }
 0x5ed   :  { %2974 = vmatpush.bf16.msrb.mxu1 %v4490_v49  ;;  %3000 = vmatpush.bf16.msrb.mxu3 %v4494_v55  ;;  %v6568_v49 = vld [vmem:[#allocation63_spill] sm:$0xff]  ;;  %v6569_v55 = vld [vmem:[#allocation54_spill] sm:$0xff] }
 0x5ee   :  { %2731 = vmatmul.bf16.vlgmr.msrb.gmra.mxu0 %v2669_v14  ;;  %2757 = vmatmul.bf16.vlgmr.msra.gmra.mxu2 %v2669_v14 }
 0x5ef   :  { %2842 = vmatpush.bf16.msra.mxu0 %v6146_v18  ;;  %2868 = vmatpush.bf16.msrb.mxu2 %v6147_v32  ;;  %v6575_v18 = vld [vmem:[#allocation59_spill] sm:$0xff]  ;;  %v6576_v32 = vld [vmem:[#allocation74_spill] sm:$0xff] }
 0x5f1   :  { %2975 = vmatpush.bf16.msrb.mxu1 %v4500_v3  ;;  %3001 = vmatpush.bf16.msrb.mxu3 %v6482_v40  ;;  %v6570_v3 = vld [vmem:[#allocation68_spill] sm:$0xff]  ;;  %v6582_v40 = vld [vmem:[#allocation70_spill] sm:$0xff] }
 0x5f3   :  { %2843 = vmatpush.bf16.msra.mxu0 %v6483_v48  ;;  %2869 = vmatpush.bf16.msrb.mxu2 %v6557_v26  ;;  %v6583_v48 = vld [vmem:[#allocation72_spill] sm:$0xff] }
 0x5f5   :  { %2976 = vmatpush.bf16.msrb.mxu1 %v6558_v27  ;;  %3002 = vmatpush.bf16.msrb.mxu3 %v6559_v37 }
 0x5f7   :  { %2844 = vmatpush.bf16.msra.mxu0 %v6560_v38  ;;  %2870 = vmatpush.bf16.msrb.mxu2 %v6561_v4 }
 0x5f9   :  { %2977 = vmatpush.bf16.msrb.mxu1 %v6562_v56  ;;  %3003 = vmatpush.bf16.msrb.mxu3 %v6563_v59 }
 0x5fb   :  { %2845 = vmatpush.bf16.msra.mxu0 %v6564_v13  ;;  %2871 = vmatpush.bf16.msrb.mxu2 %v6565_v19  ;;  %v6618_v13 = vld [vmem:[#allocation16_spill] sm:$0xff] }
 0x5fd   :  { %2978 = vmatpush.bf16.msrb.mxu1 %v6567_v35  ;;  %3004 = vmatpush.bf16.msrb.mxu3 %v6569_v55 }
 0x5fe   :  { %2846 = vmatmul.bf16.vlgmr.msra.gmra.mxu0 %v2669_v14  ;;  %2872 = vmatmul.bf16.vlgmr.msrb.gmra.mxu2 %v2669_v14 }
 0x5ff   :  { %2959 = vmatpush.bf16.msrb.mxu0 %v6566_v31  ;;  %2985 = vmatpush.bf16.msra.mxu2 %v6568_v49 }
 0x601   :  { %2979 = vmatpush.bf16.msrb.mxu1 %v6571_v12  ;;  %3005 = vmatpush.bf16.msrb.mxu3 %v6573_v28 }
 0x603   :  { %2960 = vmatpush.bf16.msrb.mxu0 %v6570_v3  ;;  %2986 = vmatpush.bf16.msra.mxu2 %v6572_v34  ;;  %v6619_v3 = vld [vmem:[#allocation17_spill] sm:$0xff] }
 0x605   :  { %3024 = vmatpush.bf16.msra.mxu1 %v6574_v7  ;;  %3050 = vmatpush.bf16.msra.mxu3 %v6575_v18  ;;  %v6620_v7 = vld [vmem:[#allocation44_spill] sm:$0xff]  ;;  %v6621_v18 = vld [vmem:[#allocation101_spill] sm:$0xff] }
 0x607   :  { %2961 = vmatpush.bf16.msrb.mxu0 %v6576_v32  ;;  %2987 = vmatpush.bf16.msra.mxu2 %v6577_v60  ;;  %v176_v32 = vadd.f32 %v6621_v18, %v6620_v7 }
 0x609   :  { %3025 = vmatpush.bf16.msra.mxu1 %v6578_v30  ;;  %3051 = vmatpush.bf16.msra.mxu3 %v6579_v62 }
 0x60b   :  { %2962 = vmatpush.bf16.msrb.mxu0 %v6580_v16  ;;  %2988 = vmatpush.bf16.msra.mxu2 %v6581_v44 }
 0x60d   :  { %3026 = vmatpush.bf16.msra.mxu1 %v6582_v40  ;;  %3052 = vmatpush.bf16.msra.mxu3 %v6583_v48 }
 0x60f   :  { %2963 = vmatpush.bf16.msrb.mxu0 %v6584_v50  ;;  %2989 = vmatpush.bf16.msra.mxu2 %v6585_v8 }
 0x611   :  { %3027 = vmatpush.bf16.msra.mxu1 %v6586_v11  ;;  %3053 = vmatpush.bf16.msra.mxu3 %v6587_v46  ;;  %v6622_v46 = vld [vmem:[#allocation20_spill] sm:$0xff] }
 0x613   :  { %2964 = vmatpush.bf16.msrb.mxu0 %v6588_v2  ;;  %2990 = vmatpush.bf16.msra.mxu2 %v6589_v6 }
 0x615   :  { %3028 = vmatpush.bf16.msra.mxu1 %v6590_v21  ;;  %3054 = vmatpush.bf16.msra.mxu3 %v6591_v39 }
 0x617   :  { %2965 = vmatpush.bf16.msrb.mxu0 %v6592_v58  ;;  %2991 = vmatpush.bf16.msra.mxu2 %v6593_v63 }
 0x619   :  { %3029 = vmatpush.bf16.msra.mxu1 %v6594_v9  ;;  %3055 = vmatpush.bf16.msra.mxu3 %v6595_v54 }
 0x61b   :  { %2966 = vmatpush.bf16.msrb.mxu0 %v6596_v25  ;;  %2992 = vmatpush.bf16.msra.mxu2 %v6597_v5  ;;  %v6623_v5 = vld [vmem:[#allocation21_spill] sm:$0xff] }
 0x61d   :  { %3030 = vmatpush.bf16.msra.mxu1 %v6599_v10  ;;  %3056 = vmatpush.bf16.msra.mxu3 %v6601_v45 }
 0x61f   :  { %3011 = vmatpush.bf16.msra.mxu0 %v6598_v47  ;;  %3037 = vmatpush.bf16.msrb.mxu2 %v6600_v24 }
 0x621   :  { %3031 = vmatpush.bf16.msra.mxu1 %v6603_v0  ;;  %3057 = vmatpush.bf16.msra.mxu3 %v6605_v42 }
 0x623   :  { %3012 = vmatpush.bf16.msra.mxu0 %v6602_v57  ;;  %3038 = vmatpush.bf16.msrb.mxu2 %v6604_v61 }
 0x627   :  { %3013 = vmatpush.bf16.msra.mxu0 %v6606_v43  ;;  %3039 = vmatpush.bf16.msrb.mxu2 %v6607_v33 }
 0x62b   :  { %3014 = vmatpush.bf16.msra.mxu0 %v6608_v15  ;;  %3040 = vmatpush.bf16.msrb.mxu2 %v6609_v41 }
 0x62f   :  { %3015 = vmatpush.bf16.msra.mxu0 %v6610_v36  ;;  %3041 = vmatpush.bf16.msrb.mxu2 %v6611_v1 }
 0x633   :  { %3016 = vmatpush.bf16.msra.mxu0 %v6612_v53  ;;  %3042 = vmatpush.bf16.msrb.mxu2 %v6613_v22 }
 0x637   :  { %3017 = vmatpush.bf16.msra.mxu0 %v6614_v23  ;;  %3043 = vmatpush.bf16.msrb.mxu2 %v6615_v20  ;;  %v6624_v23 = vld [vmem:[#allocation36_spill] sm:$0xff]  ;;  %v6625_v20 = vld [vmem:[#allocation41_spill] sm:$0xff] }
 0x63b   :  { %3018 = vmatpush.bf16.msra.mxu0 %v6616_v29  ;;  %3044 = vmatpush.bf16.msrb.mxu2 %v6617_v51  ;;  %v147_v29 = vadd.f32 %v6625_v20, %v6624_v23 }
 0x641   :  { %v2693_v14 = vpop.f32.mrf.mxu1 }
 0x647   :  { %v2719_v26 = vpop.f32.mrf.mxu3 }
 0x649   :  { %v2695_v27 = vpop.f32.mrf.mxu1 }
 0x64f   :  { %v2721_v37 = vpop.f32.mrf.mxu3 }
 0x651   :  { %v2745_v38 = vpop.f32.mrf.mxu1 }
 0x657   :  { %v2771_v4 = vpop.f32.mrf.mxu3 }
 0x659   :  { %v2747_v56 = vpop.f32.mrf.mxu1 }
 0x65b   :  { %v2680_v59 = vpop.f32.mrf.mxu0 }
 0x65c   :  { %v2681_v19 = vadd.f32 %v2680_v59, %v6618_v13 }
 0x65e   :  { %v2694_v31 = vadd.f32 %v2693_v14, %v2681_v19 }
 0x65f   :  { %v2773_v49 = vpop.f32.mrf.mxu3 }
 0x660   :  { %v3722_v35 = vmul.f32 -1.442695, %v2694_v31 }
 0x661   :  { %v2706_v55 = vpop.f32.mrf.mxu2  ;;  %v2860_v28 = vpop.f32.mrf.mxu1 }
 0x662   :  { %4106 = vpow2.f32 %v3722_v35  ;;  %v2707_v12 = vadd.f32 %v2706_v55, %v6619_v3  ;;  %v2891_v62 = vadd.f32 %v2860_v28, %v176_v32  ;;  %v6629_v28 = vld [vmem:[#allocation118_spill] sm:$0xff] }
 0x663   :  { %v2682_v34 = vpop.f32.mrf.mxu0 }
 0x664   :  { %v2720_v60 = vadd.f32 %v2719_v26, %v2707_v12  ;;  %v3726_v48 = vmul.f32 -1.442695, %v2891_v62  ;;  %v6628_v34 = vld [vmem:[#allocation71_spill] sm:$0xff] }
 0x665   :  { %v205_v7 = vadd.f32 %v6629_v28, %v6628_v34 }
 0x666   :  { %v3723_v30 = vmul.f32 -1.442695, %v2720_v60 }
 0x667   :  { %v5733_v50 = vpop.f32.mrf.mxu3 }
 0x668   :  { %v4107_v16 = vpop.eup %4106  ;;  %4108 = vpow2.f32 %v3723_v30 }
 0x669   :  { %v2784_v44 = vadd.f32 1.0, %v4107_v16  ;;  %v2708_v40 = vpop.f32.mrf.mxu2  ;;  %v2862_v11 = vpop.f32.mrf.mxu1 }
 0x66b   :  { %4110 = vrcp.f32 %v2784_v44  ;;  %v2732_v8 = vpop.f32.mrf.mxu0  ;;  %v2798_v41 = vand.u32 2147483648, %v2784_v44  ;;  %vm2792_vm15 = vweird.f32 %v2784_v44  ;;  %v2796_v22 = vand.u32 2147483647, %v2784_v44 }
 0x66c   :  { %v2733_v2 = vadd.f32 %v2732_v8, %v6622_v46  ;;  %4112 = vpow2.f32 %v3726_v48 }
 0x66d   :  { %vm2797_vm3 = vcmp.eq.f32.partialorder %v2796_v22, 8.507059e+37 }
 0x66e   :  { %v4109_v6 = vpop.eup %4108  ;;  %v2746_v21 = vadd.f32 %v2745_v38, %v2733_v2 }
 0x66f   :  { %v2785_v39 = vadd.f32 1.0, %v4109_v6  ;;  %v2888_v25 = vpop.f32.mrf.mxu3 }
 0x670   :  { %v3724_v58 = vmul.f32 -1.442695, %v2746_v21 }
 0x671   :  { %v4111_v63 = vpop.eup %4110  ;;  %4114 = vrcp.f32 %v2785_v39  ;;  %v2758_v9 = vpop.f32.mrf.mxu2  ;;  %v2813_v51 = vand.u32 2147483648, %v2785_v39  ;;  %v2811_v26 = vand.u32 2147483647, %v2785_v39  ;;  %vm2807_vm2 = vweird.f32 %v2785_v39 }
 0x672   :  { %v2788_v54 = vmul.f32 %v4111_v63, %v2784_v44  ;;  %4116 = vpow2.f32 %v3724_v58  ;;  %v2759_v47 = vadd.f32 %v2758_v9, %v6623_v5  ;;  %v4113_v24 = vpop.eup %4112  ;;  %vm2793_vm14 = vweird.f32 %v4111_v63 }
 0x673   :  { %v2734_v10 = vpop.f32.mrf.mxu0  ;;  %v5737_v42 = vadd.f32 1.0, %v4113_v24  ;;  %vm5742_vm0 = vmor %vm2792_vm15, %vm2793_vm14  ;;  %v2814_v31 = vor.u32 1.1754944e-38, %v2813_v51  ;;  %vm2812_vm5 = vcmp.eq.f32.partialorder %v2811_v26, 8.507059e+37 }
 0x674   :  { %v2789_v45 = vsub.f32 1.0, %v2788_v54  ;;  %v2772_v57 = vadd.f32 %v2771_v4, %v2759_v47  ;;  %v2799_v4 = vor.u32 1.1754944e-38, %v2798_v41 }
 0x675   :  { %v2932_v23 = vand.u32 2147483648, %v5737_v42  ;;  %vm2926_vm11 = vweird.f32 %v5737_v42  ;;  %v2930_v20 = vand.u32 2147483647, %v5737_v42 }
 0x676   :  { %v2790_v0 = vmul.f32 %v4111_v63, %v2789_v45  ;;  %4118 = vtanh.f32 %v2772_v57 }
 0x677   :  { %v4115_v61 = vpop.eup %4114  ;;  %4120 = vrcp.f32 %v5737_v42  ;;  %vm2931_vm14 = vcmp.eq.f32.partialorder %v2930_v20, 8.507059e+37 }
 0x678   :  { %v2803_v43 = vmul.f32 %v4115_v61, %v2785_v39  ;;  %v2791_v33 = vadd.f32 %v4111_v63, %v2790_v0  ;;  %v4117_v15 = vpop.eup %4116  ;;  %vm2808_vm1 = vweird.f32 %v4115_v61 }
 0x679   :  { %v2760_v36 = vpop.f32.mrf.mxu2  ;;  %v2786_v53 = vadd.f32 1.0, %v4117_v15  ;;  %vm2809_vm4 = vmor %vm2807_vm2, %vm2808_vm1 }
 0x67a   :  { %v2804_v1 = vsub.f32 1.0, %v2803_v43  ;;  %v2795_v38 = vsel %vm5742_vm0, %v4111_v63, %v2791_v33  ;;  %v6631_v43 = vld [vmem:[#allocation108_spill] sm:$0xff] }
 0x67b   :  { %v2847_v27 = vpop.f32.mrf.mxu0  ;;  %4122 = vrcp.f32 %v2786_v53  ;;  %v2800_v35 = vsel %vm2797_vm3, %v2799_v4, %v2795_v38  ;;  %v2828_v6 = vand.u32 2147483648, %v2786_v53  ;;  %vm2822_vm7 = vweird.f32 %v2786_v53 }
 0x67c   :  { %v2805_v37 = vmul.f32 %v4115_v61, %v2804_v1  ;;  %v2890_v56 = vadd.f32 %v2847_v27, %v147_v29  ;;  %v4119_v19 = vpop.eup %4118 }
 0x67d   :  { %v5748_v12 = vpop.eup %4120  ;;  %v2834_v30 = vmul.f32 %v4119_v19, %v2800_v35  ;;  %v2829_v25 = vor.u32 1.1754944e-38, %v2828_v6 }
 0x67e   :  { %v2806_v59 = vadd.f32 %v4115_v61, %v2805_v37  ;;  %v3725_v49 = vmul.f32 -1.442695, %v2890_v56  ;;  %v2922_v8 = vmul.f32 %v5748_v12, %v5737_v42  ;;  %vm2927_vm10 = vweird.f32 %v5748_v12 }
 0x67f   :  { %vm2928_vm12 = vmor %vm2926_vm11, %vm2927_vm10  ;;  %v2933_v37 = vor.u32 1.1754944e-38, %v2932_v23 }
 0x680   :  { %v2810_v55 = vsel %vm2809_vm4, %v4115_v61, %v2806_v59  ;;  %4124 = vpow2.f32 %v3725_v49  ;;  %v2923_v63 = vsub.f32 1.0, %v2922_v8  ;;  %v6630_v61 = vld [vmem:[#allocation50_spill] sm:$0xff] }
 0x681   :  { %v2815_v18 = vsel %vm2812_vm5, %v2814_v31, %v2810_v55  ;;  %v4123_v32 = vpop.eup %4122  ;;  %v2873_v62 = vpop.f32.mrf.mxu2  ;;  %v234_v33 = vadd.f32 %v6631_v43, %v6630_v61 }
 0x682   :  { %v2833_v60 = vmul.f32 %v2815_v18, %v5609_v52  ;;  %v2818_v16 = vmul.f32 %v4123_v32, %v2786_v53  ;;  %v2892_v44 = vadd.f32 %v2873_v62, %v205_v7  ;;  %vm2823_vm6 = vweird.f32 %v4123_v32 }
 0x683   :  { %v2849_v40 = vpop.f32.mrf.mxu0  ;;  %v2826_v52 = vand.u32 2147483647, %v2786_v53  ;;  %vm2824_vm8 = vmor %vm2822_vm7, %vm2823_vm6  ;;  %v2924_v57 = vmul.f32 %v5748_v12, %v2923_v63  ;;  %v2893_v1 = vadd.f32 %v5733_v50, %v234_v33  ;;  %v3877_v33 = vld [vmem:[%s5825_s6 + $0x8] sm:$0xff] }
 0x684   :  { %v5753_v48 = vadd.f32 %v2834_v30, %v2833_v60  ;;  %v2819_v11 = vsub.f32 1.0, %v2818_v16  ;;  %v3727_v2 = vmul.f32 -1.442695, %v2892_v44 }
 0x685   :  { %vm2827_vm9 = vcmp.eq.f32.partialorder %v2826_v52, 8.507059e+37  ;;  %v2925_v53 = vadd.f32 %v5748_v12, %v2924_v57  ;;  %v3881_v52 = vld [vmem:[%s5825_s6 + $0x28] sm:$0xff] }
 0x686   :  { %4126 = vtanh.f32 %v5753_v48  ;;  %v4125_v21 = vpop.eup %4124  ;;  %v2820_v39 = vmul.f32 %v4123_v32, %v2819_v11 }
 0x687   :  { %4128 = vpow2.f32 %v3727_v2  ;;  %v2903_v58 = vadd.f32 1.0, %v4125_v21  ;;  %v2929_v50 = vsel %vm2928_vm12, %v5748_v12, %v2925_v53  ;;  %v3883_v2 = vld [vmem:[%s5825_s6 + $0x38] sm:$0xff]  ;;  %v3882_v21 = vld [vmem:[%s5825_s6 + $0x30] sm:$0xff] }
 0x688   :  { %v2821_v9 = vadd.f32 %v4123_v32, %v2820_v39  ;;  %v2934_v56 = vsel %vm2931_vm14, %v2933_v37, %v2929_v50 }
 0x689   :  { %4130 = vrcp.f32 %v2903_v58  ;;  %v2875_v54 = vpop.f32.mrf.mxu2  ;;  %v2917_v51 = vand.u32 2147483648, %v2903_v58  ;;  %v2915_v26 = vand.u32 2147483647, %v2903_v58  ;;  %vm2911_vm15 = vweird.f32 %v2903_v58 }
 0x68a   :  { %v2825_v47 = vsel %vm2824_vm8, %v4123_v32, %v2821_v9  ;;  %v2952_v49 = vmul.f32 %v2934_v56, %v5636_v17  ;;  %v3880_v54 = vld [vmem:[%s5825_s6 + $0x20] sm:$0xff] }
 0x68b   :  { %v2830_v24 = vsel %vm2827_vm9, %v2829_v25, %v2825_v47  ;;  %v2918_v59 = vor.u32 1.1754944e-38, %v2917_v51  ;;  %vm2916_vm1 = vcmp.eq.f32.partialorder %v2915_v26, 8.507059e+37 }
 0x68c   :  { %v4127_v10 = vpop.eup %4126 }
 0x68d   :  { %v4129_v45 = vpop.eup %4128  ;;  %v2837_v0 = vmul.f32 %v4127_v10, %v2830_v24 }
 0x68e   :  { %v2905_v15 = vadd.f32 1.0, %v4129_v45  ;;  %v3879_v45 = vld [vmem:[%s5825_s6 + $0x18] sm:$0xff] }
 0x68f   :  { %v2958_v41 = vpack.c.bf16 %v2837_v0, %v2837_v0  ;;  %v4131_v36 = vpop.eup %4130 }
 0x690   :  { %4132 = vrcp.f32 %v2905_v15  ;;  %v2907_v22 = vmul.f32 %v4131_v36, %v2903_v58  ;;  %vm2912_vm13 = vweird.f32 %v4131_v36  ;;  %v2947_v7 = vand.u32 2147483648, %v2905_v15 }
 0x691   :  { %2980 = vmatmul.bf16.vlgmr.msrb.gmra.mxu1 %v2958_v41  ;;  %3006 = vmatmul.bf16.vlgmr.msrb.gmra.mxu3 %v2958_v41  ;;  %4134 = vtanh.f32 %v2893_v1  ;;  %vm2913_vm0 = vmor %vm2911_vm15, %vm2912_vm13  ;;  %vm2941_vm3 = vweird.f32 %v2905_v15  ;;  %v2945_v18 = vand.u32 2147483647, %v2905_v15 }
 0x692   :  { %v2908_v29 = vsub.f32 1.0, %v2907_v22  ;;  %v2948_v60 = vor.u32 1.1754944e-38, %v2947_v7 }
 0x693   :  { %vm2946_vm5 = vcmp.eq.f32.partialorder %v2945_v18, 8.507059e+37 }
 0x694   :  { %v2909_v14 = vmul.f32 %v4131_v36, %v2908_v29 }
 0x696   :  { %v4133_v27 = vpop.eup %4132  ;;  %v2910_v38 = vadd.f32 %v4131_v36, %v2909_v14  ;;  %v3887_v14 = vld [vmem:[%s5827_s8 + $0x18] sm:$0xff] }
 0x697   :  { %v2937_v4 = vmul.f32 %v4133_v27, %v2905_v15  ;;  %v4135_v31 = vpop.eup %4134  ;;  %vm2942_vm2 = vweird.f32 %v4133_v27  ;;  %3254 = vmatpush.bf16.msrb.mxu1 %v3887_v14 }
 0x698   :  { %v2914_v19 = vsel %vm2913_vm0, %v4131_v36, %v2910_v38  ;;  %vm2943_vm4 = vmor %vm2941_vm3, %vm2942_vm2  ;;  %vm3246_vm2 = vcmask 523264   ;;  %vm3263_vm3 = vcmask 9216  }
 0x699   :  { %v2938_v42 = vsub.f32 1.0, %v2937_v4  ;;  %v2919_v35 = vsel %vm2916_vm1, %v2918_v59, %v2914_v19  ;;  %v3885_v19 = vld [vmem:[%s5827_s8 + $0x8] sm:$0xff] }
 0x69a   :  { %v2953_v55 = vmul.f32 %v4135_v31, %v2919_v35 }
 0x69b   :  { %v2939_v12 = vmul.f32 %v4133_v27, %v2938_v42 }
 0x69c   :  { %v2954_v34 = vadd.f32 %v2953_v55, %v2952_v49 }
 0x69d   :  { %v2940_v28 = vadd.f32 %v4133_v27, %v2939_v12 }
 0x69e   :  { %4136 = vtanh.f32 %v2954_v34 }
 0x69f   :  { %v2944_v32 = vsel %vm2943_vm4, %v4133_v27, %v2940_v28 }
 0x6a0   :  { %v2949_v62 = vsel %vm2946_vm5, %v2948_v60, %v2944_v32 }
 0x6a1   :  { %3032 = vmatmul.bf16.vlgmr.msra.gmra.mxu1 %v2958_v41  ;;  %3058 = vmatmul.bf16.vlgmr.msra.gmra.mxu3 %v2958_v41 }
 0x6a4   :  { %v4137_v30 = vpop.eup %4136 }
 0x6a5   :  { %v2956_v16 = vmul.f32 %v4137_v30, %v2949_v62 }
 0x6a7   :  { %v2957_v44 = vpack.c.bf16 %v2956_v16, %v2956_v16 }
 0x6a9   :  { %2967 = vmatmul.bf16.vlgmr.msrb.gmra.mxu0 %v2957_v44  ;;  %2993 = vmatmul.bf16.vlgmr.msra.gmra.mxu2 %v2957_v44 }
 0x6aa   :  { %3195 = vmatpush.bf16.msrb.mxu0 %v3883_v2 }
 0x6ae   :  { %3196 = vmatpush.bf16.msrb.mxu0 %v3882_v21 }
 0x6b2   :  { %3197 = vmatpush.bf16.msrb.mxu0 %v3881_v52 }
 0x6b6   :  { %3198 = vmatpush.bf16.msrb.mxu0 %v3880_v54 }
 0x6b9   :  { %3019 = vmatmul.bf16.vlgmr.msra.gmra.mxu0 %v2957_v44  ;;  %3045 = vmatmul.bf16.vlgmr.msrb.gmra.mxu2 %v2957_v44 }
 0x6ba   :  { %3199 = vmatpush.bf16.msrb.mxu0 %v3879_v45 }
 0x70e   :  { %v2981_v17 = vpop.f32.mrf.mxu1 }
 0x714   :  { %v3007_v40 = vpop.f32.mrf.mxu3 }
 0x716   :  { %v2983_v8 = vpop.f32.mrf.mxu1 }
 0x71c   :  { %v3009_v11 = vpop.f32.mrf.mxu3 }
 0x71e   :  { %v3033_v6 = vpop.f32.mrf.mxu1 }
 0x724   :  { %v3059_v39 = vpop.f32.mrf.mxu3 }
 0x726   :  { %v3035_v58 = vpop.f32.mrf.mxu1  ;;  %v2968_v63 = vpop.f32.mrf.mxu0 }
 0x727   :  { %v2969_v9 = vadd.f32 %v2968_v63, %v6618_v13  ;;  %v3878_v13 = vld [vmem:[%s5825_s6 + $0x10] sm:$0xff] }
 0x728   :  { %3200 = vmatpush.bf16.msrb.mxu0 %v3878_v13 }
 0x729   :  { %v2982_v25 = vadd.f32 %v2981_v17, %v2969_v9 }
 0x72b   :  { %v3728_v47 = vmul.f32 -1.442695, %v2982_v25 }
 0x72c   :  { %v3061_v10 = vpop.f32.mrf.mxu3  ;;  %v2994_v24 = vpop.f32.mrf.mxu2  ;;  %3201 = vmatpush.bf16.msrb.mxu0 %v3877_v33 }
 0x72d   :  { %4138 = vpow2.f32 %v3728_v47  ;;  %v2995_v57 = vadd.f32 %v2994_v24, %v6619_v3  ;;  %v3876_v3 = vld [vmem:[%s5825_s6] sm:$0xff] }
 0x72e   :  { %v2970_v0 = vpop.f32.mrf.mxu0 }
 0x72f   :  { %v3008_v61 = vadd.f32 %v3007_v40, %v2995_v57  ;;  %v3896_v57 = vld [vmem:[%s5826_s7] ss:$0 sm:$0xff] }
 0x730   :  { %3202 = vmatpush.bf16.msrb.mxu0 %v3876_v3 }
 0x731   :  { %v3729_v43 = vmul.f32 -1.442695, %v3008_v61 }
 0x733   :  { %v4139_v15 = vpop.eup %4138  ;;  %4140 = vpow2.f32 %v3729_v43 }
 0x734   :  { %v3072_v41 = vadd.f32 1.0, %v4139_v15  ;;  %v2996_v36 = vpop.f32.mrf.mxu2  ;;  %v3897_v15 = vld [vmem:[%s5828_s9] ss:$0 sm:$0xff] }
 0x736   :  { %4142 = vrcp.f32 %v3072_v41  ;;  %v3020_v1 = vpop.f32.mrf.mxu0  ;;  %v3086_v49 = vand.u32 2147483648, %v3072_v41  ;;  %vm3080_vm7 = vweird.f32 %v3072_v41  ;;  %v3084_v34 = vand.u32 2147483647, %v3072_v41 }
 0x737   :  { %v3021_v53 = vadd.f32 %v3020_v1, %v6622_v46  ;;  %v3886_v46 = vld [vmem:[%s5827_s8 + $0x10] sm:$0xff] }
 0x738   :  { %3255 = vmatpush.bf16.msrb.mxu1 %v3886_v46  ;;  %v3087_v60 = vor.u32 1.1754944e-38, %v3086_v49  ;;  %vm3085_vm11 = vcmp.eq.f32.partialorder %v3084_v34, 8.507059e+37 }
 0x739   :  { %v4141_v22 = vpop.eup %4140  ;;  %v3034_v23 = vadd.f32 %v3033_v6, %v3021_v53 }
 0x73a   :  { %v3073_v20 = vadd.f32 1.0, %v4141_v22 }
 0x73b   :  { %v3730_v29 = vmul.f32 -1.442695, %v3034_v23 }
 0x73c   :  { %v4143_v51 = vpop.eup %4142  ;;  %4144 = vrcp.f32 %v3073_v20  ;;  %v3046_v50 = vpop.f32.mrf.mxu2  ;;  %v3101_v28 = vand.u32 2147483648, %v3073_v20  ;;  %3256 = vmatpush.bf16.msrb.mxu1 %v3885_v19  ;;  %v3099_v32 = vand.u32 2147483647, %v3073_v20  ;;  %vm3095_vm10 = vweird.f32 %v3073_v20 }
 0x73d   :  { %v3076_v26 = vmul.f32 %v4143_v51, %v3072_v41  ;;  %4146 = vpow2.f32 %v3730_v29  ;;  %v3047_v27 = vadd.f32 %v3046_v50, %v6623_v5  ;;  %vm3081_vm6 = vweird.f32 %v4143_v51 }
 0x73e   :  { %v3022_v37 = vpop.f32.mrf.mxu0  ;;  %vm3082_vm8 = vmor %vm3080_vm7, %vm3081_vm6  ;;  %v3102_v16 = vor.u32 1.1754944e-38, %v3101_v28  ;;  %vm3100_vm13 = vcmp.eq.f32.partialorder %v3099_v32, 8.507059e+37 }
 0x73f   :  { %v3077_v38 = vsub.f32 1.0, %v3076_v26  ;;  %v3060_v4 = vadd.f32 %v3059_v39, %v3047_v27 }
 0x741   :  { %v3078_v56 = vmul.f32 %v4143_v51, %v3077_v38  ;;  %4148 = vtanh.f32 %v3060_v4 }
 0x742   :  { %v4145_v59 = vpop.eup %4144 }
 0x743   :  { %v4147_v42 = vpop.eup %4146  ;;  %v3091_v31 = vmul.f32 %v4145_v59, %v3073_v20  ;;  %v3079_v35 = vadd.f32 %v4143_v51, %v3078_v56  ;;  %vm3096_vm9 = vweird.f32 %v4145_v59 }
 0x744   :  { %v3074_v5 = vadd.f32 1.0, %v4147_v42  ;;  %v3048_v55 = vpop.f32.mrf.mxu2  ;;  %vm3097_vm12 = vmor %vm3095_vm10, %vm3096_vm9 }
 0x745   :  { %v3092_v12 = vsub.f32 1.0, %v3091_v31  ;;  %v3083_v18 = vsel %vm3082_vm8, %v4143_v51, %v3079_v35 }
 0x746   :  { %4150 = vrcp.f32 %v3074_v5  ;;  %v3088_v44 = vsel %vm3085_vm11, %v3087_v60, %v3083_v18  ;;  %v3116_v52 = vand.u32 2147483648, %v3074_v5  ;;  %v3114_v63 = vand.u32 2147483647, %v3074_v5 }
 0x747   :  { %v3093_v7 = vmul.f32 %v4145_v59, %v3092_v12  ;;  %v4149_v62 = vpop.eup %4148  ;;  %vm3110_vm15 = vweird.f32 %v3074_v5 }
 0x748   :  { %v3122_v6 = vmul.f32 %v4149_v62, %v3088_v44  ;;  %v3117_v54 = vor.u32 1.1754944e-38, %v3116_v52  ;;  %vm3115_vm1 = vcmp.eq.f32.partialorder %v3114_v63, 8.507059e+37 }
 0x749   :  { %v3094_v30 = vadd.f32 %v4145_v59, %v3093_v7 }
 0x74b   :  { %v3098_v17 = vsel %vm3097_vm12, %v4145_v59, %v3094_v30 }
 0x74c   :  { %v4151_v40 = vpop.eup %4150  ;;  %v3103_v8 = vsel %vm3100_vm13, %v3102_v16, %v3098_v17 }
 0x74d   :  { %v3106_v11 = vmul.f32 %v4151_v40, %v3074_v5  ;;  %v3121_v2 = vmul.f32 %v3103_v8, %v5753_v48  ;;  %vm3111_vm14 = vweird.f32 %v4151_v40  ;;  %v3884_v48 = vld [vmem:[%s5827_s8] sm:$0xff] }
 0x74e   :  { %vm3112_vm0 = vmor %vm3110_vm15, %vm3111_vm14  ;;  %3257 = vmatpush.bf16.msrb.mxu1 %v3884_v48 }
 0x74f   :  { %v3107_v21 = vsub.f32 1.0, %v3106_v11  ;;  %v3123_v39 = vadd.f32 %v3122_v6, %v3121_v2 }
 0x751   :  { %v3108_v58 = vmul.f32 %v4151_v40, %v3107_v21  ;;  %4152 = vtanh.f32 %v3123_v39 }
 0x753   :  { %v3109_v9 = vadd.f32 %v4151_v40, %v3108_v58 }
 0x755   :  { %v3113_v25 = vsel %vm3112_vm0, %v4151_v40, %v3109_v9 }
 0x756   :  { %v3118_v47 = vsel %vm3115_vm1, %v3117_v54, %v3113_v25 }
 0x757   :  { %v4153_v10 = vpop.eup %4152 }
 0x758   :  { %v3125_v24 = vmul.f32 %v4153_v10, %v3118_v47 }
 0x75a   :  { %v3126_v45 = vpack.c.bf16 %v3125_v24, %v3125_v24 }
 0x75c   :  { %3203 = vmatmul.bf16.vlgmr.msrb.gmra.mxu0 %v3126_v45 }
 0x7d9   :  { %v3204_v0 = vpop.f32.mrf.mxu0 }
 0x7da   :  { %v3205_v61 = vadd.f32 %v3896_v57, %v3204_v0 }
 0x7dc   :  { %v3208_v13 = vmax.f32 %v3205_v61, 0.0 }
 0x7de   :  { %v3209_v43 = vpack.c.bf16 %v3208_v13, %v3208_v13 }
 0x7e0   :  { %3779 = vmatmul.msk.bf16.vlgmr.msrb.gmra.mxu1 %vm3246_vm2, %v3209_v43 }
 0x7e1   :  { %v3206_v33 = vpop.f32.mrf.mxu0 }
 0x85d   :  { %v3259_v41 = vpop.f32.mrf.mxu1 }
 0x85e   :  { %v3260_v36 = vadd.f32 %v3897_v15, %v3259_v41 }
 0x860   :  { %3264 = vst.msk [vmem:[#allocation7] sm:$0x3] %vm3263_vm3, %v3260_v36 }
 0x861   :  { %3275 = dma.vmem_to_hbm [thread:$0]  %s3271_s23, 32, %s3273_s2, [#allocation4]  }
 0x865   :  { %v3261_v1 = vpop.f32.mrf.mxu1 }
 0x866   :  { %4230 = dma.done.wait [#allocation4], 32  }
 0x867   :  { %4231 = vsyncadd [#allocation4], 4294967264 }
 0x868   :  { %3280 = vsyncpa [#allocation3], 1 }
 0x869   :  { %3281 = vsyncpa [#allocation6], 1 }
 0x86a   :  { %3282 = vsyncpa [#allocation4], 1 }

</bundles_post_ra>
